<compile_context>
chip_gen: v7x
topology: tpu7x:2x2x1
jax: 0.10.0
libtpu: 0.0.40
codegen_flags: <defaults>
</compile_context>

<pallas_src>
import functools

import jax
import jax.numpy as jnp
from jax.experimental import pallas as pl
from jax.experimental.pallas import tpu as pltpu

VOCAB = 100        # Embedding(100, hidden_dim)
H_PAD = 128        # hidden_dim (100) zero-padded to the 128-lane width (params only)
VOCAB_PAD = 128    # vocab (100) zero-padded to the 128-lane width
MAX_TILE_E = 2048  # upper bound on edges per grid step (~10 MiB resident VMEM)


def _round_up(x: int, m: int) -> int:
    return ((x + m - 1) // m) * m


def _pick_tile(num_edges: int) -> int:
    # Keep >=4 grid steps when E allows (v7x megacore sharding of the
    # "parallel" edge axis) while amortizing per-grid-step pipeline overhead.
    return min(MAX_TILE_E, max(128, _round_up(pl.cdiv(num_edges, 4), 128)))


def _edge_encoder_kernel(el_ref, et_ref, w1_ref, b1_ref, w2_ref, b2_ref,
                         emb_ref, out_ref):
    te = el_ref.shape[0]
    el = el_ref[...]                                              # (TE, 1) f32
    et = et_ref[...]                                              # (TE, 1) i32

    # MLP layer 1: Linear(1 -> H) + relu. Pure VPU elementwise, exact f32.
    h = jnp.maximum(el * w1_ref[...] + b1_ref[...], 0.0)          # (TE, H_PAD)

    # MLP layer 2: Linear(H -> H), no activation on the last MLP layer.
    # HIGHEST => f32 multi-pass on the MXU (matches the f32 reference).
    d_emb = jnp.dot(h, w2_ref[...],
                    preferred_element_type=jnp.float32,
                    precision=jax.lax.Precision.HIGHEST) + b2_ref[...]

    # Embedding lookup as a one-hot x table MXU matmul.  HIGHEST keeps the
    # gathered table values f32-exact (a single bf16 pass would round them).
    vocab_ids = jax.lax.broadcasted_iota(jnp.int32, (te, VOCAB_PAD), 1)
    onehot = (vocab_ids == et).astype(jnp.float32)                # (TE, VOCAB_PAD)
    edge_attr = jnp.dot(onehot, emb_ref[...],
                        preferred_element_type=jnp.float32,
                        precision=jax.lax.Precision.HIGHEST)      # (TE, H_PAD)

    # Write the true 100-wide output directly (masked store); no post-kernel slice.
    out_ref[...] = (d_emb * edge_attr)[:, :out_ref.shape[1]].astype(out_ref.dtype)


@functools.partial(jax.jit, static_argnames=("hidden_dim",))
def mlp_edge_encoder(edge_length, edge_type, w1, b1, w2, b2, emb_table,
                     *, hidden_dim):
    """MLPEdgeEncoder forward.

    edge_length: (E, 1) f32; edge_type: (E,) int in [0, 100).
    w1: (1, H) = Linear(1,H).weight.T, b1: (H,),
    w2: (H, H) = Linear(H,H).weight.T, b2: (H,), emb_table: (100, H).
    Returns (E, H) f32.
    """
    E = edge_length.shape[0]
    H = hidden_dim
    assert H <= H_PAD and VOCAB <= VOCAB_PAD

    el = edge_length.astype(jnp.float32).reshape(E, 1)
    et = edge_type.astype(jnp.int32).reshape(E, 1)

    # Zero-pad parameters from H/VOCAB to 128 lanes (padded lanes compute exact zeros).
    w1_p = jnp.zeros((1, H_PAD), jnp.float32).at[:, :H].set(w1.reshape(1, H))
    b1_p = jnp.zeros((1, H_PAD), jnp.float32).at[:, :H].set(b1.reshape(1, H))
    w2_p = jnp.zeros((H_PAD, H_PAD), jnp.float32).at[:H, :H].set(w2)
    b2_p = jnp.zeros((1, H_PAD), jnp.float32).at[:, :H].set(b2.reshape(1, H))
    emb_p = jnp.zeros((VOCAB_PAD, H_PAD), jnp.float32).at[:VOCAB, :H].set(emb_table)

    tile_e = _pick_tile(E)
    grid = (pl.cdiv(E, tile_e),)   # no E padding; last partial block is masked by Pallas

    return pl.pallas_call(
        _edge_encoder_kernel,
        out_shape=jax.ShapeDtypeStruct((E, H), jnp.float32),
        grid=grid,
        in_specs=[
            pl.BlockSpec((tile_e, 1), lambda i: (i, 0)),          # edge_length tile
            pl.BlockSpec((tile_e, 1), lambda i: (i, 0)),          # edge_type tile
            pl.BlockSpec((1, H_PAD), lambda i: (0, 0)),           # w1
            pl.BlockSpec((1, H_PAD), lambda i: (0, 0)),           # b1
            pl.BlockSpec((H_PAD, H_PAD), lambda i: (0, 0)),       # w2
            pl.BlockSpec((1, H_PAD), lambda i: (0, 0)),           # b2
            pl.BlockSpec((VOCAB_PAD, H_PAD), lambda i: (0, 0)),   # embedding table
        ],
        out_specs=pl.BlockSpec((tile_e, H), lambda i: (i, 0)),    # 100-wide output, no slice
        compiler_params=pltpu.CompilerParams(
            dimension_semantics=("parallel",)),
    )(el, et, w1_p, b1_p, w2_p, b2_p, emb_p)


def _reference(edge_length, edge_type, w1, b1, w2, b2, emb_table):
    # Layer 1 elementwise (exact f32, same as the kernel); layer 2 at HIGHEST
    # precision so the gold value is f32-exact like the kernel's MXU passes.
    h = jnp.maximum(edge_length * w1 + b1, 0.0)
    d_emb = jnp.dot(h, w2, precision=jax.lax.Precision.HIGHEST) + b2
    edge_attr = emb_table[edge_type]
    return d_emb * edge_attr


if __name__ == "__main__":
    key = jax.random.PRNGKey(0)
    k_len, k_type, k_w1, k_b1, k_w2, k_b2, k_emb = jax.random.split(key, 7)

    E = 1000          # deliberately NOT a multiple of the edge tile (exercises masking)
    HIDDEN = 100      # module default hidden_dim

    # Inputs (edge lengths are positive distances; edge types in [0, 100)).
    edge_length = jax.random.uniform(k_len, (E, 1), jnp.float32, 0.5, 3.0)
    edge_type = jax.random.randint(k_type, (E,), 0, VOCAB, jnp.int32)

    # Deterministic synthetic parameters (shapes per module __init__).
    w1 = jax.random.normal(k_w1, (1, HIDDEN), jnp.float32) * 0.5        # Linear(1, H).weight^T
    b1 = jax.random.normal(k_b1, (HIDDEN,), jnp.float32) * 0.1
    w2 = jax.random.normal(k_w2, (HIDDEN, HIDDEN), jnp.float32) * 0.05  # Linear(H, H).weight^T
    b2 = jax.random.normal(k_b2, (HIDDEN,), jnp.float32) * 0.1
    emb_table = jax.random.normal(k_emb, (VOCAB, HIDDEN), jnp.float32)  # Embedding(100, H).weight

    out = mlp_edge_encoder(edge_length, edge_type, w1, b1, w2, b2, emb_table,
                           hidden_dim=HIDDEN)
    out = jax.block_until_ready(out)

    ref = _reference(edge_length, edge_type, w1, b1, w2, b2, emb_table)
    assert out.shape == (E, HIDDEN)
    assert jnp.allclose(out, ref, atol=1e-4, rtol=1e-4), "mismatch vs reference"

    print("KERNEL_OK")
</pallas_src>

<mosaic_0001>
module attributes {stable_mosaic.version = 11 : i64} {
  func.func @_edge_encoder_kernel(%arg0: i32, %arg1: memref<256x1xf32, #tpu.memory_space<vmem>>, %arg2: memref<256x1xi32, #tpu.memory_space<vmem>>, %arg3: memref<1x128xf32, #tpu.memory_space<vmem>>, %arg4: memref<1x128xf32, #tpu.memory_space<vmem>>, %arg5: memref<128x128xf32, #tpu.memory_space<vmem>>, %arg6: memref<1x128xf32, #tpu.memory_space<vmem>>, %arg7: memref<128x128xf32, #tpu.memory_space<vmem>>, %arg8: memref<256x100xf32, #tpu.memory_space<vmem>>) attributes {dimension_semantics = [#tpu.dimension_semantics<parallel>], iteration_bounds = array<i64: 4>, scalar_prefetch = 0 : i64, scratch_operands = 0 : i64, tpu.core_type = #tpu.core_type<tc>, window_params = [{transform_indices = @transform_0, window_bounds = array<i64: 256, 1>}, {transform_indices = @transform_1, window_bounds = array<i64: 256, 1>}, {pipeline_mode = #tpu.pipeline_mode<synchronous>, transform_indices = @transform_2, window_bounds = array<i64: 1, 128>}, {pipeline_mode = #tpu.pipeline_mode<synchronous>, transform_indices = @transform_3, window_bounds = array<i64: 1, 128>}, {pipeline_mode = #tpu.pipeline_mode<synchronous>, transform_indices = @transform_4, window_bounds = array<i64: 128, 128>}, {pipeline_mode = #tpu.pipeline_mode<synchronous>, transform_indices = @transform_5, window_bounds = array<i64: 1, 128>}, {pipeline_mode = #tpu.pipeline_mode<synchronous>, transform_indices = @transform_6, window_bounds = array<i64: 128, 128>}, {transform_indices = @transform_7, window_bounds = array<i64: 256, 100>}]} {
    %c0 = arith.constant 0 : index
    %c0_0 = arith.constant 0 : index
    %0 = vector.load %arg1[%c0, %c0_0] : memref<256x1xf32, #tpu.memory_space<vmem>>, vector<256x1xf32>
    %c0_1 = arith.constant 0 : index
    %c0_2 = arith.constant 0 : index
    %1 = vector.load %arg2[%c0_1, %c0_2] : memref<256x1xi32, #tpu.memory_space<vmem>>, vector<256x1xi32>
    %c0_3 = arith.constant 0 : index
    %c0_4 = arith.constant 0 : index
    %2 = vector.load %arg3[%c0_3, %c0_4] : memref<1x128xf32, #tpu.memory_space<vmem>>, vector<1x128xf32>
    %3 = vector.broadcast %0 : vector<256x1xf32> to vector<256x128xf32>
    %4 = vector.broadcast %2 : vector<1x128xf32> to vector<256x128xf32>
    %5 = arith.mulf %3, %4 : vector<256x128xf32>
    %c0_5 = arith.constant 0 : index
    %c0_6 = arith.constant 0 : index
    %6 = vector.load %arg4[%c0_5, %c0_6] : memref<1x128xf32, #tpu.memory_space<vmem>>, vector<1x128xf32>
    %7 = vector.broadcast %6 : vector<1x128xf32> to vector<256x128xf32>
    %8 = arith.addf %5, %7 : vector<256x128xf32>
    %cst = arith.constant 0.000000e+00 : f32
    %9 = vector.broadcast %cst : f32 to vector<256x128xf32>
    %10 = arith.maximumf %8, %9 : vector<256x128xf32>
    %c0_7 = arith.constant 0 : index
    %c0_8 = arith.constant 0 : index
    %11 = vector.load %arg5[%c0_7, %c0_8] : memref<128x128xf32, #tpu.memory_space<vmem>>, vector<128x128xf32>
    %cst_9 = arith.constant dense<0.000000e+00> : vector<256x128xf32>
    %12 = tpu.matmul %10, %11, %cst_9 {dimension_numbers = #tpu.dot_dimension_numbers<[1], [0], [0], [1], [0, 0, 1, 1], [], []>, precision = #tpu.contract_precision<fp32>} : vector<256x128xf32>, vector<128x128xf32>, vector<256x128xf32> -> vector<256x128xf32>
    %c0_10 = arith.constant 0 : index
    %c0_11 = arith.constant 0 : index
    %13 = vector.load %arg6[%c0_10, %c0_11] : memref<1x128xf32, #tpu.memory_space<vmem>>, vector<1x128xf32>
    %14 = vector.broadcast %13 : vector<1x128xf32> to vector<256x128xf32>
    %15 = arith.addf %12, %14 : vector<256x128xf32>
    %16 = tpu.iota {dimensions = array<i32: 1>} : vector<256x128xi32>
    %17 = vector.broadcast %1 : vector<256x1xi32> to vector<256x128xi32>
    %18 = arith.cmpi eq, %16, %17 : vector<256x128xi32>
    %19 = arith.extui %18 : vector<256x128xi1> to vector<256x128xi32>
    %20 = arith.sitofp %19 : vector<256x128xi32> to vector<256x128xf32>
    %c0_12 = arith.constant 0 : index
    %c0_13 = arith.constant 0 : index
    %21 = vector.load %arg7[%c0_12, %c0_13] : memref<128x128xf32, #tpu.memory_space<vmem>>, vector<128x128xf32>
    %cst_14 = arith.constant dense<0.000000e+00> : vector<256x128xf32>
    %22 = tpu.matmul %20, %21, %cst_14 {dimension_numbers = #tpu.dot_dimension_numbers<[1], [0], [0], [1], [0, 0, 1, 1], [], []>, precision = #tpu.contract_precision<fp32>} : vector<256x128xf32>, vector<128x128xf32>, vector<256x128xf32> -> vector<256x128xf32>
    %23 = arith.mulf %15, %22 : vector<256x128xf32>
    %24 = vector.extract_strided_slice %23 {offsets = [0, 0], sizes = [256, 100], strides = [1, 1]} : vector<256x128xf32> to vector<256x100xf32>
    %c0_15 = arith.constant 0 : index
    %c0_16 = arith.constant 0 : index
    %25 = vector.load %arg8[%c0_15, %c0_16] : memref<256x100xf32, #tpu.memory_space<vmem>>, vector<256x100xf32>
    tpu.vector_store %arg8[%c0_15, %c0_16], %24 {strides = array<i32>} : memref<256x100xf32, #tpu.memory_space<vmem>>, vector<256x100xf32>,
    return
  }
  func.func @transform_0(%arg0: i32) -> (i32, i32) {
    %c0_i32 = arith.constant 0 : i32
    %c0_i32_0 = arith.constant 0 : i32
    return %arg0, %c0_i32 : i32, i32
  }
  func.func @transform_1(%arg0: i32) -> (i32, i32) {
    %c0_i32 = arith.constant 0 : i32
    %c0_i32_0 = arith.constant 0 : i32
    return %arg0, %c0_i32 : i32, i32
  }
  func.func @transform_2(%arg0: i32) -> (i32, i32) {
    %c0_i32 = arith.constant 0 : i32
    %c0_i32_0 = arith.constant 0 : i32
    %c0_i32_1 = arith.constant 0 : i32
    return %c0_i32, %c0_i32_0 : i32, i32
  }
  func.func @transform_3(%arg0: i32) -> (i32, i32) {
    %c0_i32 = arith.constant 0 : i32
    %c0_i32_0 = arith.constant 0 : i32
    %c0_i32_1 = arith.constant 0 : i32
    return %c0_i32, %c0_i32_0 : i32, i32
  }
  func.func @transform_4(%arg0: i32) -> (i32, i32) {
    %c0_i32 = arith.constant 0 : i32
    %c0_i32_0 = arith.constant 0 : i32
    %c0_i32_1 = arith.constant 0 : i32
    return %c0_i32, %c0_i32_0 : i32, i32
  }
  func.func @transform_5(%arg0: i32) -> (i32, i32) {
    %c0_i32 = arith.constant 0 : i32
    %c0_i32_0 = arith.constant 0 : i32
    %c0_i32_1 = arith.constant 0 : i32
    return %c0_i32, %c0_i32_0 : i32, i32
  }
  func.func @transform_6(%arg0: i32) -> (i32, i32) {
    %c0_i32 = arith.constant 0 : i32
    %c0_i32_0 = arith.constant 0 : i32
    %c0_i32_1 = arith.constant 0 : i32
    return %c0_i32, %c0_i32_0 : i32, i32
  }
  func.func @transform_7(%arg0: i32) -> (i32, i32) {
    %c0_i32 = arith.constant 0 : i32
    %c0_i32_0 = arith.constant 0 : i32
    return %arg0, %c0_i32 : i32, i32
  }
}

</mosaic_0001>

<bundles_post_ra>
// kernel: mlp_edge_encoder.1
= control target key start
LH: loop header
LB: loop body
LE: loop exit
PB: predicated region body
PF: predicated region fallthrough
CT: control target
= control target key end

     0   :  { %s7931_s24 = smov 0   ;;  %s7933_s25 = smov 0   ;;  %s10665_s0 = inlined_call_operand.vmem [shape: f32[1000,1], index: 0, kind: input, shape index: {}]   ;;  %s10666_s1 = inlined_call_operand.vmem [shape: s32[1000,1], index: 1, kind: input, shape index: {}]   ;;  %s10667_s2 = inlined_call_operand.vmem [shape: f32[1,128], index: 2, kind: input, shape index: {}]   ;;  %s10668_s3 = inlined_call_operand.vmem [shape: f32[1,128], index: 3, kind: input, shape index: {}]   ;;  %s10669_s4 = inlined_call_operand.vmem [shape: f32[128,128], index: 4, kind: input, shape index: {}]   ;;  %s10670_s5 = inlined_call_operand.vmem [shape: f32[1,128], index: 5, kind: input, shape index: {}]   ;;  %s10671_s6 = inlined_call_operand.vmem [shape: f32[128,128], index: 6, kind: input, shape index: {}]   ;;  %s10672_s7 = inlined_call_operand.vmem [shape: f32[1000,100], index: 7, kind: output, shape index: {}]  }
   0x1   :  { %s7935_s26 = smov 0  }
   0x2 LB: > { %s7944_s27 = sadd.s32 4294967295, %s7854_s26   ;;  %s7946_s28 = sadd.s32 1, %s7854_s26   ;;  %s7854_s26 = sphi %s7935_s26, %s11761_s26   ;;  %s7850_s25 = sphi %s7933_s25, %s11760_s25   ;;  %s7846_s24 = sphi %s7931_s24, %s11759_s24  }
   0x3   : > { %s178_s29 = ssub.s32 %s7854_s26, %s7946_s28  ;;  %s181_s30 = sadd.s32 1, %s7850_s25 }
   0x4   : > { %p179_p0 = scmp.eq.s32.totalorder %s178_s29, 0  ;;  %p191_p1 = scmp.ne.s32.totalorder %s7850_s25, %s7846_s24 }
   0x5   : > { %p192_p2 = scmp.eq.s32.totalorder %s7944_s27, 3  ;;  %p5276_p3 = scmp.ge.s32.totalorder %s7854_s26, 1 }
   0x6   : > { %s7954_s8 = scalar_select %p179_p0, %s7850_s25, %s181_s30  }
   0x7   : > { %p7956_p4 = por %p192_p2, %p191_p1  ;;  %p265_p5 = scmp.lt.s32.totalorder %s7854_s26, 5 }
   0x9   : > { %p266_p6 = pnand %p5276_p3, %p265_p5 }
   0xb   : > { %269 = sbr.rel (%p266_p6) target bundleno = 883 (0x373), region = 48 }
  0x12   : > { %s7961_s10 = sshll.u32 %s7944_s27, 5  ;;  %v7966_v0 = vld [vmem:[%s10669_s4] sm:$0xff]  ;;  %v7971_v1 = vld [vmem:[%s10669_s4 + $0x8] sm:$0xff]  ;;  %v7888_v3 = vmov 0   ;;  %v7990_v8 = vld [vmem:[%s10669_s4 + $0x10] sm:$0xff]  ;;  %s306_s14 = sand.u32 1, %s7846_s24  }
  0x13   : > { %v7976_v2 = vld [vmem:[%s10671_s6] sm:$0xff]  ;;  %7797 = vset.pattern.permute.xlu1 %v7888_v3  ;;  %7796 = vset.pattern.permute.xlu0 %v7888_v3  ;;  %p314_p7 = scmp.lt.s32.totalorder %s7961_s10, 124  ;;  %v700_v4 = vand.u32 4294901760, %v7966_v0  ;;  %v703_v5 = vand.u32 4294901760, %v7971_v1  ;;  %v7984_v6 = vld [vmem:[%s10671_s6 + $0x8] sm:$0xff]  ;;  %v7996_v10 = vld [vmem:[%s10669_s4 + $0x18] sm:$0xff] }
  0x14   : > { %v2884_v7 = vand.u32 4294901760, %v7976_v2  ;;  %v2887_v9 = vand.u32 4294901760, %v7984_v6  ;;  %v706_v11 = vand.u32 4294901760, %v7990_v8  ;;  %v8002_v12 = vld [vmem:[%s10671_s6 + $0x10] sm:$0xff]  ;;  %v8007_v13 = vld [vmem:[%s10671_s6 + $0x18] sm:$0xff]  ;;  %v10702_v15 = vand.u32 4294901760, %v7996_v10 }
  0x15   : > { %s8010_s11 = scalar_select %p314_p7, %s7961_s10, 124  ;;  %v8016_v14 = vpack.c.bf16 %v703_v5, %v700_v4  ;;  %v10698_v16 = vand.u32 4294901760, %v8002_v12  ;;  %v10697_v17 = vand.u32 4294901760, %v8007_v13  ;;  %v8024_v18 = vld [vmem:[%s10669_s4 + $0x20] sm:$0xff]  ;;  %v8029_v19 = vld [vmem:[%s10669_s4 + $0x28] sm:$0xff]  ;;  %v8068_v29 = vld [vmem:[%s10669_s4 + $0x30] sm:$0xff] }
  0x16   : > { %v8035_v20 = vpack.c.bf16 %v2887_v9, %v2884_v7  ;;  %v10688_v21 = vand.u32 4294901760, %v8024_v18  ;;  %v10687_v22 = vand.u32 4294901760, %v8029_v19  ;;  %v8042_v23 = vld [vmem:[%s10671_s6 + $0x20] sm:$0xff]  ;;  %v8047_v24 = vld [vmem:[%s10671_s6 + $0x28] sm:$0xff]  ;;  %v8055_v25 = vpack.c.bf16 %v10702_v15, %v706_v11  ;;  %v8080_v30 = vld [vmem:[%s10669_s4 + $0x38] sm:$0xff]  ;;  %s5277_s17 = sshll.u32 %s306_s14, 8 }
  0x17   : > { %11136 = vst [vmem:[#allocation3_spill] sm:$0xff] %v8016_v14  ;;  %s5279_s20 = sshll.u32 %s8010_s11, 3  ;;  %6970 = vmatprep.subr.bf16.mxu0 %v8016_v14  ;;  %v8061_v26 = vpack.c.bf16 %v10697_v17, %v10698_v16  ;;  %v10686_v27 = vand.u32 4294901760, %v8042_v23  ;;  %v10685_v28 = vand.u32 4294901760, %v8047_v24  ;;  %v8085_v31 = vld [vmem:[%s10671_s6 + $0x30] sm:$0xff]  ;;  %v8090_v32 = vld [vmem:[%s10671_s6 + $0x38] sm:$0xff] }
  0x18   : > { %11137 = vst [vmem:[#allocation4_spill] sm:$0xff] %v8035_v20  ;;  %11138 = vst [vmem:[#allocation5_spill] sm:$0xff] %v8055_v25  ;;  %s8073_s29 = scalar_lea.vmem %s10665_s0, %s5279_s20  ;;  %6972 = vmatpush3.bf16.msra.mxu0 %v8016_v14  ;;  %7162 = vmatprep.subr.bf16.mxu1 %v8035_v20  ;;  %v8100_v35 = vpack.c.bf16 %v10687_v22, %v10688_v21  ;;  %v10680_v36 = vand.u32 4294901760, %v8068_v29  ;;  %v10679_v37 = vand.u32 4294901760, %v8080_v30  ;;  %v10678_v41 = vand.u32 4294901760, %v8085_v31  ;;  %s8118_s18 = scalar_lea.vmem %s10666_s1, %s5279_s20  ;;  %v8155_v55 = vld [vmem:[%s10669_s4 + $0x40] sm:$0xff] }
  0x19   : > { %11139 = vst [vmem:[#allocation6_spill] sm:$0xff] %v8061_v26  ;;  %v344_v33 = vld [vmem:[%s8073_s29 + $0x10] sm:$0xff]  ;;  %v342_v34 = vld [vmem:[%s8073_s29] sm:$0xff]  ;;  %7164 = vmatpush3.bf16.msra.mxu1 %v8035_v20  ;;  %6974 = vmatprep.subr.bf16.mxu0 %v8055_v25  ;;  %v345_v38 = vld [vmem:[%s8073_s29 + $0x18] sm:$0xff]  ;;  %v8111_v40 = vpack.c.bf16 %v10685_v28, %v10686_v27  ;;  %v10677_v42 = vand.u32 4294901760, %v8090_v32  ;;  %v10674_v57 = vand.u32 4294901760, %v8155_v55 }
  0x1a   : > { %11140 = vst [vmem:[#allocation7_spill] sm:$0xff] %v8100_v35  ;;  %419 = vperm.xlu1 %7797, %v344_v33   ;;  %409 = vperm.xlu0 %7796, %v342_v34   ;;  %v343_v39 = vld [vmem:[%s8073_s29 + $0x8] sm:$0xff]  ;;  %v8127_v43 = vpack.c.bf16 %v10679_v37, %v10680_v36  ;;  %v374_v44 = vld [vmem:[%s8118_s18] sm:$0xff]  ;;  %v376_v49 = vld [vmem:[%s8118_s18 + $0x10] sm:$0xff]  ;;  %s10431_s24 = scalar_lea.vmem [#allocation2], %s5277_s17   ;;  %s4930_s19 = ssub.s32 (%p7956_p4), 125, %s7961_s10 }
  0x1b   : > { %7166 = vmatprep.subr.bf16.mxu1 %v8061_v26  ;;  %11141 = vst [vmem:[#allocation8_spill] sm:$0xff] %v8111_v40  ;;  %v346_v45 = vld [vmem:[%s8073_s29 + $0x20] sm:$0xff]  ;;  %v8136_v46 = vpack.c.bf16 %v10677_v42, %v10678_v41  ;;  %v375_v47 = vld [vmem:[%s8118_s18 + $0x8] sm:$0xff]  ;;  %v348_v50 = vld [vmem:[%s8073_s29 + $0x30] sm:$0xff]  ;;  %s5430_s20 = sshll.u32 (%p7956_p4), %s7944_s27, 8  ;;  %p4931_p8 = scmp.lt.s32.totalorder (%p7956_p4), %s4930_s19, 32 }
  0x1c   : > { %6976 = vmatpush3.bf16.msra.mxu0 %v8055_v25  ;;  %11142 = vst [vmem:[#allocation9_spill] sm:$0xff] %v8127_v43  ;;  %v347_v48 = vld [vmem:[%s8073_s29 + $0x28] sm:$0xff]  ;;  %v377_v51 = vld [vmem:[%s8118_s18 + $0x18] sm:$0xff]  ;;  %v378_v53 = vld [vmem:[%s8118_s18 + $0x20] sm:$0xff] }
  0x1d   : > { %7168 = vmatpush3.bf16.msra.mxu1 %v8061_v26  ;;  %6978 = vmatprep.subr.bf16.mxu0 %v8100_v35  ;;  %11143 = vst [vmem:[#allocation10_spill] sm:$0xff] %v8136_v46  ;;  %v349_v52 = vld [vmem:[%s8073_s29 + $0x38] sm:$0xff]  ;;  %v350_v54 = vld [vmem:[%s8073_s29 + $0x40] sm:$0xff]  ;;  %v8160_v56 = vld [vmem:[%s10669_s4 + $0x48] sm:$0xff] }
  0x1e   : > { %424 = vperm.xlu1 %7797, %v345_v38   ;;  %414 = vperm.xlu0 %7796, %v343_v39   ;;  %v10673_v58 = vand.u32 4294901760, %v8160_v56  ;;  %v8167_v59 = vld [vmem:[%s10671_s6 + $0x40] sm:$0xff]  ;;  %v8172_v60 = vld [vmem:[%s10671_s6 + $0x48] sm:$0xff]  ;;  %v8177_v61 = vld [vmem:[%s10669_s4 + $0x50] sm:$0xff] }
  0x1f   : > { %7170 = vmatprep.subr.bf16.mxu1 %v8111_v40  ;;  %v10676_v62 = vand.u32 4294901760, %v8167_v59  ;;  %v10675_v63 = vand.u32 4294901760, %v8172_v60  ;;  %v8184_v3 = vld [vmem:[%s10669_s4 + $0x58] sm:$0xff]  ;;  %v10682_v33 = vand.u32 4294901760, %v8177_v61  ;;  %v8190_v34 = vld [vmem:[%s10671_s6 + $0x50] sm:$0xff]  ;;  %v390_v17 = vld [vmem:[%s8118_s18 + $0x80] sm:$0xff] }
  0x20   : > { %6980 = vmatpush3.bf16.msra.mxu0 %v8100_v35  ;;  %v8195_v38 = vld [vmem:[%s10671_s6 + $0x58] sm:$0xff]  ;;  %v8201_v39 = vpack.c.bf16 %v10673_v58, %v10674_v57  ;;  %v8232_v57 = vld [vmem:[%s10671_s6 + $0x68] sm:$0xff]  ;;  %v380_v27 = vld [vmem:[%s8118_s18 + $0x30] sm:$0xff]  ;;  %v11198_v26 = vand.u32 4294901760, %v8177_v61 }
  0x21   : > { %7172 = vmatpush3.bf16.msra.mxu1 %v8111_v40  ;;  %6982 = vmatprep.subr.bf16.mxu0 %v8127_v43  ;;  %v10691_v36 = vand.u32 4294901760, %v8232_v57  ;;  %v352_v22 = vld [vmem:[%s8073_s29 + $0x50] sm:$0xff]  ;;  %v363_v16 = vld [vmem:[%s8073_s29 + $0xa8] sm:$0xff] }
  0x22   : > { %2676 = vperm.xlu1 %7797, %v374_v44   ;;  %429 = vperm.xlu0 %7796, %v346_v45   ;;  %11144 = vst [vmem:[#allocation11_spill] sm:$0xff] %v8201_v39  ;;  %v10681_v44 = vand.u32 4294901760, %v8184_v3  ;;  %v10684_v45 = vand.u32 4294901760, %v8190_v34 }
  0x23   : > { %7174 = vmatprep.subr.bf16.mxu1 %v8136_v46 }
  0x24   : > { %6984 = vmatpush3.bf16.msra.mxu0 %v8127_v43  ;;  %v8251_v42 = vpack.c.bf16 %v10681_v44, %v10682_v33  ;;  %v8266_v44 = vld [vmem:[%s10671_s6 + $0x70] sm:$0xff]  ;;  %v8271_v33 = vld [vmem:[%s10671_s6 + $0x78] sm:$0xff] }
  0x25   : > { %7176 = vmatpush3.bf16.msra.mxu1 %v8136_v46  ;;  %6986 = vmatprep.subr.bf16.mxu0 %v8201_v39 }
  0x26   : > { %2679 = vperm.xlu1 %7797, %v375_v47   ;;  %434 = vperm.xlu0 %7796, %v347_v48   ;;  %v10683_v47 = vand.u32 4294901760, %v8195_v38  ;;  %v8209_v48 = vld [vmem:[%s10669_s4 + $0x60] sm:$0xff]  ;;  %11146 = vst [vmem:[#allocation13_spill] sm:$0xff] %v8251_v42 }
  0x28   : > { %v8257_v41 = vpack.c.bf16 %v10683_v47, %v10684_v45  ;;  %6988 = vmatpush3.bf16.msra.mxu0 %v8201_v39  ;;  %v373_v39 = vld [vmem:[%s8073_s29 + $0xf8] sm:$0xff] }
  0x29   : > { %6990 = vmatprep.subr.bf16.mxu0 %v8251_v42 }
  0x2a   : > { %2682 = vperm.xlu1 %7797, %v376_v49   ;;  %439 = vperm.xlu0 %7796, %v348_v50   ;;  %v8214_v49 = vld [vmem:[%s10669_s4 + $0x68] sm:$0xff]  ;;  %v8219_v50 = vld [vmem:[%s10671_s6 + $0x60] sm:$0xff]  ;;  %11147 = vst [vmem:[#allocation14_spill] sm:$0xff] %v8257_v41 }
  0x2b   : > { %v10689_v58 = vand.u32 4294901760, %v8214_v49  ;;  %v10692_v37 = vand.u32 4294901760, %v8219_v50 }
  0x2c   : > { %6992 = vmatpush3.bf16.msra.mxu0 %v8251_v42  ;;  %v11188_v42 = vand.u32 4294901760, %v8155_v55 }
  0x2d   : > { %v8290_v21 = vpack.c.bf16 %v10691_v36, %v10692_v37  ;;  %v353_v36 = vld [vmem:[%s8073_s29 + $0x58] sm:$0xff] }
  0x2e   : > { %2685 = vperm.xlu1 %7797, %v377_v51   ;;  %444 = vperm.xlu0 %7796, %v349_v52   ;;  %v8225_v51 = vpack.c.bf16 %v10675_v63, %v10676_v62  ;;  %v10690_v52 = vand.u32 4294901760, %v8209_v48  ;;  %v379_v63 = vld [vmem:[%s8118_s18 + $0x28] sm:$0xff] }
  0x2f   : > { %v351_v62 = vld [vmem:[%s8073_s29 + $0x48] sm:$0xff]  ;;  %11149 = vst [vmem:[#allocation16_spill] sm:$0xff] %v8290_v21 }
  0x30   : > { %11145 = vst [vmem:[#allocation12_spill] sm:$0xff] %v8225_v51  ;;  %7178 = vmatprep.subr.bf16.mxu1 %v8225_v51  ;;  %v8279_v47 = vpack.c.bf16 %v10689_v58, %v10690_v52  ;;  %v10694_v58 = vand.u32 4294901760, %v8266_v44  ;;  %v10693_v52 = vand.u32 4294901760, %v8271_v33 }
  0x31   : > { %7180 = vmatpush3.bf16.msra.mxu1 %v8225_v51 }
  0x32   : > { %2688 = vperm.xlu1 %7797, %v378_v53   ;;  %449 = vperm.xlu0 %7796, %v350_v54   ;;  %v8237_v53 = vld [vmem:[%s10669_s4 + $0x70] sm:$0xff]  ;;  %v8242_v54 = vld [vmem:[%s10669_s4 + $0x78] sm:$0xff]  ;;  %11148 = vst [vmem:[#allocation15_spill] sm:$0xff] %v8279_v47  ;;  %v8310_v37 = vpack.c.bf16 %v10693_v52, %v10694_v58  ;;  %v383_v52 = vld [vmem:[%s8118_s18 + $0x48] sm:$0xff] }
  0x33   : > { %v10696_v45 = vand.u32 4294901760, %v8237_v53  ;;  %v10695_v28 = vand.u32 4294901760, %v8242_v54  ;;  %7182 = vmatprep.subr.bf16.mxu1 %v8257_v41  ;;  %6994 = vmatprep.subr.bf16.mxu0 %v8279_v47  ;;  %v355_v58 = vld [vmem:[%s8073_s29 + $0x68] sm:$0xff] }
  0x34   : > { %11151 = vst [vmem:[#allocation18_spill] sm:$0xff] %v8310_v37  ;;  %6996 = vmatpush3.bf16.msra.mxu0 %v8279_v47 }
  0x35   : > { %7184 = vmatpush3.bf16.msra.mxu1 %v8257_v41 }
  0x36   : > { %2691 = vperm.xlu1 %7797, %v379_v63   ;;  %454 = vperm.xlu0 %7796, %v351_v62   ;;  %v8301_v62 = vpack.c.bf16 %v10695_v28, %v10696_v45  ;;  %v381_v63 = vld [vmem:[%s8118_s18 + $0x38] sm:$0xff] }
  0x37   : > { %7186 = vmatprep.subr.bf16.mxu1 %v8290_v21  ;;  %v385_v28 = vld [vmem:[%s8118_s18 + $0x58] sm:$0xff] }
  0x38   : > { %11150 = vst [vmem:[#allocation17_spill] sm:$0xff] %v8301_v62  ;;  %6998 = vmatprep.subr.bf16.mxu0 %v8301_v62  ;;  %v357_v45 = vld [vmem:[%s8073_s29 + $0x78] sm:$0xff] }
  0x39   : > { %7188 = vmatpush3.bf16.msra.mxu1 %v8290_v21  ;;  %7000 = vmatpush3.bf16.msra.mxu0 %v8301_v62 }
  0x3a   : > { %2694 = vperm.xlu1 %7797, %v380_v27   ;;  %459 = vperm.xlu0 %7796, %v352_v22   ;;  %v382_v22 = vld [vmem:[%s8118_s18 + $0x40] sm:$0xff] }
  0x3b   : > { %v354_v27 = vld [vmem:[%s8073_s29 + $0x60] sm:$0xff]  ;;  %7190 = vmatprep.subr.bf16.mxu1 %v8310_v37 }
  0x3d   : > { %7192 = vmatpush3.bf16.msra.mxu1 %v8310_v37 }
  0x3e   : > { %2697 = vperm.xlu1 %7797, %v381_v63   ;;  %464 = vperm.xlu0 %7796, %v353_v36   ;;  %v384_v36 = vld [vmem:[%s8118_s18 + $0x50] sm:$0xff] }
  0x3f   : > { %v356_v63 = vld [vmem:[%s8073_s29 + $0x70] sm:$0xff] }
  0x42   : > { %2700 = vperm.xlu1 %7797, %v382_v22   ;;  %469 = vperm.xlu0 %7796, %v354_v27   ;;  %v386_v22 = vld [vmem:[%s8118_s18 + $0x60] sm:$0xff] }
  0x43   : > { %v358_v27 = vld [vmem:[%s8073_s29 + $0x80] sm:$0xff] }
  0x46   : > { %2703 = vperm.xlu1 %7797, %v383_v52   ;;  %474 = vperm.xlu0 %7796, %v355_v58   ;;  %v387_v52 = vld [vmem:[%s8118_s18 + $0x68] sm:$0xff] }
  0x47   : > { %v359_v58 = vld [vmem:[%s8073_s29 + $0x88] sm:$0xff] }
  0x4a   : > { %2706 = vperm.xlu1 %7797, %v384_v36   ;;  %479 = vperm.xlu0 %7796, %v356_v63   ;;  %v388_v36 = vld [vmem:[%s8118_s18 + $0x70] sm:$0xff] }
  0x4b   : > { %v360_v63 = vld [vmem:[%s8073_s29 + $0x90] sm:$0xff] }
  0x4e   : > { %2709 = vperm.xlu1 %7797, %v385_v28   ;;  %484 = vperm.xlu0 %7796, %v357_v45   ;;  %v389_v28 = vld [vmem:[%s8118_s18 + $0x78] sm:$0xff] }
  0x4f   : > { %v361_v45 = vld [vmem:[%s8073_s29 + $0x98] sm:$0xff] }
  0x52   : > { %2712 = vperm.xlu1 %7797, %v386_v22   ;;  %489 = vperm.xlu0 %7796, %v358_v27   ;;  %v362_v22 = vld [vmem:[%s8073_s29 + $0xa0] sm:$0xff]  ;;  %v391_v27 = vld [vmem:[%s8118_s18 + $0x88] sm:$0xff] }
  0x56   : > { %2715 = vperm.xlu1 %7797, %v387_v52   ;;  %494 = vperm.xlu0 %7796, %v359_v58   ;;  %v392_v52 = vld [vmem:[%s8118_s18 + $0x90] sm:$0xff] }
  0x57   : > { %v364_v58 = vld [vmem:[%s8073_s29 + $0xb0] sm:$0xff] }
  0x5a   : > { %2718 = vperm.xlu1 %7797, %v388_v36   ;;  %499 = vperm.xlu0 %7796, %v360_v63   ;;  %v8343_v36 = vsub.f32 %v7966_v0, %v700_v4  ;;  %v393_v63 = vld [vmem:[%s8118_s18 + $0x98] sm:$0xff] }
  0x5c   : > { %11152 = vst [vmem:[#allocation19_spill] sm:$0xff] %v8343_v36  ;;  %v10700_v0 = vand.u32 4294901760, %v8343_v36 }
  0x5e   : > { %2721 = vperm.xlu1 %7797, %v389_v28   ;;  %504 = vperm.xlu0 %7796, %v361_v45   ;;  %v365_v28 = vld [vmem:[%s8073_s29 + $0xb8] sm:$0xff]  ;;  %v8360_v45 = vsub.f32 %v7984_v6, %v2887_v9  ;;  %v366_v9 = vld [vmem:[%s8073_s29 + $0xc0] sm:$0xff] }
  0x60   : > { %11155 = vst [vmem:[#allocation22_spill] sm:$0xff] %v8360_v45 }
  0x62   : > { %2724 = vperm.xlu1 %7797, %v390_v17   ;;  %509 = vperm.xlu0 %7796, %v362_v22   ;;  %v8348_v17 = vsub.f32 %v7971_v1, %v703_v5  ;;  %v10703_v1 = vand.u32 4294901760, %v8360_v45 }
  0x64   : > { %11153 = vst [vmem:[#allocation20_spill] sm:$0xff] %v8348_v17  ;;  %v10699_v4 = vand.u32 4294901760, %v8348_v17 }
  0x66   : > { %2727 = vperm.xlu1 %7797, %v391_v27   ;;  %514 = vperm.xlu0 %7796, %v363_v16   ;;  %v8353_v16 = vsub.f32 %v7976_v2, %v2884_v7  ;;  %v1104_v2 = vsub.f32 %v8343_v36, %v10700_v0  ;;  %v1111_v5 = vsub.f32 %v8348_v17, %v10699_v4  ;;  %v394_v7 = vld [vmem:[%s8118_s18 + $0xa0] sm:$0xff]  ;;  %v395_v0 = vld [vmem:[%s8118_s18 + $0xa8] sm:$0xff] }
  0x67   : > { %v3295_v27 = vsub.f32 %v8360_v45, %v10703_v1 }
  0x68   : > { %11154 = vst [vmem:[#allocation21_spill] sm:$0xff] %v8353_v16  ;;  %v10701_v22 = vand.u32 4294901760, %v8353_v16 }
  0x6a   : > { %2730 = vperm.xlu1 %7797, %v392_v52   ;;  %519 = vperm.xlu0 %7796, %v364_v58   ;;  %v3288_v6 = vsub.f32 %v8353_v16, %v10701_v22  ;;  %v1105_v52 = vand.u32 4294901760, %v1104_v2  ;;  %v1112_v58 = vand.u32 4294901760, %v1111_v5  ;;  %v367_v22 = vld [vmem:[%s8073_s29 + $0xc8] sm:$0xff]  ;;  %v396_v2 = vld [vmem:[%s8118_s18 + $0xb0] sm:$0xff] }
  0x6b   : > { %v368_v5 = vld [vmem:[%s8073_s29 + $0xd0] sm:$0xff] }
  0x6c   : > { %v8380_v4 = vpack.c.bf16 %v1112_v58, %v1105_v52  ;;  %v370_v52 = vld [vmem:[%s8073_s29 + $0xe0] sm:$0xff]  ;;  %v11158_v58 = vand.u32 4294901760, %v8002_v12 }
  0x6e   : > { %2733 = vperm.xlu1 %7797, %v393_v63   ;;  %524 = vperm.xlu0 %7796, %v365_v28   ;;  %v3289_v63 = vand.u32 4294901760, %v3288_v6  ;;  %v3296_v28 = vand.u32 4294901760, %v3295_v27  ;;  %v397_v6 = vld [vmem:[%s8118_s18 + $0xb8] sm:$0xff]  ;;  %v398_v27 = vld [vmem:[%s8118_s18 + $0xc0] sm:$0xff] }
  0x6f   : > { %7002 = vmatprep.subr.bf16.mxu0 %v8380_v4 }
  0x70   : > { %v8384_v15 = vpack.c.bf16 %v3296_v28, %v3289_v63  ;;  %v8407_v63 = vsub.f32 %v8002_v12, %v11158_v58  ;;  %v11160_v28 = vand.u32 4294901760, %v8007_v13 }
  0x72   : > { %2736 = vperm.xlu1 %7797, %v394_v7   ;;  %529 = vperm.xlu0 %7796, %v366_v9   ;;  %v369_v7 = vld [vmem:[%s8073_s29 + $0xd8] sm:$0xff]  ;;  %v8395_v9 = vsub.f32 %v7990_v8, %v706_v11  ;;  %11159 = vst [vmem:[#allocation24_spill] sm:$0xff] %v8407_v63  ;;  %v11162_v8 = vand.u32 4294901760, %v8024_v18 }
  0x73   : > { %7194 = vmatprep.subr.bf16.mxu1 %v8384_v15 }
  0x74   : > { %v8417_v11 = vsub.f32 %v8024_v18, %v11162_v8  ;;  %v10704_v18 = vand.u32 4294901760, %v8395_v9  ;;  %v371_v8 = vld [vmem:[%s8073_s29 + $0xe8] sm:$0xff] }
  0x76   : > { %2739 = vperm.xlu1 %7797, %v395_v0   ;;  %534 = vperm.xlu0 %7796, %v367_v22   ;;  %v11156_v0 = vand.u32 4294901760, %v7996_v10  ;;  %11163 = vst [vmem:[#allocation26_spill] sm:$0xff] %v8417_v11 }
  0x78   : > { %v8402_v22 = vsub.f32 %v7996_v10, %v11156_v0  ;;  %v11170_v0 = vand.u32 4294901760, %v8068_v29 }
  0x7a   : > { %2742 = vperm.xlu1 %7797, %v396_v2   ;;  %539 = vperm.xlu0 %7796, %v368_v5   ;;  %11157 = vst [vmem:[#allocation23_spill] sm:$0xff] %v8402_v22  ;;  %v8412_v2 = vsub.f32 %v8007_v13, %v11160_v28  ;;  %v11164_v5 = vand.u32 4294901760, %v8029_v19  ;;  %v8438_v58 = vsub.f32 %v8068_v29, %v11170_v0 }
  0x7b   : > { %v1118_v29 = vsub.f32 %v8395_v9, %v10704_v18 }
  0x7c   : > { %11161 = vst [vmem:[#allocation25_spill] sm:$0xff] %v8412_v2  ;;  %v8422_v10 = vsub.f32 %v8029_v19, %v11164_v5  ;;  %11171 = vst [vmem:[#allocation30_spill] sm:$0xff] %v8438_v58  ;;  %v11172_v19 = vand.u32 4294901760, %v8080_v30  ;;  %v2673_v5 = vlaneseq }
  0x7d   : > { %v1119_v41 = vand.u32 4294901760, %v1118_v29 }
  0x7e   : > { %2745 = vperm.xlu1 %7797, %v397_v6   ;;  %544 = vperm.xlu0 %7796, %v369_v7   ;;  %11165 = vst [vmem:[#allocation27_spill] sm:$0xff] %v8422_v10  ;;  %v11166_v6 = vand.u32 4294901760, %v8042_v23  ;;  %v11168_v7 = vand.u32 4294901760, %v8047_v24  ;;  %v8443_v28 = vsub.f32 %v8080_v30, %v11172_v19  ;;  %v8471_v0 = vand.u32 127, %v2673_v5 }
  0x7f   : > { %v11179_v19 = vand.u32 4294901760, %v8402_v22  ;;  %v11183_v5 = vand.u32 4294901760, %v8422_v10 }
  0x80   : > { %v8427_v12 = vsub.f32 %v8042_v23, %v11166_v6  ;;  %v8432_v13 = vsub.f32 %v8047_v24, %v11168_v7  ;;  %11173 = vst [vmem:[#allocation31_spill] sm:$0xff] %v8443_v28  ;;  %v399_v23 = vld [vmem:[%s8118_s18 + $0xc8] sm:$0xff]  ;;  %v11174_v7 = vand.u32 4294901760, %v8085_v31  ;;  %v11176_v24 = vand.u32 4294901760, %v8090_v32  ;;  %v372_v6 = vld [vmem:[%s8073_s29 + $0xf0] sm:$0xff]  ;;  %11178 = vst [vmem:[#allocation34_spill] sm:$0xff] %v8471_v0  ;;  %s10533_s29 = scalar_lea.vmem (%p7956_p4), %s10672_s7, %s5430_s20  }
  0x81   : > { %v1125_v1 = vsub.f32 %v8402_v22, %v11179_v19 }
  0x82   : > { %11167 = vst [vmem:[#allocation28_spill] sm:$0xff] %v8427_v12  ;;  %11169 = vst [vmem:[#allocation29_spill] sm:$0xff] %v8432_v13  ;;  %2748 = vperm.xlu1 %7797, %v398_v27   ;;  %549 = vperm.xlu0 %7796, %v370_v52   ;;  %v8455_v30 = vsub.f32 %v8085_v31, %v11174_v7  ;;  %v8463_v27 = vsub.f32 %v8090_v32, %v11176_v24  ;;  %v400_v7 = vld [vmem:[%s8118_s18 + $0xd0] sm:$0xff]  ;;  %v11180_v52 = vand.u32 4294901760, %v8407_v63 }
  0x83   : > { %v11182_v24 = vand.u32 4294901760, %v8417_v11  ;;  %v1139_v31 = vsub.f32 %v8422_v10, %v11183_v5  ;;  %v11184_v37 = vand.u32 4294901760, %v8427_v12  ;;  %v11187_v5 = vand.u32 4294901760, %v8443_v28 }
  0x84   : > { %11175 = vst [vmem:[#allocation32_spill] sm:$0xff] %v8455_v30  ;;  %11177 = vst [vmem:[#allocation33_spill] sm:$0xff] %v8463_v27  ;;  %v3302_v32 = vsub.f32 %v8407_v63, %v11180_v52  ;;  %v11185_v52 = vand.u32 4294901760, %v8432_v13 }
  0x85   : > { %v1132_v18 = vsub.f32 %v8417_v11, %v11182_v24  ;;  %v3316_v62 = vsub.f32 %v8427_v12, %v11184_v37  ;;  %v1153_v19 = vsub.f32 %v8443_v28, %v11187_v5  ;;  %v8505_v37 = vsub.f32 %v8155_v55, %v11188_v42 }
  0x86   : > { %2751 = vperm.xlu1 %7797, %v399_v23   ;;  %554 = vperm.xlu0 %7796, %v371_v8   ;;  %v11181_v23 = vand.u32 4294901760, %v8412_v2  ;;  %v3323_v21 = vsub.f32 %v8432_v13, %v11185_v52  ;;  %v11190_v52 = vand.u32 4294901760, %v8160_v56  ;;  %v1126_v24 = vand.u32 4294901760, %v1125_v1 }
  0x87   : > { %11189 = vst [vmem:[#allocation35_spill] sm:$0xff] %v8505_v37  ;;  %v11194_v5 = vand.u32 4294901760, %v8172_v60  ;;  %v1133_v46 = vand.u32 4294901760, %v1132_v18  ;;  %v3317_v40 = vand.u32 4294901760, %v3316_v62  ;;  %v403_v18 = vld [vmem:[%s8118_s18 + $0xe8] sm:$0xff] }
  0x88   : > { %v3309_v8 = vsub.f32 %v8412_v2, %v11181_v23  ;;  %v11186_v23 = vand.u32 4294901760, %v8438_v58  ;;  %v8510_v51 = vsub.f32 %v8160_v56, %v11190_v52  ;;  %v1140_v56 = vand.u32 4294901760, %v1139_v31  ;;  %v402_v31 = vld [vmem:[%s8118_s18 + $0xe0] sm:$0xff] }
  0x89   : > { %v8522_v42 = vsub.f32 %v8172_v60, %v11194_v5  ;;  %v11196_v52 = vand.u32 4294901760, %v8455_v30  ;;  %v3324_v60 = vand.u32 4294901760, %v3323_v21  ;;  %v8546_v21 = vpack.c.bf16 %v1126_v24, %v1119_v41 }
  0x8a   : > { %v1146_v47 = vsub.f32 %v8438_v58, %v11186_v23  ;;  %2754 = vperm.xlu1 %7797, %v400_v7   ;;  %559 = vperm.xlu0 %7796, %v372_v6   ;;  %11191 = vst [vmem:[#allocation36_spill] sm:$0xff] %v8510_v51  ;;  %v401_v23 = vld [vmem:[%s8118_s18 + $0xd8] sm:$0xff]  ;;  %v3303_v7 = vand.u32 4294901760, %v3302_v32  ;;  %v11192_v6 = vand.u32 4294901760, %v8167_v59  ;;  %v3310_v55 = vand.u32 4294901760, %v3309_v8 }
  0x8b   : > { %11195 = vst [vmem:[#allocation38_spill] sm:$0xff] %v8522_v42  ;;  %v3330_v1 = vsub.f32 %v8455_v30, %v11196_v52  ;;  %v11197_v32 = vand.u32 4294901760, %v8463_v27  ;;  %v1154_v8 = vand.u32 4294901760, %v1153_v19  ;;  %v8550_v62 = vpack.c.bf16 %v1140_v56, %v1133_v46  ;;  %v405_v56 = vld [vmem:[%s8118_s18 + $0xf8] sm:$0xff] }
  0x8c   : > { %v8517_v29 = vsub.f32 %v8167_v59, %v11192_v6  ;;  %v10733_v6 = vand.u32 4294901760, %v8510_v51  ;;  %v1147_v5 = vand.u32 4294901760, %v1146_v47  ;;  %v11200_v59 = vand.u32 4294901760, %v8184_v3 }
  0x8d   : > { %v3337_v43 = vsub.f32 %v8463_v27, %v11197_v32  ;;  %v8539_v32 = vsub.f32 %v8177_v61, %v11198_v26  ;;  %v8548_v47 = vpack.c.bf16 %v3310_v55, %v3303_v7  ;;  %v3331_v19 = vand.u32 4294901760, %v3330_v1  ;;  %v404_v1 = vld [vmem:[%s8118_s18 + $0xf0] sm:$0xff] }
  0x8e   : > { %11193 = vst [vmem:[#allocation37_spill] sm:$0xff] %v8517_v29  ;;  %2757 = vperm.xlu1 %7797, %v401_v23   ;;  %564 = vperm.xlu0 %7796, %v373_v39   ;;  %v10731_v35 = vand.u32 4294901760, %v8517_v29  ;;  %v8544_v39 = vsub.f32 %v8184_v3, %v11200_v59  ;;  %v11202_v52 = vand.u32 4294901760, %v8505_v37  ;;  %v1167_v61 = vsub.f32 %v8510_v51, %v10733_v6 }
  0x8f   : > { %11199 = vst [vmem:[#allocation39_spill] sm:$0xff] %v8539_v32  ;;  %v3338_v23 = vand.u32 4294901760, %v3337_v43  ;;  %v10732_v3 = vand.u32 4294901760, %v8539_v32  ;;  %v8559_v41 = vpack.c.bf16 %v3324_v60, %v3317_v40  ;;  %v11203_v46 = vand.u32 4294901760, %v8190_v34 }
  0x90   : > { %11201 = vst [vmem:[#allocation40_spill] sm:$0xff] %v8544_v39  ;;  %v1160_v26 = vsub.f32 %v8505_v37, %v11202_v52  ;;  %v10735_v24 = vand.u32 4294901760, %v8544_v39  ;;  %v11205_v7 = vand.u32 4294901760, %v8195_v38  ;;  %v8574_v59 = vpack.c.bf16 %v1154_v8, %v1147_v5 }
  0x91   : > { %v8565_v43 = vsub.f32 %v8190_v34, %v11203_v46  ;;  %v3344_v40 = vsub.f32 %v8517_v29, %v10731_v35  ;;  %v11207_v60 = vand.u32 4294901760, %v8522_v42  ;;  %v11208_v34 = vand.u32 4294901760, %v8209_v48 }
  0x92   : > { %2763 = vperm.xlu1 %7797, %v403_v18   ;;  %2760 = vperm.xlu0 %7796, %v402_v31   ;;  %v8570_v55 = vsub.f32 %v8195_v38, %v11205_v7  ;;  %v1174_v38 = vsub.f32 %v8539_v32, %v10732_v3  ;;  %v11210_v52 = vand.u32 4294901760, %v8214_v49  ;;  %v8597_v7 = vpack.c.bf16 %v3338_v23, %v3331_v19  ;;  %v8615_v23 = vld [vmem:[%s10667_s2] ss:$0 sm:$0xff] }
  0x93   : > { %11204 = vst [vmem:[#allocation41_spill] sm:$0xff] %v8565_v43  ;;  %v3351_v18 = vsub.f32 %v8522_v42, %v11207_v60  ;;  %v8585_v31 = vsub.f32 %v8209_v48, %v11208_v34  ;;  %v10734_v5 = vand.u32 4294901760, %v8565_v43  ;;  %v1161_v60 = vand.u32 4294901760, %v1160_v26 }
  0x94   : > { %11206 = vst [vmem:[#allocation42_spill] sm:$0xff] %v8570_v55  ;;  %v10736_v8 = vand.u32 4294901760, %v8570_v55  ;;  %v8595_v46 = vsub.f32 %v8214_v49, %v11210_v52  ;;  %v1168_v35 = vand.u32 4294901760, %v1167_v61  ;;  %v1181_v34 = vsub.f32 %v8544_v39, %v10735_v24 }
  0x95   : > { %11209 = vst [vmem:[#allocation43_spill] sm:$0xff] %v8585_v31  ;;  %v10737_v48 = vand.u32 4294901760, %v8585_v31  ;;  %v3358_v3 = vsub.f32 %v8565_v43, %v10734_v5  ;;  %v11212_v49 = vand.u32 4294901760, %v8219_v50  ;;  %v3345_v26 = vand.u32 4294901760, %v3344_v40 }
  0x96   : > { %11211 = vst [vmem:[#allocation44_spill] sm:$0xff] %v8595_v46  ;;  %2769 = vperm.xlu1 %7797, %v405_v56   ;;  %2766 = vperm.xlu0 %7796, %v404_v1   ;;  %v10748_v6 = vand.u32 4294901760, %v8595_v46  ;;  %v3365_v61 = vsub.f32 %v8570_v55, %v10736_v8  ;;  %v11214_v56 = vand.u32 4294901760, %v8232_v57  ;;  %v11216_v52 = vand.u32 4294901760, %v8237_v53  ;;  %v8637_v8 = vld [vmem:[%s10668_s3] ss:$0 sm:$0xff] }
  0x97   : > { %v8610_v19 = vsub.f32 %v8219_v50, %v11212_v49  ;;  %v3352_v49 = vand.u32 4294901760, %v3351_v18  ;;  %v1175_v5 = vand.u32 4294901760, %v1174_v38  ;;  %v1188_v40 = vsub.f32 %v8585_v31, %v10737_v48 }
  0x98   : > { %v8623_v1 = vsub.f32 %v8232_v57, %v11214_v56  ;;  %v8628_v50 = vsub.f32 %v8237_v53, %v11216_v52  ;;  %v1195_v53 = vsub.f32 %v8595_v46, %v10748_v6  ;;  %v11218_v52 = vand.u32 4294901760, %v8242_v54 }
  0x99   : > { %11213 = vst [vmem:[#allocation45_spill] sm:$0xff] %v8610_v19  ;;  %v420_v57 = vpop.permute.xlu1 %419  ;;  %v410_v56 = vpop.permute.xlu0 %409  ;;  %v1182_v20 = vand.u32 4294901760, %v1181_v34  ;;  %v3359_v14 = vand.u32 4294901760, %v3358_v3  ;;  %v3366_v13 = vand.u32 4294901760, %v3365_v61  ;;  %v11220_v12 = vand.u32 4294901760, %v8610_v19 }
  0x9a   : > { %11215 = vst [vmem:[#allocation46_spill] sm:$0xff] %v8623_v1  ;;  %11217 = vst [vmem:[#allocation47_spill] sm:$0xff] %v8628_v50  ;;  %v10757_v18 = vand.u32 4294901760, %v8623_v1  ;;  %v8647_v48 = vsub.f32 %v8242_v54, %v11218_v52  ;;  %v575_v24 = vmul.f32 %v8615_v23, %v420_v57  ;;  %v573_v25 = vmul.f32 %v8615_v23, %v410_v56 }
  0x9b   : > { %v3372_v6 = vsub.f32 %v8610_v19, %v11220_v12  ;;  %v8660_v57 = vpack.c.bf16 %v1168_v35, %v1161_v60  ;;  %v1189_v56 = vand.u32 4294901760, %v1188_v40  ;;  %v1196_v61 = vand.u32 4294901760, %v1195_v53 }
  0x9c   : > { %11219 = vst [vmem:[#allocation48_spill] sm:$0xff] %v8647_v48  ;;  %v3379_v38 = vsub.f32 %v8623_v1, %v10757_v18  ;;  %v614_v54 = vadd.f32 %v8637_v8, %v575_v24  ;;  %v612_v52 = vadd.f32 %v8637_v8, %v573_v25  ;;  %v11221_v12 = vand.u32 4294901760, %v8628_v50 }
  0x9d   : > { %v425_v34 = vpop.permute.xlu1 %424  ;;  %v415_v3 = vpop.permute.xlu0 %414  ;;  %v3373_v11 = vand.u32 4294901760, %v3372_v6  ;;  %v8669_v25 = vpack.c.bf16 %v3352_v49, %v3345_v26  ;;  %v8671_v35 = vpack.c.bf16 %v1182_v20, %v1175_v5  ;;  %v8673_v60 = vpack.c.bf16 %v3366_v13, %v3359_v14 }
  0x9e   : > { %v3380_v2 = vand.u32 4294901760, %v3379_v38  ;;  %v8665_v63 = vsub.f32 %v8628_v50, %v11221_v12  ;;  %v646_v18 = vmax.f32 %v614_v54, 0.0  ;;  %v644_v22 = vmax.f32 %v612_v52, 0.0 }
  0x9f   : > { %v576_v10 = vmul.f32 %v8615_v23, %v425_v34  ;;  %v574_v24 = vmul.f32 %v8615_v23, %v415_v3  ;;  %v11222_v6 = vand.u32 4294901760, %v8647_v48  ;;  %v8688_v20 = vpack.c.bf16 %v1196_v61, %v1189_v56 }
  0xa0   : > { %v8680_v53 = vand.u32 4294901760, %v646_v18  ;;  %v8682_v38 = vand.u32 4294901760, %v644_v22  ;;  %v8690_v14 = vpack.c.bf16 %v3380_v2, %v3373_v11  ;;  %v11226_v5 = vand.u32 4294901760, %v8266_v44 }
  0xa1   : > { %v8678_v40 = vsub.f32 %v8647_v48, %v11222_v6  ;;  %v615_v54 = vadd.f32 %v8637_v8, %v576_v10  ;;  %v613_v52 = vadd.f32 %v8637_v8, %v574_v24  ;;  %v8686_v34 = vpop.permute.xlu1 %2676  ;;  %v430_v26 = vpop.permute.xlu0 %429  ;;  %v10760_v24 = vmov 0.0  }
  0xa2   : > { %11223 = vst [vmem:[#allocation49_spill] sm:$0xff] %v8680_v53  ;;  %11224 = vst [vmem:[#allocation50_spill] sm:$0xff] %v8682_v38  ;;  %v8696_v49 = vsub.f32 %v8266_v44, %v11226_v5  ;;  %v8699_v3 = vsub.f32 %v646_v18, %v8680_v53  ;;  %vm2771_vm0 = vcmp.eq.s32.totalorder %v8471_v0, %v8686_v34  ;;  %v11236_v48 = vmov 0.0  }
  0xa3   : > { %11225 = vst [vmem:[#allocation51_spill] sm:$0xff] %v8686_v34  ;;  %v647_v10 = vmax.f32 %v615_v54, 0.0  ;;  %v645_v12 = vmax.f32 %v613_v52, 0.0  ;;  %v5285_v2 = vsel %vm2771_vm0, 1.0, %v10760_v24  ;;  %v577_v11 = vmul.f32 %v8615_v23, %v430_v26 }
  0xa4   : > { %11227 = vst [vmem:[#allocation52_spill] sm:$0xff] %v8696_v49  ;;  %11228 = vst [vmem:[#allocation53_spill] sm:$0xff] %v8699_v3  ;;  %v8709_v56 = vsub.f32 %v644_v22, %v8682_v38  ;;  %v8716_v6 = vsub.f32 %v5285_v2, %v5285_v2  ;;  %v8726_v44 = vpack.c.bf16 %v8348_v17, %v8343_v36 }
  0xa5   : > { %v8712_v18 = vand.u32 4294901760, %v647_v10  ;;  %v8714_v61 = vand.u32 4294901760, %v645_v12  ;;  %v616_v52 = vadd.f32 %v8637_v8, %v577_v11  ;;  %v8720_v5 = vpop.permute.xlu1 %2679  ;;  %v435_v13 = vpop.permute.xlu0 %434 }
  0xa6   : > { %11229 = vst [vmem:[#allocation54_spill] sm:$0xff] %v8709_v56  ;;  %11232 = vst [vmem:[#allocation57_spill] sm:$0xff] %v8716_v6  ;;  %v10776_v26 = vand.u32 4294901760, %v8709_v56  ;;  %vm2772_vm1 = vcmp.eq.s32.totalorder %v8471_v0, %v8720_v5  ;;  %v578_v11 = vmul.f32 %v8615_v23, %v435_v13  ;;  %v11238_v13 = vand.u32 4294901760, %v8699_v3 }
  0xa7   : > { %11230 = vst [vmem:[#allocation55_spill] sm:$0xff] %v8712_v18  ;;  %11231 = vst [vmem:[#allocation56_spill] sm:$0xff] %v8714_v61  ;;  %v8729_v24 = vsub.f32 %v647_v10, %v8712_v18  ;;  %v8732_v2 = vsub.f32 %v645_v12, %v8714_v61  ;;  %v648_v54 = vmax.f32 %v616_v52, 0.0  ;;  %v5286_v22 = vsel %vm2772_vm1, 1.0, %v11236_v48 }
  0xa8   : > { %11233 = vst [vmem:[#allocation58_spill] sm:$0xff] %v8720_v5  ;;  %v783_v17 = vsub.f32 %v8709_v56, %v10776_v26  ;;  %v10781_v10 = vand.u32 4294901760, %v8716_v6  ;;  %v8745_v36 = vsub.f32 %v5286_v22, %v5286_v22  ;;  %v617_v12 = vadd.f32 %v8637_v8, %v578_v11 }
  0xa9   : > { %11234 = vst [vmem:[#allocation59_spill] sm:$0xff] %v8729_v24  ;;  %11235 = vst [vmem:[#allocation60_spill] sm:$0xff] %v8732_v2  ;;  %v10784_v50 = vand.u32 4294901760, %v8732_v2  ;;  %v803_v52 = vsub.f32 %v8699_v3, %v11238_v13  ;;  %v8752_v18 = vand.u32 4294901760, %v648_v54  ;;  %v8754_v5 = vpop.permute.xlu1 %2682  ;;  %v440_v53 = vpop.permute.xlu0 %439 }
  0xaa   : > { %11237 = vst [vmem:[#allocation61_spill] sm:$0xff] %v8745_v36  ;;  %11240 = vst [vmem:[#allocation63_spill] sm:$0xff] %v8754_v5  ;;  %v784_v34 = vand.u32 4294901760, %v783_v17  ;;  %v2967_v26 = vsub.f32 %v8716_v6, %v10781_v10  ;;  %v649_v56 = vmax.f32 %v617_v12, 0.0  ;;  %vm2773_vm2 = vcmp.eq.s32.totalorder %v8471_v0, %v8754_v5 }
  0xab   : > { %11239 = vst [vmem:[#allocation62_spill] sm:$0xff] %v8752_v18  ;;  %v579_v11 = vmul.f32 %v8615_v23, %v440_v53  ;;  %v793_v13 = vsub.f32 %v8732_v2, %v10784_v50  ;;  %v8767_v3 = vsub.f32 %v648_v54, %v8752_v18  ;;  %v5287_v17 = vsel %vm2773_vm2, 1.0, %v11236_v48 }
  0xac   : > { %6041 = vmatprep.mubr.f32.mxu0 %v784_v34  ;;  %v2968_v10 = vand.u32 4294901760, %v2967_v26  ;;  %v11242_v12 = vand.u32 4294901760, %v8271_v33  ;;  %v8778_v53 = vand.u32 4294901760, %v649_v56  ;;  %v8780_v6 = vsub.f32 %v5287_v17, %v5287_v17 }
  0xad   : > { %11241 = vst [vmem:[#allocation64_spill] sm:$0xff] %v8767_v3  ;;  %v618_v50 = vadd.f32 %v8637_v8, %v579_v11  ;;  %v794_v54 = vand.u32 4294901760, %v793_v13  ;;  %v8783_v2 = vpop.permute.xlu1 %2685  ;;  %v445_v18 = vpop.permute.xlu0 %444  ;;  %v804_v5 = vand.u32 4294901760, %v803_v52  ;;  %v10795_v34 = vand.u32 4294901760, %v8745_v36 }
  0xae   : > { %v8776_v22 = vsub.f32 %v8271_v33, %v11242_v12  ;;  %11244 = vst [vmem:[#allocation66_spill] sm:$0xff] %v8778_v53  ;;  %11245 = vst [vmem:[#allocation67_spill] sm:$0xff] %v8780_v6  ;;  %6521 = vmatprep.mubr.f32.mxu1 %v2968_v10  ;;  %v11247_v26 = vand.u32 4294901760, %v8729_v24  ;;  %v10798_v33 = vand.u32 4294901760, %v8767_v3  ;;  %v8791_v12 = vsub.f32 %v649_v56, %v8778_v53 }
  0xaf   : > { %11246 = vst [vmem:[#allocation68_spill] sm:$0xff] %v8783_v2  ;;  %v650_v17 = vmax.f32 %v618_v50, 0.0  ;;  %vm2774_vm3 = vcmp.eq.s32.totalorder %v8471_v0, %v8783_v2  ;;  %v580_v10 = vmul.f32 %v8615_v23, %v445_v18  ;;  %6042 = vmatmul.mubr.f32.vlgmr.msra.gmra.mrb[0].mxu0 %v794_v54  ;;  %v2977_v11 = vsub.f32 %v8745_v36, %v10795_v34 }
  0xb0   : > { %11243 = vst [vmem:[#allocation65_spill] sm:$0xff] %v8776_v22  ;;  %v813_v61 = vsub.f32 %v8729_v24, %v11247_v26  ;;  %11248 = vst [vmem:[#allocation69_spill] sm:$0xff] %v8791_v12  ;;  %v5288_v52 = vsel %vm2774_vm3, 1.0, %v11236_v48  ;;  %6044 = vmatprep.mubr.f32.mxu0 %v804_v5  ;;  %v823_v50 = vsub.f32 %v8767_v3, %v10798_v33  ;;  %7004 = vmatpush3.bf16.msra.mxu0 %v8380_v4 }
  0xb1   : > { %v8807_v56 = vand.u32 4294901760, %v650_v17  ;;  %v8809_v18 = vsub.f32 %v5288_v52, %v5288_v52  ;;  %v619_v54 = vadd.f32 %v8637_v8, %v580_v10  ;;  %v10801_v26 = vand.u32 4294901760, %v8780_v6  ;;  %7006 = vmatprep.subr.bf16.mxu0 %v8546_v21  ;;  %v8814_v24 = vpop.permute.xlu1 %2688 }
  0xb2   : > { %v814_v13 = vand.u32 4294901760, %v813_v61  ;;  %v2978_v5 = vand.u32 4294901760, %v2977_v11  ;;  %11251 = vst [vmem:[#allocation72_spill] sm:$0xff] %v8814_v24  ;;  %v450_v61 = vpop.permute.xlu0 %449  ;;  %v824_v34 = vand.u32 4294901760, %v823_v50  ;;  %v10802_v36 = vand.u32 4294901760, %v8791_v12 }
  0xb3   : > { %11249 = vst [vmem:[#allocation70_spill] sm:$0xff] %v8807_v56  ;;  %11250 = vst [vmem:[#allocation71_spill] sm:$0xff] %v8809_v18  ;;  %v11252_v33 = vand.u32 4294901760, %v8665_v63  ;;  %v11253_v4 = vand.u32 4294901760, %v8678_v40  ;;  %v8824_v52 = vsub.f32 %v650_v17, %v8807_v56  ;;  %v651_v10 = vmax.f32 %v619_v54, 0.0 }
  0xb4   : > { %vm2775_vm4 = vcmp.eq.s32.totalorder %v8471_v0, %v8814_v24  ;;  %v581_v11 = vmul.f32 %v8615_v23, %v450_v61  ;;  %6045 = vmatmul.mubr.f32.gmra.mrb[2].mxu0 %v814_v13  ;;  %6522 = vmatmul.mubr.f32.vlgmr.msra.gmra.mrb[0].mxu1 %v2978_v5  ;;  %v2987_v40 = vsub.f32 %v8780_v6, %v10801_v26  ;;  %v10803_v17 = vand.u32 4294901760, %v8809_v18 }
  0xb5   : > { %v8821_v3 = vpack.c.bf16 %v11253_v4, %v11252_v33  ;;  %11254 = vst [vmem:[#allocation73_spill] sm:$0xff] %v8824_v52  ;;  %v5289_v63 = vsel %vm2775_vm4, 1.0, %v11236_v48  ;;  %6047 = vmatprep.mubr.f32.mxu0 %v824_v34  ;;  %v833_v33 = vsub.f32 %v8791_v12, %v10802_v36  ;;  %v8840_v50 = vand.u32 4294901760, %v651_v10  ;;  %7196 = vmatpush3.bf16.msra.mxu1 %v8384_v15  ;;  %v8848_v61 = vpop.permute.xlu1 %2691 }
  0xb6   : > { %v8842_v13 = vsub.f32 %v5289_v63, %v5289_v63  ;;  %v620_v54 = vadd.f32 %v8637_v8, %v581_v11  ;;  %v10806_v5 = vand.u32 4294901760, %v8824_v52  ;;  %7008 = vmatpush3.bf16.msra.mxu0 %v8546_v21  ;;  %v2988_v34 = vand.u32 4294901760, %v2987_v40  ;;  %11257 = vst [vmem:[#allocation76_spill] sm:$0xff] %v8848_v61  ;;  %v455_v4 = vpop.permute.xlu0 %454  ;;  %7198 = vmatprep.subr.bf16.mxu1 %v8548_v47 }
  0xb7   : > { %11255 = vst [vmem:[#allocation74_spill] sm:$0xff] %v8840_v50  ;;  %v834_v26 = vand.u32 4294901760, %v833_v33  ;;  %v2997_v36 = vsub.f32 %v8809_v18, %v10803_v17  ;;  %7010 = vmatprep.subr.bf16.mxu0 %v8550_v62  ;;  %v8857_v63 = vsub.f32 %v651_v10, %v8840_v50  ;;  %vm2776_vm5 = vcmp.eq.s32.totalorder %v8471_v0, %v8848_v61 }
  0xb8   : > { %11256 = vst [vmem:[#allocation75_spill] sm:$0xff] %v8842_v13  ;;  %v652_v15 = vmax.f32 %v620_v54, 0.0  ;;  %v582_v21 = vmul.f32 %v8615_v23, %v455_v4  ;;  %6524 = vmatprep.mubr.f32.mxu1 %v2988_v34  ;;  %v5290_v40 = vsel %vm2776_vm5, 1.0, %v11236_v48  ;;  %v843_v17 = vsub.f32 %v8824_v52, %v10806_v5 }
  0xb9   : > { %11258 = vst [vmem:[#allocation77_spill] sm:$0xff] %v8857_v63  ;;  %6048 = vmatmul.mubr.f32.gmra.mrb[4].mxu0 %v834_v26  ;;  %v2998_v33 = vand.u32 4294901760, %v2997_v36  ;;  %v10807_v10 = vand.u32 4294901760, %v8842_v13  ;;  %v8872_v11 = vsub.f32 %v5290_v40, %v5290_v40  ;;  %7200 = vmatpush3.bf16.msra.mxu1 %v8548_v47  ;;  %v8878_v36 = vpop.permute.xlu1 %2694  ;;  %v11262_v40 = vand.u32 4294901760, %v8696_v49 }
  0xba   : > { %v8870_v54 = vand.u32 4294901760, %v652_v15  ;;  %v621_v4 = vadd.f32 %v8637_v8, %v582_v21  ;;  %7012 = vmatpush3.bf16.msra.mxu0 %v8550_v62  ;;  %11261 = vst [vmem:[#allocation80_spill] sm:$0xff] %v8878_v36  ;;  %v460_v26 = vpop.permute.xlu0 %459  ;;  %v844_v12 = vand.u32 4294901760, %v843_v17  ;;  %7202 = vmatprep.subr.bf16.mxu1 %v8559_v41  ;;  %v11263_v34 = vand.u32 4294901760, %v8776_v22 }
  0xbb   : > { %11260 = vst [vmem:[#allocation79_spill] sm:$0xff] %v8872_v11  ;;  %6525 = vmatmul.mubr.f32.gmra.mrb[2].mxu1 %v2998_v33  ;;  %v3007_v5 = vsub.f32 %v8842_v13, %v10807_v10  ;;  %v3386_v21 = vsub.f32 %v8696_v49, %v11262_v40  ;;  %vm2777_vm6 = vcmp.eq.s32.totalorder %v8471_v0, %v8878_v36 }
  0xbc   : > { %11259 = vst [vmem:[#allocation78_spill] sm:$0xff] %v8870_v54  ;;  %v3393_v47 = vsub.f32 %v8776_v22, %v11263_v34  ;;  %v8891_v62 = vsub.f32 %v652_v15, %v8870_v54  ;;  %v653_v33 = vmax.f32 %v621_v4, 0.0  ;;  %v583_v17 = vmul.f32 %v8615_v23, %v460_v26  ;;  %7014 = vmatprep.subr.bf16.mxu0 %v8574_v59 }
  0xbd   : > { %v5291_v40 = vsel %vm2777_vm6, 1.0, %v11236_v48  ;;  %6050 = vmatprep.mubr.f32.mxu0 %v844_v12  ;;  %v3008_v10 = vand.u32 4294901760, %v3007_v5  ;;  %v11265_v34 = vand.u32 4294901760, %v8857_v63  ;;  %v10818_v4 = vand.u32 4294901760, %v8872_v11  ;;  %7204 = vmatpush3.bf16.msra.mxu1 %v8559_v41  ;;  %v8913_v12 = vpop.permute.xlu1 %2697 }
  0xbe   : > { %11264 = vst [vmem:[#allocation81_spill] sm:$0xff] %v8891_v62  ;;  %v8905_v52 = vand.u32 4294901760, %v653_v33  ;;  %v8907_v13 = vsub.f32 %v5291_v40, %v5291_v40  ;;  %v622_v26 = vadd.f32 %v8637_v8, %v583_v17  ;;  %7016 = vmatpush3.bf16.msra.mxu0 %v8574_v59  ;;  %11268 = vst [vmem:[#allocation84_spill] sm:$0xff] %v8913_v12  ;;  %v465_v5 = vpop.permute.xlu0 %464  ;;  %7206 = vmatprep.subr.bf16.mxu1 %v8597_v7 }
  0xbf   : > { %v853_v15 = vsub.f32 %v8857_v63, %v11265_v34  ;;  %6527 = vmatprep.mubr.f32.mxu1 %v3008_v10  ;;  %v3017_v34 = vsub.f32 %v8872_v11, %v10818_v4  ;;  %v3387_v40 = vand.u32 4294901760, %v3386_v21  ;;  %v3394_v63 = vand.u32 4294901760, %v3393_v47  ;;  %7018 = vmatprep.subr.bf16.mxu0 %v8660_v57 }
  0xc0   : > { %11266 = vst [vmem:[#allocation82_spill] sm:$0xff] %v8905_v52  ;;  %11267 = vst [vmem:[#allocation83_spill] sm:$0xff] %v8907_v13  ;;  %v8920_v17 = vsub.f32 %v653_v33, %v8905_v52  ;;  %v654_v18 = vmax.f32 %v622_v26, 0.0  ;;  %vm2778_vm7 = vcmp.eq.s32.totalorder %v8471_v0, %v8913_v12  ;;  %v584_v41 = vmul.f32 %v8615_v23, %v465_v5 }
  0xc1   : > { %v854_v6 = vand.u32 4294901760, %v853_v15  ;;  %v5292_v59 = vsel %vm2778_vm7, 1.0, %v11236_v48  ;;  %v3018_v10 = vand.u32 4294901760, %v3017_v34  ;;  %v11270_v21 = vand.u32 4294901760, %v8891_v62  ;;  %7208 = vmatpush3.bf16.msra.mxu1 %v8597_v7 }
  0xc2   : > { %11269 = vst [vmem:[#allocation85_spill] sm:$0xff] %v8920_v17  ;;  %v10821_v33 = vand.u32 4294901760, %v8907_v13  ;;  %v8934_v15 = vand.u32 4294901760, %v654_v18  ;;  %v8936_v26 = vsub.f32 %v5292_v59, %v5292_v59  ;;  %v623_v5 = vadd.f32 %v8637_v8, %v584_v41  ;;  %7020 = vmatpush3.bf16.msra.mxu0 %v8660_v57  ;;  %v470_v34 = vpop.permute.xlu0 %469  ;;  %7210 = vmatprep.subr.bf16.mxu1 %v8669_v25 }
  0xc3   : > { %6051 = vmatmul.mubr.f32.gmra.mrb[6].mxu0 %v854_v6  ;;  %v863_v47 = vsub.f32 %v8891_v62, %v11270_v21  ;;  %v10824_v4 = vand.u32 4294901760, %v8920_v17  ;;  %6528 = vmatmul.mubr.f32.gmra.mrb[4].mxu1 %v3018_v10  ;;  %v8942_v6 = vpop.permute.xlu1 %2700  ;;  %v8948_v59 = vpack.c.bf16 %v3394_v63, %v3387_v40  ;;  %v8952_v41 = vpack.c.bf16 %v8443_v28, %v8438_v58 }
  0xc4   : > { %11271 = vst [vmem:[#allocation86_spill] sm:$0xff] %v8934_v15  ;;  %11272 = vst [vmem:[#allocation87_spill] sm:$0xff] %v8936_v26  ;;  %v3027_v21 = vsub.f32 %v8907_v13, %v10821_v33  ;;  %v8955_v7 = vsub.f32 %v654_v18, %v8934_v15  ;;  %v655_v57 = vmax.f32 %v623_v5, 0.0  ;;  %vm2779_vm8 = vcmp.eq.s32.totalorder %v8471_v0, %v8942_v6 }
  0xc5   : > { %11273 = vst [vmem:[#allocation88_spill] sm:$0xff] %v8942_v6  ;;  %v864_v11 = vand.u32 4294901760, %v863_v47  ;;  %v585_v10 = vmul.f32 %v8615_v23, %v470_v34  ;;  %7022 = vmatprep.subr.bf16.mxu0 %v8671_v35  ;;  %v5293_v63 = vsel %vm2779_vm8, 1.0, %v11236_v48  ;;  %v873_v18 = vsub.f32 %v8920_v17, %v10824_v4  ;;  %7212 = vmatpush3.bf16.msra.mxu1 %v8669_v25 }
  0xc6   : > { %11274 = vst [vmem:[#allocation89_spill] sm:$0xff] %v8955_v7  ;;  %v3028_v40 = vand.u32 4294901760, %v3027_v21  ;;  %v10825_v47 = vand.u32 4294901760, %v8936_v26  ;;  %v8969_v5 = vand.u32 4294901760, %v655_v57  ;;  %v8971_v33 = vsub.f32 %v5293_v63, %v5293_v63  ;;  %7024 = vmatpush3.bf16.msra.mxu0 %v8671_v35  ;;  %v475_v21 = vpop.permute.xlu0 %474  ;;  %7214 = vmatprep.subr.bf16.mxu1 %v8673_v60 }
  0xc7   : > { %6053 = vmatprep.mubr.f32.mxu0 %v864_v11  ;;  %v624_v34 = vadd.f32 %v8637_v8, %v585_v10  ;;  %v10830_v28 = vand.u32 4294901760, %v8955_v7  ;;  %v8977_v11 = vpop.permute.xlu1 %2703  ;;  %v874_v58 = vand.u32 4294901760, %v873_v18  ;;  %v8985_v10 = vpack.c.bf16 %v8463_v27, %v8455_v30  ;;  %7026 = vmatprep.subr.bf16.mxu0 %v8688_v20 }
  0xc8   : > { %11275 = vst [vmem:[#allocation90_spill] sm:$0xff] %v8969_v5  ;;  %11276 = vst [vmem:[#allocation91_spill] sm:$0xff] %v8971_v33  ;;  %6530 = vmatprep.mubr.f32.mxu1 %v3028_v40  ;;  %v3037_v4 = vsub.f32 %v8936_v26, %v10825_v47  ;;  %v8989_v25 = vpack.c.bf16 %v8510_v51, %v8505_v37  ;;  %v8992_v35 = vsub.f32 %v655_v57, %v8969_v5 }
  0xc9   : > { %11277 = vst [vmem:[#allocation92_spill] sm:$0xff] %v8977_v11  ;;  %v656_v63 = vmax.f32 %v624_v34, 0.0  ;;  %vm2780_vm9 = vcmp.eq.s32.totalorder %v8471_v0, %v8977_v11  ;;  %v586_v40 = vmul.f32 %v8615_v23, %v475_v21  ;;  %6054 = vmatmul.mubr.f32.gmra.mrb[8].mxu0 %v874_v58  ;;  %v883_v57 = vsub.f32 %v8955_v7, %v10830_v28 }
  0xca   : > { %11278 = vst [vmem:[#allocation93_spill] sm:$0xff] %v8992_v35  ;;  %v5294_v18 = vsel %vm2780_vm9, 1.0, %v11236_v48  ;;  %v3038_v47 = vand.u32 4294901760, %v3037_v4  ;;  %v10831_v34 = vand.u32 4294901760, %v8971_v33  ;;  %v10836_v27 = vand.u32 4294901760, %v8992_v35  ;;  %7216 = vmatpush3.bf16.msra.mxu1 %v8673_v60  ;;  %7028 = vmatpush3.bf16.msra.mxu0 %v8688_v20  ;;  %v480_v4 = vpop.permute.xlu0 %479 }
  0xcb   : > { %v9006_v51 = vand.u32 4294901760, %v656_v63  ;;  %v9008_v37 = vsub.f32 %v5294_v18, %v5294_v18  ;;  %v625_v21 = vadd.f32 %v8637_v8, %v586_v40  ;;  %v9014_v58 = vpop.permute.xlu1 %2706  ;;  %v884_v30 = vand.u32 4294901760, %v883_v57  ;;  %7218 = vmatprep.subr.bf16.mxu1 %v8690_v14  ;;  %7030 = vmatprep.subr.bf16.mxu0 %v8821_v3 }
  0xcc   : > { %6531 = vmatmul.mubr.f32.gmra.mrb[6].mxu1 %v3038_v47  ;;  %11281 = vst [vmem:[#allocation96_spill] sm:$0xff] %v9014_v58  ;;  %v3047_v28 = vsub.f32 %v8971_v33, %v10831_v34  ;;  %v9022_v40 = vpack.c.bf16 %v8360_v45, %v8353_v16  ;;  %v9026_v60 = vpack.c.bf16 %v8522_v42, %v8517_v29 }
  0xcd   : > { %11279 = vst [vmem:[#allocation94_spill] sm:$0xff] %v9006_v51  ;;  %11280 = vst [vmem:[#allocation95_spill] sm:$0xff] %v9008_v37  ;;  %v9029_v20 = vsub.f32 %v656_v63, %v9006_v51  ;;  %v657_v47 = vmax.f32 %v625_v21, 0.0  ;;  %vm2781_vm10 = vcmp.eq.s32.totalorder %v8471_v0, %v9014_v58  ;;  %v587_v18 = vmul.f32 %v8615_v23, %v480_v4 }
  0xce   : > { %v5295_v57 = vsel %vm2781_vm10, 1.0, %v11236_v48  ;;  %6056 = vmatprep.mubr.f32.mxu0 %v884_v30  ;;  %v3048_v34 = vand.u32 4294901760, %v3047_v28  ;;  %v893_v63 = vsub.f32 %v8992_v35, %v10836_v27  ;;  %v10837_v21 = vand.u32 4294901760, %v9008_v37  ;;  %7220 = vmatpush3.bf16.msra.mxu1 %v8690_v14  ;;  %v485_v30 = vpop.permute.xlu0 %484 }
  0xcf   : > { %11282 = vst [vmem:[#allocation97_spill] sm:$0xff] %v9029_v20  ;;  %v9043_v42 = vand.u32 4294901760, %v657_v47  ;;  %v9045_v29 = vsub.f32 %v5295_v57, %v5295_v57  ;;  %v626_v4 = vadd.f32 %v8637_v8, %v587_v18  ;;  %v10842_v45 = vand.u32 4294901760, %v9029_v20  ;;  %7032 = vmatpush3.bf16.msra.mxu0 %v8821_v3  ;;  %v9051_v28 = vpop.permute.xlu1 %2709  ;;  %7222 = vmatprep.subr.bf16.mxu1 %v8948_v59 }
  0xd0   : > { %6533 = vmatprep.mubr.f32.mxu1 %v3048_v34  ;;  %11285 = vst [vmem:[#allocation100_spill] sm:$0xff] %v9051_v28  ;;  %v894_v16 = vand.u32 4294901760, %v893_v63  ;;  %v3057_v27 = vsub.f32 %v9008_v37, %v10837_v21  ;;  %v9059_v18 = vpack.c.bf16 %v8544_v39, %v8539_v32  ;;  %v9063_v14 = vpack.c.bf16 %v8570_v55, %v8565_v43 }
  0xd1   : > { %11283 = vst [vmem:[#allocation98_spill] sm:$0xff] %v9043_v42  ;;  %11284 = vst [vmem:[#allocation99_spill] sm:$0xff] %v9045_v29  ;;  %v9066_v3 = vsub.f32 %v657_v47, %v9043_v42  ;;  %v658_v34 = vmax.f32 %v626_v4, 0.0  ;;  %vm11046_vm11 = vcmp.eq.s32.totalorder %v8471_v0, %v9051_v28  ;;  %v588_v57 = vmul.f32 %v8615_v23, %v485_v30  ;;  %v11447_v28 = vld [vmem:[#allocation89_spill] sm:$0xff] }
  0xd2   : > { %7034 = vmatprep.subr.bf16.mxu0 %v8726_v44  ;;  %v5296_v63 = vsel %vm11046_vm11, 1.0, %v11236_v48  ;;  %6057 = vmatmul.mubr.f32.gmra.mrb[10].mxu0 %v894_v16  ;;  %v3058_v21 = vand.u32 4294901760, %v3057_v27  ;;  %v903_v47 = vsub.f32 %v9029_v20, %v10842_v45  ;;  %v10845_v4 = vand.u32 4294901760, %v9045_v29  ;;  %v490_v16 = vpop.permute.xlu0 %489  ;;  %v11451_v11 = vld [vmem:[#allocation93_spill] sm:$0xff] }
  0xd3   : > { %11286 = vst [vmem:[#allocation101_spill] sm:$0xff] %v9066_v3  ;;  %v9080_v55 = vand.u32 4294901760, %v658_v34  ;;  %v9082_v43 = vsub.f32 %v5296_v63, %v5296_v63  ;;  %v627_v30 = vadd.f32 %v8637_v8, %v588_v57  ;;  %v10852_v39 = vand.u32 4294901760, %v9066_v3  ;;  %7224 = vmatpush3.bf16.msra.mxu1 %v8948_v59  ;;  %v9087_v32 = vpop.permute.xlu1 %2712 }
  0xd4   : > { %6534 = vmatmul.mubr.f32.gmra.mrb[8].mxu1 %v3058_v21  ;;  %11289 = vst [vmem:[#allocation104_spill] sm:$0xff] %v9087_v32  ;;  %v904_v27 = vand.u32 4294901760, %v903_v47  ;;  %v3067_v45 = vsub.f32 %v9045_v29, %v10845_v4  ;;  %7226 = vmatprep.subr.bf16.mxu1 %v9022_v40  ;;  %vm11045_vm12 = vcmp.eq.s32.totalorder %v8471_v0, %v9087_v32  ;;  %v11445_v32 = vld [vmem:[#allocation85_spill] sm:$0xff]  ;;  %v11449_v58 = vld [vmem:[#allocation95_spill] sm:$0xff] }
  0xd5   : > { %11287 = vst [vmem:[#allocation102_spill] sm:$0xff] %v9080_v55  ;;  %11288 = vst [vmem:[#allocation103_spill] sm:$0xff] %v9082_v43  ;;  %v9094_v63 = vsub.f32 %v658_v34, %v9080_v55  ;;  %v659_v20 = vmax.f32 %v627_v30, 0.0  ;;  %v589_v59 = vmul.f32 %v8615_v23, %v490_v16  ;;  %v5297_v21 = vsel %vm11045_vm12, 1.0, %v11236_v48 }
  0xd6   : > { %6059 = vmatprep.mubr.f32.mxu0 %v904_v27  ;;  %v3068_v57 = vand.u32 4294901760, %v3067_v45  ;;  %v913_v47 = vsub.f32 %v9066_v3, %v10852_v39  ;;  %v10853_v34 = vand.u32 4294901760, %v9082_v43  ;;  %v9109_v30 = vsub.f32 %v5297_v21, %v5297_v21  ;;  %v495_v37 = vpop.permute.xlu0 %494  ;;  %v11453_v6 = vld [vmem:[#allocation97_spill] sm:$0xff] }
  0xd7   : > { %11290 = vst [vmem:[#allocation105_spill] sm:$0xff] %v9094_v63  ;;  %v9107_v4 = vand.u32 4294901760, %v659_v20  ;;  %v628_v29 = vadd.f32 %v8637_v8, %v589_v59  ;;  %v9113_v35 = vpop.permute.xlu1 %2715  ;;  %v9120_v39 = vpack.c.bf16 %v8595_v46, %v8585_v31  ;;  %v9124_v21 = vpack.c.bf16 %v8623_v1, %v8610_v19 }
  0xd8   : > { %11292 = vst [vmem:[#allocation107_spill] sm:$0xff] %v9109_v30  ;;  %6536 = vmatprep.mubr.f32.mxu1 %v3068_v57  ;;  %11293 = vst [vmem:[#allocation108_spill] sm:$0xff] %v9113_v35  ;;  %v914_v27 = vand.u32 4294901760, %v913_v47  ;;  %v3077_v45 = vsub.f32 %v9082_v43, %v10853_v34  ;;  %vm11047_vm13 = vcmp.eq.s32.totalorder %v8471_v0, %v9113_v35  ;;  %v11295_v46 = vand.u32 4294901760, %v9094_v63  ;;  %v11443_v35 = vld [vmem:[#allocation87_spill] sm:$0xff] }
  0xd9   : > { %11291 = vst [vmem:[#allocation106_spill] sm:$0xff] %v9107_v4  ;;  %v9127_v59 = vsub.f32 %v659_v20, %v9107_v4  ;;  %v660_v57 = vmax.f32 %v628_v29, 0.0  ;;  %v590_v47 = vmul.f32 %v8615_v23, %v495_v37  ;;  %v5298_v34 = vsel %vm11047_vm13, 1.0, %v11236_v48 }
  0xda   : > { %6060 = vmatmul.mubr.f32.gmra.mrb[12].mxu0 %v914_v27  ;;  %v3078_v16 = vand.u32 4294901760, %v3077_v45  ;;  %v923_v1 = vsub.f32 %v9094_v63, %v11295_v46  ;;  %v10864_v20 = vand.u32 4294901760, %v9109_v30  ;;  %v9142_v29 = vsub.f32 %v5298_v34, %v5298_v34  ;;  %v500_v43 = vpop.permute.xlu0 %499 }
  0xdb   : > { %11294 = vst [vmem:[#allocation109_spill] sm:$0xff] %v9127_v59  ;;  %v9140_v19 = vand.u32 4294901760, %v660_v57  ;;  %v629_v31 = vadd.f32 %v8637_v8, %v590_v47  ;;  %v10871_v37 = vand.u32 4294901760, %v9127_v59  ;;  %v9146_v3 = vpop.permute.xlu1 %2718  ;;  %v591_v34 = vmul.f32 %v8615_v23, %v500_v43 }
  0xdc   : > { %11297 = vst [vmem:[#allocation111_spill] sm:$0xff] %v9142_v29  ;;  %6537 = vmatmul.mubr.f32.gmra.mrb[10].mxu1 %v3078_v16  ;;  %11298 = vst [vmem:[#allocation112_spill] sm:$0xff] %v9146_v3  ;;  %v924_v27 = vand.u32 4294901760, %v923_v1  ;;  %v3087_v45 = vsub.f32 %v9109_v30, %v10864_v20  ;;  %vm11015_vm14 = vcmp.eq.s32.totalorder %v8471_v0, %v9146_v3  ;;  %v11455_v12 = vld [vmem:[#allocation103_spill] sm:$0xff] }
  0xdd   : > { %11296 = vst [vmem:[#allocation110_spill] sm:$0xff] %v9140_v19  ;;  %v9152_v46 = vsub.f32 %v660_v57, %v9140_v19  ;;  %v661_v63 = vmax.f32 %v629_v31, 0.0  ;;  %v5299_v16 = vsel %vm11015_vm14, 1.0, %v11236_v48  ;;  %v933_v47 = vsub.f32 %v9127_v59, %v10871_v37 }
  0xde   : > { %6062 = vmatprep.mubr.f32.mxu0 %v924_v27  ;;  %v3088_v1 = vand.u32 4294901760, %v3087_v45  ;;  %v10874_v57 = vand.u32 4294901760, %v9142_v29  ;;  %v9167_v31 = vsub.f32 %v5299_v16, %v5299_v16  ;;  %v630_v30 = vadd.f32 %v8637_v8, %v591_v34  ;;  %v505_v33 = vpop.permute.xlu0 %504  ;;  %v11459_v36 = vld [vmem:[#allocation105_spill] sm:$0xff] }
  0xdf   : > { %11299 = vst [vmem:[#allocation113_spill] sm:$0xff] %v9152_v46  ;;  %v9165_v20 = vand.u32 4294901760, %v661_v63  ;;  %v10881_v43 = vand.u32 4294901760, %v9152_v46  ;;  %v9171_v7 = vpop.permute.xlu1 %2721  ;;  %v934_v27 = vand.u32 4294901760, %v933_v47  ;;  %v9178_v37 = vpack.c.bf16 %v8776_v22, %v8696_v49 }
  0xe0   : > { %11301 = vst [vmem:[#allocation115_spill] sm:$0xff] %v9167_v31  ;;  %6539 = vmatprep.mubr.f32.mxu1 %v3088_v1  ;;  %11302 = vst [vmem:[#allocation116_spill] sm:$0xff] %v9171_v7  ;;  %v3097_v45 = vsub.f32 %v9142_v29, %v10874_v57  ;;  %v662_v59 = vmax.f32 %v630_v30, 0.0  ;;  %vm10884_vm15 = vcmp.eq.s32.totalorder %v8471_v0, %v9171_v7 }
  0xe1   : > { %11300 = vst [vmem:[#allocation114_spill] sm:$0xff] %v9165_v20  ;;  %v9181_v16 = vsub.f32 %v661_v63, %v9165_v20  ;;  %v592_v34 = vmul.f32 %v8615_v23, %v505_v33  ;;  %v5300_v1 = vsel %vm10884_vm15, 1.0, %v11236_v48  ;;  %6063 = vmatmul.mubr.f32.gmra.mrb[14].mxu0 %v934_v27  ;;  %v943_v57 = vsub.f32 %v9152_v46, %v10881_v43 }
  0xe2   : > { %v3098_v47 = vand.u32 4294901760, %v3097_v45  ;;  %v10885_v63 = vand.u32 4294901760, %v9167_v31  ;;  %v9194_v22 = vand.u32 4294901760, %v662_v59  ;;  %v9196_v30 = vsub.f32 %v5300_v1, %v5300_v1  ;;  %v510_v17 = vpop.permute.xlu0 %509 }
  0xe3   : > { %11303 = vst [vmem:[#allocation117_spill] sm:$0xff] %v9181_v16  ;;  %v631_v49 = vadd.f32 %v8637_v8, %v592_v34  ;;  %v10892_v33 = vand.u32 4294901760, %v9181_v16  ;;  %v9200_v29 = vpop.permute.xlu1 %2724  ;;  %v944_v27 = vand.u32 4294901760, %v943_v57  ;;  %v593_v34 = vmul.f32 %v8615_v23, %v510_v17 }
  0xe4   : > { %11304 = vst [vmem:[#allocation118_spill] sm:$0xff] %v9194_v22  ;;  %11305 = vst [vmem:[#allocation119_spill] sm:$0xff] %v9196_v30  ;;  %6540 = vmatmul.mubr.f32.gmra.mrb[12].mxu1 %v3098_v47  ;;  %v3107_v45 = vsub.f32 %v9167_v31, %v10885_v63  ;;  %v9206_v43 = vsub.f32 %v662_v59, %v9194_v22  ;;  %vm10895_vm15 = vcmp.eq.s32.totalorder %v8471_v0, %v9200_v29 }
  0xe5   : > { %11306 = vst [vmem:[#allocation120_spill] sm:$0xff] %v9200_v29  ;;  %v663_v46 = vmax.f32 %v631_v49, 0.0  ;;  %v5301_v1 = vsel %vm10895_vm15, 1.0, %v11236_v48  ;;  %6065 = vmatprep.mubr.f32.mxu0 %v944_v27  ;;  %v953_v47 = vsub.f32 %v9181_v16, %v10892_v33  ;;  %v10896_v59 = vand.u32 4294901760, %v9196_v30 }
  0xe6   : > { %11307 = vst [vmem:[#allocation121_spill] sm:$0xff] %v9206_v43  ;;  %v3108_v57 = vand.u32 4294901760, %v3107_v45  ;;  %v9221_v49 = vsub.f32 %v5301_v1, %v5301_v1  ;;  %v632_v31 = vadd.f32 %v8637_v8, %v593_v34  ;;  %v10903_v17 = vand.u32 4294901760, %v9206_v43  ;;  %v515_v62 = vpop.permute.xlu0 %514  ;;  %v11469_v2 = vld [vmem:[#allocation113_spill] sm:$0xff] }
  0xe7   : > { %v9219_v63 = vand.u32 4294901760, %v663_v46  ;;  %v9225_v26 = vpop.permute.xlu1 %2727  ;;  %v954_v27 = vand.u32 4294901760, %v953_v47  ;;  %v3117_v45 = vsub.f32 %v9196_v30, %v10896_v59  ;;  %v594_v34 = vmul.f32 %v8615_v23, %v515_v62 }
  0xe8   : > { %11309 = vst [vmem:[#allocation123_spill] sm:$0xff] %v9221_v49  ;;  %6542 = vmatprep.mubr.f32.mxu1 %v3108_v57  ;;  %11310 = vst [vmem:[#allocation124_spill] sm:$0xff] %v9225_v26  ;;  %v664_v16 = vmax.f32 %v632_v31, 0.0  ;;  %vm10906_vm15 = vcmp.eq.s32.totalorder %v8471_v0, %v9225_v26  ;;  %v963_v47 = vsub.f32 %v9206_v43, %v10903_v17 }
  0xe9   : > { %11308 = vst [vmem:[#allocation122_spill] sm:$0xff] %v9219_v63  ;;  %v9231_v33 = vsub.f32 %v663_v46, %v9219_v63  ;;  %v5302_v1 = vsel %vm10906_vm15, 1.0, %v11236_v48  ;;  %6066 = vmatmul.mubr.f32.gmra.mrb[16].mxu0 %v954_v27  ;;  %v3118_v57 = vand.u32 4294901760, %v3117_v45  ;;  %v10907_v46 = vand.u32 4294901760, %v9221_v49 }
  0xea   : > { %v9244_v59 = vand.u32 4294901760, %v664_v16  ;;  %v9246_v31 = vsub.f32 %v5302_v1, %v5302_v1  ;;  %v633_v30 = vadd.f32 %v8637_v8, %v594_v34  ;;  %v520_v63 = vpop.permute.xlu0 %519  ;;  %v964_v27 = vand.u32 4294901760, %v963_v47 }
  0xeb   : > { %11311 = vst [vmem:[#allocation125_spill] sm:$0xff] %v9231_v33  ;;  %v10914_v62 = vand.u32 4294901760, %v9231_v33  ;;  %6543 = vmatmul.mubr.f32.gmra.mrb[14].mxu1 %v3118_v57  ;;  %v9250_v13 = vpop.permute.xlu1 %2730  ;;  %v3127_v45 = vsub.f32 %v9221_v49, %v10907_v46  ;;  %v595_v34 = vmul.f32 %v8615_v23, %v520_v63 }
  0xec   : > { %11312 = vst [vmem:[#allocation126_spill] sm:$0xff] %v9244_v59  ;;  %11313 = vst [vmem:[#allocation127_spill] sm:$0xff] %v9246_v31  ;;  %v9256_v17 = vsub.f32 %v664_v16, %v9244_v59  ;;  %v665_v43 = vmax.f32 %v633_v30, 0.0  ;;  %vm10917_vm15 = vcmp.eq.s32.totalorder %v8471_v0, %v9250_v13  ;;  %6068 = vmatprep.mubr.f32.mxu0 %v964_v27  ;;  %v10918_v16 = vand.u32 4294901760, %v9246_v31 }
  0xed   : > { %11314 = vst [vmem:[#allocation128_spill] sm:$0xff] %v9250_v13  ;;  %v5303_v1 = vsel %vm10917_vm15, 1.0, %v11236_v48  ;;  %v3128_v57 = vand.u32 4294901760, %v3127_v45  ;;  %v973_v47 = vsub.f32 %v9231_v33, %v10914_v62  ;;  %v634_v49 = vadd.f32 %v8637_v8, %v595_v34 }
  0xee   : > { %11315 = vst [vmem:[#allocation129_spill] sm:$0xff] %v9256_v17  ;;  %v9269_v46 = vand.u32 4294901760, %v665_v43  ;;  %v9271_v30 = vsub.f32 %v5303_v1, %v5303_v1  ;;  %v10925_v63 = vand.u32 4294901760, %v9256_v17  ;;  %v525_v13 = vpop.permute.xlu0 %524  ;;  %v3137_v45 = vsub.f32 %v9246_v31, %v10918_v16 }
  0xef   : > { %6545 = vmatprep.mubr.f32.mxu1 %v3128_v57  ;;  %v9275_v59 = vpop.permute.xlu1 %2733  ;;  %v974_v27 = vand.u32 4294901760, %v973_v47  ;;  %v666_v33 = vmax.f32 %v634_v49, 0.0  ;;  %v596_v34 = vmul.f32 %v8615_v23, %v525_v13 }
  0xf0   : > { %11316 = vst [vmem:[#allocation130_spill] sm:$0xff] %v9269_v46  ;;  %11317 = vst [vmem:[#allocation131_spill] sm:$0xff] %v9271_v30  ;;  %v9281_v62 = vsub.f32 %v665_v43, %v9269_v46  ;;  %vm10928_vm15 = vcmp.eq.s32.totalorder %v8471_v0, %v9275_v59  ;;  %v3138_v57 = vand.u32 4294901760, %v3137_v45  ;;  %v983_v47 = vsub.f32 %v9256_v17, %v10925_v63 }
  0xf1   : > { %11318 = vst [vmem:[#allocation132_spill] sm:$0xff] %v9275_v59  ;;  %v5304_v1 = vsel %vm10928_vm15, 1.0, %v11236_v48  ;;  %6069 = vmatmul.mubr.f32.gmra.mrb[18].mxu0 %v974_v27  ;;  %v10929_v43 = vand.u32 4294901760, %v9271_v30  ;;  %v9294_v16 = vand.u32 4294901760, %v666_v33  ;;  %v635_v31 = vadd.f32 %v8637_v8, %v596_v34 }
  0xf2   : > { %11319 = vst [vmem:[#allocation133_spill] sm:$0xff] %v9281_v62  ;;  %v9296_v49 = vsub.f32 %v5304_v1, %v5304_v1  ;;  %v10936_v13 = vand.u32 4294901760, %v9281_v62  ;;  %6546 = vmatmul.mubr.f32.gmra.mrb[16].mxu1 %v3138_v57  ;;  %v530_v59 = vpop.permute.xlu0 %529  ;;  %v984_v27 = vand.u32 4294901760, %v983_v47 }
  0xf3   : > { %11320 = vst [vmem:[#allocation134_spill] sm:$0xff] %v9294_v16  ;;  %v9300_v46 = vpop.permute.xlu1 %2736  ;;  %v3147_v45 = vsub.f32 %v9271_v30, %v10929_v43  ;;  %v9306_v63 = vsub.f32 %v666_v33, %v9294_v16  ;;  %v667_v17 = vmax.f32 %v635_v31, 0.0  ;;  %v597_v34 = vmul.f32 %v8615_v23, %v530_v59 }
  0xf4   : > { %11321 = vst [vmem:[#allocation135_spill] sm:$0xff] %v9296_v49  ;;  %11322 = vst [vmem:[#allocation136_spill] sm:$0xff] %v9300_v46  ;;  %vm10939_vm15 = vcmp.eq.s32.totalorder %v8471_v0, %v9300_v46  ;;  %6071 = vmatprep.mubr.f32.mxu0 %v984_v27  ;;  %v993_v47 = vsub.f32 %v9281_v62, %v10936_v13  ;;  %v10940_v33 = vand.u32 4294901760, %v9296_v49 }
  0xf5   : > { %11323 = vst [vmem:[#allocation137_spill] sm:$0xff] %v9306_v63  ;;  %v5305_v1 = vsel %vm10939_vm15, 1.0, %v11236_v48  ;;  %v3148_v57 = vand.u32 4294901760, %v3147_v45  ;;  %v9319_v43 = vand.u32 4294901760, %v667_v17  ;;  %v636_v30 = vadd.f32 %v8637_v8, %v597_v34 }
  0xf6   : > { %v9321_v31 = vsub.f32 %v5305_v1, %v5305_v1  ;;  %v10947_v59 = vand.u32 4294901760, %v9306_v63  ;;  %v535_v46 = vpop.permute.xlu0 %534  ;;  %v994_v27 = vand.u32 4294901760, %v993_v47  ;;  %v3157_v45 = vsub.f32 %v9296_v49, %v10940_v33 }
  0xf7   : > { %11324 = vst [vmem:[#allocation138_spill] sm:$0xff] %v9319_v43  ;;  %6548 = vmatprep.mubr.f32.mxu1 %v3148_v57  ;;  %v9325_v16 = vpop.permute.xlu1 %2739  ;;  %v9331_v13 = vsub.f32 %v667_v17, %v9319_v43  ;;  %v668_v62 = vmax.f32 %v636_v30, 0.0  ;;  %v598_v34 = vmul.f32 %v8615_v23, %v535_v46 }
  0xf8   : > { %11325 = vst [vmem:[#allocation139_spill] sm:$0xff] %v9321_v31  ;;  %11326 = vst [vmem:[#allocation140_spill] sm:$0xff] %v9325_v16  ;;  %vm10950_vm15 = vcmp.eq.s32.totalorder %v8471_v0, %v9325_v16  ;;  %6072 = vmatmul.mubr.f32.gmra.mrb[20].mxu0 %v994_v27  ;;  %v3158_v57 = vand.u32 4294901760, %v3157_v45  ;;  %v1003_v47 = vsub.f32 %v9306_v63, %v10947_v59  ;;  %v10951_v17 = vand.u32 4294901760, %v9321_v31 }
  0xf9   : > { %11327 = vst [vmem:[#allocation141_spill] sm:$0xff] %v9331_v13  ;;  %v5306_v1 = vsel %vm10950_vm15, 1.0, %v11236_v48  ;;  %v9344_v33 = vand.u32 4294901760, %v668_v62  ;;  %v637_v49 = vadd.f32 %v8637_v8, %v598_v34  ;;  %v10956_v46 = vand.u32 4294901760, %v9331_v13 }
  0xfa   : > { %v9346_v30 = vsub.f32 %v5306_v1, %v5306_v1  ;;  %6549 = vmatmul.mubr.f32.gmra.mrb[18].mxu1 %v3158_v57  ;;  %v540_v16 = vpop.permute.xlu0 %539  ;;  %v1004_v27 = vand.u32 4294901760, %v1003_v47  ;;  %v3167_v45 = vsub.f32 %v9321_v31, %v10951_v17 }
  0xfb   : > { %11328 = vst [vmem:[#allocation142_spill] sm:$0xff] %v9344_v33  ;;  %v9350_v43 = vpop.permute.xlu1 %2742  ;;  %v9356_v59 = vsub.f32 %v668_v62, %v9344_v33  ;;  %v669_v63 = vmax.f32 %v637_v49, 0.0  ;;  %v599_v34 = vmul.f32 %v8615_v23, %v540_v16  ;;  %v1013_v47 = vsub.f32 %v9331_v13, %v10956_v46 }
  0xfc   : > { %11329 = vst [vmem:[#allocation143_spill] sm:$0xff] %v9346_v30  ;;  %11330 = vst [vmem:[#allocation144_spill] sm:$0xff] %v9350_v43  ;;  %vm10959_vm15 = vcmp.eq.s32.totalorder %v8471_v0, %v9350_v43  ;;  %6074 = vmatprep.mubr.f32.mxu0 %v1004_v27  ;;  %v3168_v57 = vand.u32 4294901760, %v3167_v45  ;;  %v10960_v62 = vand.u32 4294901760, %v9346_v30 }
  0xfd   : > { %11331 = vst [vmem:[#allocation145_spill] sm:$0xff] %v9356_v59  ;;  %v5307_v1 = vsel %vm10959_vm15, 1.0, %v11236_v48  ;;  %v9369_v17 = vand.u32 4294901760, %v669_v63  ;;  %v638_v31 = vadd.f32 %v8637_v8, %v599_v34  ;;  %v10965_v23 = vand.u32 4294901760, %v9356_v59  ;;  %v9388_v8 = vld [vmem:[%s10667_s2] ss:$0 sm:$0xff] }
  0xfe   : > { %v9371_v49 = vsub.f32 %v5307_v1, %v5307_v1  ;;  %6551 = vmatprep.mubr.f32.mxu1 %v3168_v57  ;;  %v545_v33 = vpop.permute.xlu0 %544  ;;  %v1014_v27 = vand.u32 4294901760, %v1013_v47  ;;  %v3177_v45 = vsub.f32 %v9346_v30, %v10960_v62 }
  0xff   : > { %11332 = vst [vmem:[#allocation146_spill] sm:$0xff] %v9369_v17  ;;  %v9375_v16 = vpop.permute.xlu1 %2745  ;;  %v9381_v46 = vsub.f32 %v669_v63, %v9369_v17  ;;  %v670_v13 = vmax.f32 %v638_v31, 0.0  ;;  %v600_v34 = vmul.f32 %v9388_v8, %v545_v33  ;;  %v1023_v63 = vsub.f32 %v9356_v59, %v10965_v23  ;;  %v9406_v33 = vld [vmem:[%s10668_s3] ss:$0 sm:$0xff] }
 0x100   : > { %11333 = vst [vmem:[#allocation147_spill] sm:$0xff] %v9371_v49  ;;  %11334 = vst [vmem:[#allocation148_spill] sm:$0xff] %v9375_v16  ;;  %vm10970_vm15 = vcmp.eq.s32.totalorder %v8471_v0, %v9375_v16  ;;  %6075 = vmatmul.mubr.f32.gmra.mrb[22].mxu0 %v1014_v27  ;;  %v3178_v57 = vand.u32 4294901760, %v3177_v45  ;;  %v10971_v31 = vand.u32 4294901760, %v9371_v49 }
 0x101   : > { %11335 = vst [vmem:[#allocation149_spill] sm:$0xff] %v9381_v46  ;;  %v5308_v1 = vsel %vm10970_vm15, 1.0, %v11236_v48  ;;  %v9399_v47 = vand.u32 4294901760, %v670_v13  ;;  %v639_v30 = vadd.f32 %v9406_v33, %v600_v34  ;;  %v10980_v27 = vand.u32 4294901760, %v9381_v46 }
 0x102   : > { %v9401_v62 = vsub.f32 %v5308_v1, %v5308_v1  ;;  %6552 = vmatmul.mubr.f32.gmra.mrb[20].mxu1 %v3178_v57  ;;  %v550_v17 = vpop.permute.xlu0 %549  ;;  %v1024_v23 = vand.u32 4294901760, %v1023_v63  ;;  %v3187_v59 = vsub.f32 %v9371_v49, %v10971_v31 }
 0x103   : > { %11336 = vst [vmem:[#allocation150_spill] sm:$0xff] %v9399_v47  ;;  %v9410_v45 = vpop.permute.xlu1 %2748  ;;  %v9416_v1 = vsub.f32 %v670_v13, %v9399_v47  ;;  %v671_v16 = vmax.f32 %v639_v30, 0.0  ;;  %v601_v34 = vmul.f32 %v9388_v8, %v550_v17  ;;  %v1033_v31 = vsub.f32 %v9381_v46, %v10980_v27 }
 0x104   : > { %11337 = vst [vmem:[#allocation151_spill] sm:$0xff] %v9401_v62  ;;  %11338 = vst [vmem:[#allocation152_spill] sm:$0xff] %v9410_v45  ;;  %vm10983_vm15 = vcmp.eq.s32.totalorder %v8471_v0, %v9410_v45  ;;  %6077 = vmatprep.mubr.f32.mxu0 %v1024_v23  ;;  %v3188_v63 = vand.u32 4294901760, %v3187_v59  ;;  %v10984_v13 = vand.u32 4294901760, %v9401_v62 }
 0x105   : > { %11339 = vst [vmem:[#allocation153_spill] sm:$0xff] %v9416_v1  ;;  %v5309_v57 = vsel %vm10983_vm15, 1.0, %v11236_v48  ;;  %v9429_v49 = vand.u32 4294901760, %v671_v16  ;;  %v640_v47 = vadd.f32 %v9406_v33, %v601_v34  ;;  %v10991_v17 = vand.u32 4294901760, %v9416_v1 }
 0x106   : > { %v9431_v30 = vsub.f32 %v5309_v57, %v5309_v57  ;;  %6554 = vmatprep.mubr.f32.mxu1 %v3188_v63  ;;  %v555_v45 = vpop.permute.xlu0 %554  ;;  %v1034_v23 = vand.u32 4294901760, %v1033_v31  ;;  %v3197_v59 = vsub.f32 %v9401_v62, %v10984_v13 }
 0x107   : > { %11340 = vst [vmem:[#allocation154_spill] sm:$0xff] %v9429_v49  ;;  %v9435_v43 = vpop.permute.xlu1 %2751  ;;  %v9441_v27 = vsub.f32 %v671_v16, %v9429_v49  ;;  %v672_v46 = vmax.f32 %v640_v47, 0.0  ;;  %v602_v34 = vmul.f32 %v9388_v8, %v555_v45  ;;  %v1043_v63 = vsub.f32 %v9416_v1, %v10991_v17 }
 0x108   : > { %11341 = vst [vmem:[#allocation155_spill] sm:$0xff] %v9431_v30  ;;  %11342 = vst [vmem:[#allocation156_spill] sm:$0xff] %v9435_v43  ;;  %vm10994_vm15 = vcmp.eq.s32.totalorder %v8471_v0, %v9435_v43  ;;  %6078 = vmatmul.mubr.f32.gmra.mrb[24].mxu0 %v1034_v23  ;;  %v3198_v31 = vand.u32 4294901760, %v3197_v59  ;;  %v10995_v16 = vand.u32 4294901760, %v9431_v30 }
 0x109   : > { %11343 = vst [vmem:[#allocation157_spill] sm:$0xff] %v9441_v27  ;;  %v5310_v57 = vsel %vm10994_vm15, 1.0, %v11236_v48  ;;  %v9454_v13 = vand.u32 4294901760, %v672_v46  ;;  %v641_v62 = vadd.f32 %v9406_v33, %v602_v34  ;;  %v11002_v45 = vand.u32 4294901760, %v9441_v27 }
 0x10a   : > { %v9456_v47 = vsub.f32 %v5310_v57, %v5310_v57  ;;  %6555 = vmatmul.mubr.f32.gmra.mrb[22].mxu1 %v3198_v31  ;;  %v560_v43 = vpop.permute.xlu0 %559  ;;  %v1044_v23 = vand.u32 4294901760, %v1043_v63  ;;  %v3207_v59 = vsub.f32 %v9431_v30, %v10995_v16 }
 0x10b   : > { %11344 = vst [vmem:[#allocation158_spill] sm:$0xff] %v9454_v13  ;;  %v9460_v49 = vpop.permute.xlu1 %2754  ;;  %v9466_v17 = vsub.f32 %v672_v46, %v9454_v13  ;;  %v673_v1 = vmax.f32 %v641_v62, 0.0  ;;  %v603_v34 = vmul.f32 %v9388_v8, %v560_v43  ;;  %v1053_v63 = vsub.f32 %v9441_v27, %v11002_v45 }
 0x10c   : > { %11345 = vst [vmem:[#allocation159_spill] sm:$0xff] %v9456_v47  ;;  %11346 = vst [vmem:[#allocation160_spill] sm:$0xff] %v9460_v49  ;;  %vm11005_vm15 = vcmp.eq.s32.totalorder %v8471_v0, %v9460_v49  ;;  %6080 = vmatprep.mubr.f32.mxu0 %v1044_v23  ;;  %v3208_v31 = vand.u32 4294901760, %v3207_v59  ;;  %v11006_v46 = vand.u32 4294901760, %v9456_v47 }
 0x10d   : > { %11347 = vst [vmem:[#allocation161_spill] sm:$0xff] %v9466_v17  ;;  %v5311_v57 = vsel %vm11005_vm15, 1.0, %v11236_v48  ;;  %v9479_v16 = vand.u32 4294901760, %v673_v1  ;;  %v642_v30 = vadd.f32 %v9406_v33, %v603_v34  ;;  %v11011_v43 = vand.u32 4294901760, %v9466_v17 }
 0x10e   : > { %v9481_v62 = vsub.f32 %v5311_v57, %v5311_v57  ;;  %6557 = vmatprep.mubr.f32.mxu1 %v3208_v31  ;;  %v565_v49 = vpop.permute.xlu0 %564  ;;  %v1054_v23 = vand.u32 4294901760, %v1053_v63  ;;  %v3217_v59 = vsub.f32 %v9456_v47, %v11006_v46 }
 0x10f   : > { %11348 = vst [vmem:[#allocation162_spill] sm:$0xff] %v9479_v16  ;;  %v9485_v13 = vpop.permute.xlu1 %2757  ;;  %v9491_v45 = vsub.f32 %v673_v1, %v9479_v16  ;;  %v674_v27 = vmax.f32 %v642_v30, 0.0  ;;  %v604_v34 = vmul.f32 %v9388_v8, %v565_v49  ;;  %v1063_v63 = vsub.f32 %v9466_v17, %v11011_v43 }
 0x110   : > { %11349 = vst [vmem:[#allocation163_spill] sm:$0xff] %v9481_v62  ;;  %11350 = vst [vmem:[#allocation164_spill] sm:$0xff] %v9485_v13  ;;  %vm11014_vm15 = vcmp.eq.s32.totalorder %v8471_v0, %v9485_v13  ;;  %6081 = vmatmul.mubr.f32.gmra.mrb[26].mxu0 %v1054_v23  ;;  %v3218_v31 = vand.u32 4294901760, %v3217_v59  ;;  %v11016_v1 = vand.u32 4294901760, %v9481_v62 }
 0x111   : > { %11351 = vst [vmem:[#allocation165_spill] sm:$0xff] %v9491_v45  ;;  %v5312_v57 = vsel %vm11014_vm15, 1.0, %v11236_v48  ;;  %v9504_v46 = vand.u32 4294901760, %v674_v27  ;;  %v643_v47 = vadd.f32 %v9406_v33, %v604_v34  ;;  %v11025_v49 = vand.u32 4294901760, %v9491_v45 }
 0x112   : > { %v9506_v30 = vsub.f32 %v5312_v57, %v5312_v57  ;;  %6558 = vmatmul.mubr.f32.gmra.mrb[24].mxu1 %v3218_v31  ;;  %v9512_v16 = vpop.permute.xlu0 %2760  ;;  %v1064_v23 = vand.u32 4294901760, %v1063_v63  ;;  %v3227_v59 = vsub.f32 %v9481_v62, %v11016_v1 }
 0x113   : > { %11352 = vst [vmem:[#allocation166_spill] sm:$0xff] %v9504_v46  ;;  %v9510_v8 = vpop.permute.xlu1 %2763  ;;  %11355 = vst [vmem:[#allocation169_spill] sm:$0xff] %v9512_v16  ;;  %v9518_v43 = vsub.f32 %v674_v27, %v9504_v46  ;;  %v675_v17 = vmax.f32 %v643_v47, 0.0  ;;  %vm11024_vm14 = vcmp.eq.s32.totalorder %v8471_v0, %v9512_v16  ;;  %v1073_v47 = vsub.f32 %v9491_v45, %v11025_v49 }
 0x114   : > { %11353 = vst [vmem:[#allocation167_spill] sm:$0xff] %v9506_v30  ;;  %11354 = vst [vmem:[#allocation168_spill] sm:$0xff] %v9510_v8  ;;  %vm11023_vm15 = vcmp.eq.s32.totalorder %v8471_v0, %v9510_v8  ;;  %v5313_v34 = vsel %vm11024_vm14, 1.0, %v11236_v48  ;;  %6083 = vmatprep.mubr.f32.mxu0 %v1064_v23  ;;  %v3228_v27 = vand.u32 4294901760, %v3227_v59  ;;  %v11026_v1 = vand.u32 4294901760, %v9506_v30 }
 0x115   : > { %11356 = vst [vmem:[#allocation170_spill] sm:$0xff] %v9518_v43  ;;  %v5314_v33 = vsel %vm11023_vm15, 1.0, %v11236_v48  ;;  %v9535_v57 = vand.u32 4294901760, %v675_v17  ;;  %v9539_v63 = vsub.f32 %v5313_v34, %v5313_v34  ;;  %v1074_v46 = vand.u32 4294901760, %v1073_v47 }
 0x116   : > { %v9537_v31 = vsub.f32 %v5314_v33, %v5314_v33  ;;  %6560 = vmatprep.mubr.f32.mxu1 %v3228_v27  ;;  %v9544_v8 = vpop.permute.xlu0 %2766  ;;  %v11035_v23 = vand.u32 4294901760, %v9518_v43  ;;  %v3237_v33 = vsub.f32 %v9506_v30, %v11026_v1 }
 0x117   : > { %11357 = vst [vmem:[#allocation171_spill] sm:$0xff] %v9535_v57  ;;  %11359 = vst [vmem:[#allocation173_spill] sm:$0xff] %v9539_v63  ;;  %v9542_v62 = vpop.permute.xlu1 %2769  ;;  %v9548_v59 = vsub.f32 %v675_v17, %v9535_v57  ;;  %vm2801_vm14 = vcmp.eq.s32.totalorder %v8471_v0, %v9544_v8  ;;  %6084 = vmatmul.mubr.f32.gmra.mrb[28].mxu0 %v1074_v46  ;;  %v11036_v47 = vand.u32 4294901760, %v9539_v63 }
 0x118   : > { %11358 = vst [vmem:[#allocation172_spill] sm:$0xff] %v9537_v31  ;;  %11360 = vst [vmem:[#allocation174_spill] sm:$0xff] %v9542_v62  ;;  %vm2802_vm15 = vcmp.eq.s32.totalorder %v8471_v0, %v9542_v62  ;;  %v5315_v17 = vsel %vm2801_vm14, 1.0, %v11236_v48  ;;  %v1083_v27 = vsub.f32 %v9518_v43, %v11035_v23  ;;  %v3238_v45 = vand.u32 4294901760, %v3237_v33 }
 0x119   : > { %11361 = vst [vmem:[#allocation175_spill] sm:$0xff] %v9544_v8  ;;  %11362 = vst [vmem:[#allocation176_spill] sm:$0xff] %v9548_v59  ;;  %v5316_v34 = vsel %vm2802_vm15, 1.0, %v11236_v48  ;;  %v9571_v1 = vsub.f32 %v5315_v17, %v5315_v17  ;;  %v11037_v30 = vand.u32 4294901760, %v9537_v31  ;;  %v3247_v8 = vsub.f32 %v9539_v63, %v11036_v47 }
 0x11a   : > { %v9569_v49 = vsub.f32 %v5316_v34, %v5316_v34  ;;  %v1084_v62 = vand.u32 4294901760, %v1083_v27  ;;  %v11043_v48 = vand.u32 4294901760, %v9548_v59  ;;  %6561 = vmatmul.mubr.f32.gmra.mrb[26].mxu1 %v3238_v45 }
 0x11b   : > { %v3257_v46 = vsub.f32 %v9537_v31, %v11037_v30  ;;  %v11042_v34 = vand.u32 4294901760, %v9571_v1  ;;  %v3248_v33 = vand.u32 4294901760, %v3247_v8 }
 0x11c   : > { %v11044_v17 = vand.u32 4294901760, %v9569_v49  ;;  %6086 = vmatprep.mubr.f32.mxu0 %v1084_v62  ;;  %v1093_v27 = vsub.f32 %v9548_v59, %v11043_v48  ;;  %v11363_v62 = vld [vmem:[#allocation23_spill] sm:$0xff]  ;;  %v11375_v48 = vld [vmem:[#allocation28_spill] sm:$0xff] }
 0x11d   : > { %v3258_v23 = vand.u32 4294901760, %v3257_v46  ;;  %v3267_v47 = vsub.f32 %v9571_v1, %v11042_v34  ;;  %6563 = vmatprep.mubr.f32.mxu1 %v3248_v33  ;;  %v7037_v8 = vpack.c.bf16 %v11363_v62, %v8395_v9  ;;  %v11364_v46 = vld [vmem:[#allocation56_spill] sm:$0xff]  ;;  %v11054_v34 = vmov 1.0   ;;  %v11366_v33 = vld [vmem:[#allocation49_spill] sm:$0xff] }
 0x11e   : > { %v3277_v45 = vsub.f32 %v9569_v49, %v11044_v17  ;;  %v1094_v30 = vand.u32 4294901760, %v1093_v27  ;;  %v11371_v27 = vld [vmem:[#allocation27_spill] sm:$0xff] }
 0x11f   : > { %6564 = vmatmul.mubr.f32.gmra.mrb[28].mxu1 %v3258_v23  ;;  %v3268_v31 = vand.u32 4294901760, %v3267_v47  ;;  %v11368_v23 = vld [vmem:[#allocation25_spill] sm:$0xff]  ;;  %v11372_v17 = vld [vmem:[#allocation55_spill] sm:$0xff] }
 0x120   : > { %v3278_v43 = vand.u32 4294901760, %v3277_v45  ;;  %6087 = vmatmul.mubr.f32.gmra.mrb[30].mxu0 %v1094_v30  ;;  %v11367_v30 = vld [vmem:[#allocation24_spill] sm:$0xff] }
 0x121   : > { %6121 = vmatprep.mubr.f32.mxu0 %v8682_v38  ;;  %6566 = vmatprep.mubr.f32.mxu1 %v3268_v31  ;;  %v7229_v31 = vpack.c.bf16 %v11368_v23, %v11367_v30  ;;  %v11487_v38 = vld [vmem:[#allocation143_spill] sm:$0xff] }
 0x123   : > { %6567 = vmatmul.mubr.f32.gmra.mrb[30].mxu1 %v3278_v43  ;;  %v11370_v43 = vld [vmem:[#allocation26_spill] sm:$0xff] }
 0x124   : > { %6122 = vmatmul.mubr.f32.vlgmr.msra.gmra.mrb[0].mxu0 %v11364_v46  ;;  %6601 = vmatprep.mubr.msk.f32.mxu1 %vm2771_vm0, %v11054_v34  ;;  %v7041_v45 = vpack.c.bf16 %v11371_v27, %v11370_v43  ;;  %v11376_v46 = vld [vmem:[#allocation29_spill] sm:$0xff] }
 0x125   : > { %6124 = vmatprep.mubr.f32.mxu0 %v11366_v33  ;;  %7036 = vmatpush3.bf16.msra.mxu0 %v8726_v44  ;;  %v11374_v44 = vld [vmem:[#allocation62_spill] sm:$0xff]  ;;  %v7233_v47 = vpack.c.bf16 %v11376_v46, %v11375_v48 }
 0x126   : > { %7038 = vmatprep.subr.bf16.mxu0 %v7037_v8 }
 0x127   : > { %6602 = vmatmul.mubr.msk.f32.vlgmr.msra.gmra.mrb[0].mxu1 %vm2772_vm1, %v11054_v34 }
 0x128   : > { %7228 = vmatpush3.bf16.msra.mxu1 %v9022_v40  ;;  %6125 = vmatmul.mubr.f32.gmra.mrb[2].mxu0 %v11372_v17  ;;  %v11383_v40 = vld [vmem:[#allocation4_spill] sm:$0xff]  ;;  %v11475_v17 = vld [vmem:[#allocation119_spill] sm:$0xff] }
 0x129   : > { %6604 = vmatprep.mubr.msk.f32.mxu1 %vm2773_vm2, %v11054_v34  ;;  %6127 = vmatprep.mubr.f32.mxu0 %v11374_v44  ;;  %v11473_v44 = vld [vmem:[#allocation22_spill] sm:$0xff] }
 0x12a   : > { %7040 = vmatpush3.bf16.msra.mxu0 %v7037_v8  ;;  %7230 = vmatprep.subr.bf16.mxu1 %v7229_v31  ;;  %v11392_v8 = vld [vmem:[#allocation136_spill] sm:$0xff]  ;;  %v11474_v33 = vand.u32 4294901760, %v11473_v44  ;;  %v11482_v44 = vld [vmem:[#allocation129_spill] sm:$0xff] }
 0x12b   : > { %6605 = vmatmul.mubr.msk.f32.gmra.mrb[2].mxu1 %vm2774_vm3, %v11054_v34  ;;  %7042 = vmatprep.subr.bf16.mxu0 %v7041_v45 }
 0x12c   : > { %6128 = vmatmul.mubr.f32.gmra.mrb[4].mxu0 %v8778_v53  ;;  %6607 = vmatprep.mubr.msk.f32.mxu1 %vm2775_vm4, %v11054_v34  ;;  %v11467_v53 = vld [vmem:[#allocation109_spill] sm:$0xff] }
 0x12d   : > { %6130 = vmatprep.mubr.f32.mxu0 %v8807_v56  ;;  %7232 = vmatpush3.bf16.msra.mxu1 %v7229_v31  ;;  %v11394_v31 = vld [vmem:[#allocation134_spill] sm:$0xff] }
 0x12e   : > { %7044 = vmatpush3.bf16.msra.mxu0 %v7041_v45  ;;  %7234 = vmatprep.subr.bf16.mxu1 %v7233_v47  ;;  %v11397_v45 = vld [vmem:[#allocation138_spill] sm:$0xff] }
 0x12f   : > { %6608 = vmatmul.mubr.msk.f32.gmra.mrb[4].mxu1 %vm2776_vm5, %v11054_v34  ;;  %7046 = vmatprep.subr.bf16.mxu0 %v8952_v41 }
 0x130   : > { %6131 = vmatmul.mubr.f32.gmra.mrb[6].mxu0 %v8840_v50  ;;  %6610 = vmatprep.mubr.msk.f32.mxu1 %vm2777_vm6, %v11054_v34  ;;  %v11460_v50 = vld [vmem:[#allocation16_spill] sm:$0xff] }
 0x131   : > { %6133 = vmatprep.mubr.f32.mxu0 %v8870_v54  ;;  %7236 = vmatpush3.bf16.msra.mxu1 %v7233_v47  ;;  %v11395_v47 = vld [vmem:[#allocation140_spill] sm:$0xff]  ;;  %v11458_v54 = vld [vmem:[#allocation107_spill] sm:$0xff] }
 0x132   : > { %7048 = vmatpush3.bf16.msra.mxu0 %v8952_v41  ;;  %7238 = vmatprep.subr.bf16.mxu1 %v8985_v10  ;;  %v11377_v41 = vld [vmem:[#allocation47_spill] sm:$0xff] }
 0x133   : > { %6611 = vmatmul.mubr.msk.f32.gmra.mrb[6].mxu1 %vm2778_vm7, %v11054_v34  ;;  %7050 = vmatprep.subr.bf16.mxu0 %v8989_v25 }
 0x134   : > { %6134 = vmatmul.mubr.f32.gmra.mrb[8].mxu0 %v8905_v52  ;;  %6613 = vmatprep.mubr.msk.f32.mxu1 %vm2779_vm8, %v11054_v34  ;;  %v11454_v52 = vld [vmem:[#allocation14_spill] sm:$0xff] }
 0x135   : > { %6136 = vmatprep.mubr.f32.mxu0 %v8934_v15  ;;  %7240 = vmatpush3.bf16.msra.mxu1 %v8985_v10  ;;  %v11378_v10 = vld [vmem:[#allocation48_spill] sm:$0xff]  ;;  %v11452_v15 = vld [vmem:[#allocation99_spill] sm:$0xff] }
 0x136   : > { %7052 = vmatpush3.bf16.msra.mxu0 %v8989_v25  ;;  %7242 = vmatprep.subr.bf16.mxu1 %v9026_v60  ;;  %v7061_v25 = vpack.c.bf16 %v11378_v10, %v11377_v41 }
 0x137   : > { %6614 = vmatmul.mubr.msk.f32.gmra.mrb[8].mxu1 %vm2780_vm9, %v11054_v34  ;;  %7054 = vmatprep.subr.bf16.mxu0 %v9059_v18 }
 0x138   : > { %6137 = vmatmul.mubr.f32.gmra.mrb[10].mxu0 %v8969_v5  ;;  %6616 = vmatprep.mubr.msk.f32.mxu1 %vm2781_vm10, %v11054_v34  ;;  %v11450_v5 = vld [vmem:[#allocation13_spill] sm:$0xff] }
 0x139   : > { %6139 = vmatprep.mubr.f32.mxu0 %v9006_v51  ;;  %7244 = vmatpush3.bf16.msra.mxu1 %v9026_v60  ;;  %v11385_v60 = vld [vmem:[#allocation122_spill] sm:$0xff]  ;;  %v11448_v51 = vld [vmem:[#allocation12_spill] sm:$0xff] }
 0x13a   : > { %7056 = vmatpush3.bf16.msra.mxu0 %v9059_v18  ;;  %7246 = vmatprep.subr.bf16.mxu1 %v9063_v14  ;;  %v11386_v18 = vld [vmem:[#allocation128_spill] sm:$0xff] }
 0x13b   : > { %6617 = vmatmul.mubr.msk.f32.gmra.mrb[10].mxu1 %vm11046_vm11, %v11054_v34  ;;  %7058 = vmatprep.subr.bf16.mxu0 %v9120_v39  ;;  %vm11380_vm11 = vcmp.eq.s32.totalorder %v8471_v0, %v9171_v7  ;;  %v11439_v7 = vld [vmem:[#allocation77_spill] sm:$0xff] }
 0x13c   : > { %6140 = vmatmul.mubr.f32.gmra.mrb[12].mxu0 %v9043_v42  ;;  %6619 = vmatprep.mubr.msk.f32.mxu1 %vm11045_vm12, %v11054_v34  ;;  %vm11379_vm12 = vcmp.eq.s32.totalorder %v8471_v0, %v9146_v3  ;;  %v11441_v3 = vld [vmem:[#allocation81_spill] sm:$0xff]  ;;  %v11446_v42 = vld [vmem:[#allocation91_spill] sm:$0xff] }
 0x13d   : > { %6142 = vmatprep.mubr.f32.mxu0 %v9080_v55  ;;  %7248 = vmatpush3.bf16.msra.mxu1 %v9063_v14  ;;  %v11388_v14 = vld [vmem:[#allocation126_spill] sm:$0xff]  ;;  %v11444_v55 = vld [vmem:[#allocation11_spill] sm:$0xff] }
 0x13e   : > { %7060 = vmatpush3.bf16.msra.mxu0 %v9120_v39  ;;  %7250 = vmatprep.subr.bf16.mxu1 %v9124_v21  ;;  %v11381_v39 = vld [vmem:[#allocation3_spill] sm:$0xff] }
 0x13f   : > { %6620 = vmatmul.mubr.msk.f32.gmra.mrb[12].mxu1 %vm11047_vm13, %v11054_v34  ;;  %7062 = vmatprep.subr.bf16.mxu0 %v7061_v25  ;;  %vm11384_vm13 = vcmp.eq.s32.totalorder %v8471_v0, %v9225_v26  ;;  %v11435_v26 = vld [vmem:[#allocation73_spill] sm:$0xff] }
 0x140   : > { %6143 = vmatmul.mubr.f32.gmra.mrb[14].mxu0 %v9107_v4  ;;  %6622 = vmatprep.mubr.msk.f32.mxu1 %vm11379_vm12, %v11054_v34  ;;  %vm11382_vm12 = vcmp.eq.s32.totalorder %v8471_v0, %v9200_v29  ;;  %v11437_v29 = vld [vmem:[#allocation79_spill] sm:$0xff]  ;;  %v11442_v4 = vld [vmem:[#allocation10_spill] sm:$0xff] }
 0x141   : > { %6145 = vmatprep.mubr.f32.mxu0 %v9140_v19  ;;  %7252 = vmatpush3.bf16.msra.mxu1 %v9124_v21  ;;  %v11389_v21 = vld [vmem:[#allocation132_spill] sm:$0xff]  ;;  %v11440_v19 = vld [vmem:[#allocation83_spill] sm:$0xff] }
 0x142   : > { %7064 = vmatpush3.bf16.msra.mxu0 %v7061_v25  ;;  %7254 = vmatprep.subr.bf16.mxu1 %v9178_v37  ;;  %v11398_v25 = vld [vmem:[#allocation144_spill] sm:$0xff] }
 0x143   : > { %6623 = vmatmul.mubr.msk.f32.gmra.mrb[14].mxu1 %vm11380_vm11, %v11054_v34  ;;  %7066 = vmatprep.subr.bf16.mxu0 %v11381_v39  ;;  %vm11387_vm11 = vcmp.eq.s32.totalorder %v8471_v0, %v11386_v18  ;;  %v11433_v18 = vld [vmem:[#allocation69_spill] sm:$0xff] }
 0x144   : > { %6146 = vmatmul.mubr.f32.gmra.mrb[16].mxu0 %v9165_v20  ;;  %6625 = vmatprep.mubr.msk.f32.mxu1 %vm11382_vm12, %v11054_v34  ;;  %vm11390_vm12 = vcmp.eq.s32.totalorder %v8471_v0, %v11389_v21  ;;  %v11431_v21 = vld [vmem:[#allocation71_spill] sm:$0xff]  ;;  %v11438_v20 = vld [vmem:[#allocation9_spill] sm:$0xff] }
 0x145   : > { %6148 = vmatprep.mubr.f32.mxu0 %v9194_v22  ;;  %7256 = vmatpush3.bf16.msra.mxu1 %v9178_v37  ;;  %v11391_v37 = vld [vmem:[#allocation130_spill] sm:$0xff]  ;;  %v11436_v22 = vld [vmem:[#allocation8_spill] sm:$0xff] }
 0x146   : > { %7258 = vmatprep.subr.bf16.mxu1 %v11383_v40 }
 0x147   : > { %6626 = vmatmul.mubr.msk.f32.gmra.mrb[16].mxu1 %vm11384_vm13, %v11054_v34  ;;  %vm11393_vm13 = vcmp.eq.s32.totalorder %v8471_v0, %v11392_v8  ;;  %v11401_v8 = vld [vmem:[#allocation148_spill] sm:$0xff] }
 0x148   : > { %6149 = vmatmul.mubr.f32.gmra.mrb[18].mxu0 %v11385_v60  ;;  %6628 = vmatprep.mubr.msk.f32.mxu1 %vm11387_vm11, %v11054_v34  ;;  %vm11396_vm11 = vcmp.eq.s32.totalorder %v8471_v0, %v11395_v47  ;;  %v11404_v47 = vld [vmem:[#allocation152_spill] sm:$0xff]  ;;  %v11434_v60 = vld [vmem:[#allocation75_spill] sm:$0xff] }
 0x149   : > { %6151 = vmatprep.mubr.f32.mxu0 %v11388_v14  ;;  %v11432_v14 = vld [vmem:[#allocation7_spill] sm:$0xff] }
 0x14b   : > { %6629 = vmatmul.mubr.msk.f32.gmra.mrb[18].mxu1 %vm11390_vm12, %v11054_v34  ;;  %vm11399_vm12 = vcmp.eq.s32.totalorder %v8471_v0, %v11398_v25  ;;  %v11407_v25 = vld [vmem:[#allocation156_spill] sm:$0xff] }
 0x14c   : > { %6152 = vmatmul.mubr.f32.gmra.mrb[20].mxu0 %v11391_v37  ;;  %6631 = vmatprep.mubr.msk.f32.mxu1 %vm11393_vm13, %v11054_v34  ;;  %v11400_v37 = vld [vmem:[#allocation142_spill] sm:$0xff]  ;;  %vm11402_vm13 = vcmp.eq.s32.totalorder %v8471_v0, %v11401_v8  ;;  %v11410_v8 = vld [vmem:[#allocation160_spill] sm:$0xff] }
 0x14d   : > { %6154 = vmatprep.mubr.f32.mxu0 %v11394_v31  ;;  %v11403_v31 = vld [vmem:[#allocation146_spill] sm:$0xff] }
 0x14f   : > { %6632 = vmatmul.mubr.msk.f32.gmra.mrb[20].mxu1 %vm11396_vm11, %v11054_v34  ;;  %vm11405_vm11 = vcmp.eq.s32.totalorder %v8471_v0, %v11404_v47  ;;  %v11428_v47 = vld [vmem:[#allocation67_spill] sm:$0xff] }
 0x150   : > { %6155 = vmatmul.mubr.f32.gmra.mrb[22].mxu0 %v11397_v45  ;;  %6634 = vmatprep.mubr.msk.f32.mxu1 %vm11399_vm12, %v11054_v34  ;;  %v11406_v45 = vld [vmem:[#allocation150_spill] sm:$0xff]  ;;  %vm11408_vm12 = vcmp.eq.s32.totalorder %v8471_v0, %v11407_v25  ;;  %v11426_v25 = vld [vmem:[#allocation61_spill] sm:$0xff] }
 0x151   : > { %6157 = vmatprep.mubr.f32.mxu0 %v11400_v37  ;;  %v11409_v37 = vld [vmem:[#allocation154_spill] sm:$0xff] }
 0x153   : > { %6635 = vmatmul.mubr.msk.f32.gmra.mrb[22].mxu1 %vm11402_vm13, %v11054_v34  ;;  %vm11411_vm13 = vcmp.eq.s32.totalorder %v8471_v0, %v11410_v8  ;;  %v11417_v8 = vld [vmem:[#allocation168_spill] sm:$0xff] }
 0x154   : > { %6158 = vmatmul.mubr.f32.gmra.mrb[24].mxu0 %v11403_v31  ;;  %6637 = vmatprep.mubr.msk.f32.mxu1 %vm11405_vm11, %v11054_v34  ;;  %v11412_v31 = vld [vmem:[#allocation158_spill] sm:$0xff]  ;;  %vm11413_vm11 = vcmp.eq.s32.totalorder %v8471_v0, %v9485_v13  ;;  %v11427_v13 = vld [vmem:[#allocation59_spill] sm:$0xff] }
 0x155   : > { %6160 = vmatprep.mubr.f32.mxu0 %v11406_v45  ;;  %v11414_v45 = vld [vmem:[#allocation162_spill] sm:$0xff] }
 0x157   : > { %6638 = vmatmul.mubr.msk.f32.gmra.mrb[24].mxu1 %vm11408_vm12, %v11054_v34  ;;  %vm11415_vm12 = vcmp.eq.s32.totalorder %v8471_v0, %v9512_v16  ;;  %v11429_v16 = vld [vmem:[#allocation64_spill] sm:$0xff] }
 0x158   : > { %6161 = vmatmul.mubr.f32.gmra.mrb[26].mxu0 %v11409_v37  ;;  %6640 = vmatprep.mubr.msk.f32.mxu1 %vm11411_vm13, %v11054_v34  ;;  %v11416_v37 = vld [vmem:[#allocation166_spill] sm:$0xff]  ;;  %vm11418_vm13 = vcmp.eq.s32.totalorder %v8471_v0, %v11417_v8  ;;  %v11424_v8 = vld [vmem:[#allocation53_spill] sm:$0xff] }
 0x159   : > { %6163 = vmatprep.mubr.f32.mxu0 %v11412_v31  ;;  %v11423_v31 = vld [vmem:[#allocation57_spill] sm:$0xff] }
 0x15a   : > { %v11486_v0 = vld [vmem:[#allocation137_spill] sm:$0xff] }
 0x15b   : > { %6641 = vmatmul.mubr.msk.f32.gmra.mrb[26].mxu1 %vm11413_vm11, %v11054_v34 }
 0x15c   : > { %6164 = vmatmul.mubr.f32.gmra.mrb[28].mxu0 %v11414_v45  ;;  %6643 = vmatprep.mubr.msk.f32.mxu1 %vm11415_vm12, %v11054_v34  ;;  %v11420_v45 = vld [vmem:[#allocation54_spill] sm:$0xff] }
 0x15d   : > { %6166 = vmatprep.mubr.f32.mxu0 %v11416_v37  ;;  %v11422_v37 = vld [vmem:[#allocation60_spill] sm:$0xff] }
 0x15f   : > { %6644 = vmatmul.mubr.msk.f32.gmra.mrb[28].mxu1 %vm11418_vm13, %v11054_v34 }
 0x160   : > { %6167 = vmatmul.mubr.f32.gmra.mrb[30].mxu0 %v9535_v57  ;;  %6646 = vmatprep.mubr.msk.f32.mxu1 %vm2801_vm14, %v11054_v34  ;;  %v11425_v57 = vld [vmem:[#allocation5_spill] sm:$0xff] }
 0x161   : > { %6201 = vmatprep.mubr.f32.mxu0 %v11420_v45 }
 0x163   : > { %6647 = vmatmul.mubr.msk.f32.gmra.mrb[30].mxu1 %vm2802_vm15, %v11054_v34  ;;  %v11430_v34 = vld [vmem:[#allocation6_spill] sm:$0xff] }
 0x164   : > { %6202 = vmatmul.mubr.f32.vlgmr.msra.gmra.mrb[0].mxu0 %v11422_v37  ;;  %6681 = vmatprep.mubr.f32.mxu1 %v11423_v31 }
 0x165   : > { %6204 = vmatprep.mubr.f32.mxu0 %v11424_v8  ;;  %7068 = vmatpush3.bf16.msra.mxu0 %v11381_v39 }
 0x166   : > { %7070 = vmatprep.subr.bf16.mxu0 %v11425_v57 }
 0x167   : > { %6682 = vmatmul.mubr.f32.vlgmr.msra.gmra.mrb[0].mxu1 %v11426_v25 }
 0x168   : > { %7260 = vmatpush3.bf16.msra.mxu1 %v11383_v40  ;;  %6205 = vmatmul.mubr.f32.gmra.mrb[2].mxu0 %v11427_v13  ;;  %v11489_v40 = vld [vmem:[#allocation147_spill] sm:$0xff] }
 0x169   : > { %6684 = vmatprep.mubr.f32.mxu1 %v11428_v47  ;;  %6207 = vmatprep.mubr.f32.mxu0 %v11429_v16 }
 0x16a   : > { %7072 = vmatpush3.bf16.msra.mxu0 %v11425_v57  ;;  %7262 = vmatprep.subr.bf16.mxu1 %v11430_v34  ;;  %v11485_v57 = vld [vmem:[#allocation139_spill] sm:$0xff] }
 0x16b   : > { %6685 = vmatmul.mubr.f32.gmra.mrb[2].mxu1 %v11431_v21  ;;  %7074 = vmatprep.subr.bf16.mxu0 %v11432_v14 }
 0x16c   : > { %6208 = vmatmul.mubr.f32.gmra.mrb[4].mxu0 %v11433_v18  ;;  %6687 = vmatprep.mubr.f32.mxu1 %v11434_v60 }
 0x16d   : > { %6210 = vmatprep.mubr.f32.mxu0 %v11435_v26  ;;  %7264 = vmatpush3.bf16.msra.mxu1 %v11430_v34 }
 0x16e   : > { %7076 = vmatpush3.bf16.msra.mxu0 %v11432_v14  ;;  %7266 = vmatprep.subr.bf16.mxu1 %v11436_v22  ;;  %v11468_v14 = vld [vmem:[#allocation115_spill] sm:$0xff] }
 0x16f   : > { %6688 = vmatmul.mubr.f32.gmra.mrb[4].mxu1 %v11437_v29  ;;  %7078 = vmatprep.subr.bf16.mxu0 %v11438_v20 }
 0x170   : > { %6211 = vmatmul.mubr.f32.gmra.mrb[6].mxu0 %v11439_v7  ;;  %6690 = vmatprep.mubr.f32.mxu1 %v11440_v19 }
 0x171   : > { %6213 = vmatprep.mubr.f32.mxu0 %v11441_v3  ;;  %7268 = vmatpush3.bf16.msra.mxu1 %v11436_v22  ;;  %v11465_v22 = vld [vmem:[#allocation20_spill] sm:$0xff] }
 0x172   : > { %7080 = vmatpush3.bf16.msra.mxu0 %v11438_v20  ;;  %7270 = vmatprep.subr.bf16.mxu1 %v11442_v4  ;;  %v11463_v20 = vld [vmem:[#allocation19_spill] sm:$0xff]  ;;  %v11466_v56 = vand.u32 4294901760, %v11465_v22  ;;  %v11476_v22 = vld [vmem:[#allocation117_spill] sm:$0xff] }
 0x173   : > { %6691 = vmatmul.mubr.f32.gmra.mrb[6].mxu1 %v11443_v35  ;;  %7082 = vmatprep.subr.bf16.mxu0 %v11444_v55  ;;  %v11464_v61 = vand.u32 4294901760, %v11463_v20 }
 0x174   : > { %6214 = vmatmul.mubr.f32.gmra.mrb[8].mxu0 %v11445_v32  ;;  %6693 = vmatprep.mubr.f32.mxu1 %v11446_v42 }
 0x175   : > { %6216 = vmatprep.mubr.f32.mxu0 %v11447_v28  ;;  %7272 = vmatpush3.bf16.msra.mxu1 %v11442_v4  ;;  %v11457_v4 = vld [vmem:[#allocation101_spill] sm:$0xff]  ;;  %v7097_v24 = vpack.c.bf16 %v11466_v56, %v11464_v61  ;;  %v11477_v56 = vld [vmem:[#allocation123_spill] sm:$0xff] }
 0x176   : > { %7084 = vmatpush3.bf16.msra.mxu0 %v11444_v55  ;;  %7274 = vmatprep.subr.bf16.mxu1 %v11448_v51  ;;  %v11456_v55 = vld [vmem:[#allocation15_spill] sm:$0xff]  ;;  %v11478_v61 = vld [vmem:[#allocation121_spill] sm:$0xff] }
 0x177   : > { %6694 = vmatmul.mubr.f32.gmra.mrb[8].mxu1 %v11449_v58  ;;  %7086 = vmatprep.subr.bf16.mxu0 %v11450_v5 }
 0x178   : > { %6217 = vmatmul.mubr.f32.gmra.mrb[10].mxu0 %v11451_v11  ;;  %6696 = vmatprep.mubr.f32.mxu1 %v11452_v15 }
 0x179   : > { %6219 = vmatprep.mubr.f32.mxu0 %v11453_v6  ;;  %7276 = vmatpush3.bf16.msra.mxu1 %v11448_v51  ;;  %v11461_v51 = vld [vmem:[#allocation111_spill] sm:$0xff] }
 0x17a   : > { %7088 = vmatpush3.bf16.msra.mxu0 %v11450_v5  ;;  %7278 = vmatprep.subr.bf16.mxu1 %v11454_v52  ;;  %v11462_v5 = vld [vmem:[#allocation17_spill] sm:$0xff] }
 0x17b   : > { %6697 = vmatmul.mubr.f32.gmra.mrb[10].mxu1 %v11455_v12  ;;  %7090 = vmatprep.subr.bf16.mxu0 %v11456_v55 }
 0x17c   : > { %6220 = vmatmul.mubr.f32.gmra.mrb[12].mxu0 %v11457_v4  ;;  %6699 = vmatprep.mubr.f32.mxu1 %v11458_v54 }
 0x17d   : > { %6222 = vmatprep.mubr.f32.mxu0 %v11459_v36  ;;  %7280 = vmatpush3.bf16.msra.mxu1 %v11454_v52  ;;  %v11471_v52 = vld [vmem:[#allocation21_spill] sm:$0xff] }
 0x17e   : > { %7092 = vmatpush3.bf16.msra.mxu0 %v11456_v55  ;;  %7282 = vmatprep.subr.bf16.mxu1 %v11460_v50  ;;  %v11470_v55 = vld [vmem:[#allocation18_spill] sm:$0xff]  ;;  %v11472_v34 = vand.u32 4294901760, %v11471_v52  ;;  %v11481_v52 = vld [vmem:[#allocation131_spill] sm:$0xff] }
 0x17f   : > { %6700 = vmatmul.mubr.f32.gmra.mrb[12].mxu1 %v11461_v51  ;;  %7094 = vmatprep.subr.bf16.mxu0 %v11462_v5 }
 0x180   : > { %6223 = vmatmul.mubr.f32.gmra.mrb[14].mxu0 %v11467_v53  ;;  %6702 = vmatprep.mubr.f32.mxu1 %v11468_v14  ;;  %v7289_v20 = vpack.c.bf16 %v11474_v33, %v11472_v34  ;;  %v11483_v34 = vld [vmem:[#allocation135_spill] sm:$0xff]  ;;  %v11484_v33 = vld [vmem:[#allocation133_spill] sm:$0xff] }
 0x181   : > { %6225 = vmatprep.mubr.f32.mxu0 %v11469_v2  ;;  %7284 = vmatpush3.bf16.msra.mxu1 %v11460_v50  ;;  %v11480_v50 = vld [vmem:[#allocation125_spill] sm:$0xff] }
 0x182   : > { %7096 = vmatpush3.bf16.msra.mxu0 %v11462_v5  ;;  %7286 = vmatprep.subr.bf16.mxu1 %v11470_v55  ;;  %v11479_v5 = vld [vmem:[#allocation127_spill] sm:$0xff] }
 0x183   : > { %6703 = vmatmul.mubr.f32.gmra.mrb[14].mxu1 %v11475_v17  ;;  %7098 = vmatprep.subr.bf16.mxu0 %v7097_v24 }
 0x184   : > { %6226 = vmatmul.mubr.f32.gmra.mrb[16].mxu0 %v11476_v22  ;;  %6705 = vmatprep.mubr.f32.mxu1 %v11477_v56 }
 0x185   : > { %6228 = vmatprep.mubr.f32.mxu0 %v11478_v61  ;;  %7288 = vmatpush3.bf16.msra.mxu1 %v11470_v55  ;;  %v11488_v55 = vld [vmem:[#allocation141_spill] sm:$0xff] }
 0x186   : > { %7290 = vmatprep.subr.bf16.mxu1 %v7289_v20 }
 0x187   : > { %6706 = vmatmul.mubr.f32.gmra.mrb[16].mxu1 %v11479_v5  ;;  %v11490_v5 = vld [vmem:[#allocation145_spill] sm:$0xff] }
 0x188   : > { %6229 = vmatmul.mubr.f32.gmra.mrb[18].mxu0 %v11480_v50  ;;  %6708 = vmatprep.mubr.f32.mxu1 %v11481_v52  ;;  %v11491_v50 = vld [vmem:[#allocation151_spill] sm:$0xff]  ;;  %v11492_v52 = vld [vmem:[#allocation149_spill] sm:$0xff] }
 0x189   : > { %6231 = vmatprep.mubr.f32.mxu0 %v11482_v44  ;;  %v11493_v44 = vld [vmem:[#allocation155_spill] sm:$0xff] }
 0x18b   : > { %6709 = vmatmul.mubr.f32.gmra.mrb[18].mxu1 %v11483_v34  ;;  %v11494_v34 = vld [vmem:[#allocation153_spill] sm:$0xff] }
 0x18c   : > { %6232 = vmatmul.mubr.f32.gmra.mrb[20].mxu0 %v11484_v33  ;;  %6711 = vmatprep.mubr.f32.mxu1 %v11485_v57  ;;  %v11495_v33 = vld [vmem:[#allocation159_spill] sm:$0xff]  ;;  %v11496_v57 = vld [vmem:[#allocation157_spill] sm:$0xff] }
 0x18d   : > { %6234 = vmatprep.mubr.f32.mxu0 %v11486_v0  ;;  %v11497_v0 = vld [vmem:[#allocation163_spill] sm:$0xff] }
 0x18f   : > { %6712 = vmatmul.mubr.f32.gmra.mrb[20].mxu1 %v11487_v38  ;;  %v11498_v38 = vld [vmem:[#allocation161_spill] sm:$0xff] }
 0x190   : > { %6235 = vmatmul.mubr.f32.gmra.mrb[22].mxu0 %v11488_v55  ;;  %6714 = vmatprep.mubr.f32.mxu1 %v11489_v40  ;;  %v11499_v55 = vld [vmem:[#allocation167_spill] sm:$0xff]  ;;  %v11500_v40 = vld [vmem:[#allocation165_spill] sm:$0xff] }
 0x191   : > { %6237 = vmatprep.mubr.f32.mxu0 %v11490_v5 }
 0x193   : > { %6715 = vmatmul.mubr.f32.gmra.mrb[22].mxu1 %v11491_v50  ;;  %v11501_v50 = vld [vmem:[#allocation170_spill] sm:$0xff] }
 0x194   : > { %6238 = vmatmul.mubr.f32.gmra.mrb[24].mxu0 %v11492_v52  ;;  %6717 = vmatprep.mubr.f32.mxu1 %v11493_v44  ;;  %v11502_v52 = vld [vmem:[#allocation172_spill] sm:$0xff] }
 0x195   : > { %6240 = vmatprep.mubr.f32.mxu0 %v11494_v34 }
 0x197   : > { %6718 = vmatmul.mubr.f32.gmra.mrb[24].mxu1 %v11495_v33 }
 0x198   : > { %6241 = vmatmul.mubr.f32.gmra.mrb[26].mxu0 %v11496_v57  ;;  %6720 = vmatprep.mubr.f32.mxu1 %v11497_v0  ;;  %v11503_v57 = vand.u32 4294901760, %v11420_v45  ;;  %v11504_v0 = vand.u32 4294901760, %v8395_v9  ;;  %v11510_v9 = vand.u32 4294901760, %v11368_v23  ;;  %v11518_v23 = vand.u32 4294901760, %v11376_v46 }
 0x199   : > { %6243 = vmatprep.mubr.f32.mxu0 %v11498_v38  ;;  %v11505_v38 = vand.u32 4294901760, %v11363_v62 }
 0x19b   : > { %6721 = vmatmul.mubr.f32.gmra.mrb[26].mxu1 %v11499_v55  ;;  %v7101_v55 = vpack.c.bf16 %v11505_v38, %v11504_v0  ;;  %v11511_v0 = vand.u32 4294901760, %v11426_v25  ;;  %v11512_v38 = vand.u32 4294901760, %v11370_v43  ;;  %v11524_v25 = vand.u32 4294901760, %v11433_v18  ;;  %v11532_v18 = vld [vmem:[#allocation35_spill] sm:$0xff] }
 0x19c   : > { %6244 = vmatmul.mubr.f32.gmra.mrb[28].mxu0 %v11500_v40  ;;  %6723 = vmatprep.mubr.f32.mxu1 %v9539_v63  ;;  %v11506_v63 = vand.u32 4294901760, %v11422_v37  ;;  %v11520_v37 = vld [vmem:[#allocation30_spill] sm:$0xff] }
 0x19d   : > { %6246 = vmatprep.mubr.f32.mxu0 %v11501_v50  ;;  %v11507_v50 = vand.u32 4294901760, %v11423_v31 }
 0x19f   : > { %6724 = vmatmul.mubr.f32.gmra.mrb[28].mxu1 %v11502_v52 }
 0x1a0   : > { %6247 = vmatmul.mubr.f32.gmra.mrb[30].mxu0 %v9548_v59  ;;  %6726 = vmatprep.mubr.f32.mxu1 %v9571_v1  ;;  %v11508_v59 = vand.u32 4294901760, %v11424_v8  ;;  %v11522_v8 = vld [vmem:[#allocation31_spill] sm:$0xff] }
 0x1a1   : > { %6281 = vmatprep.mubr.f32.mxu0 %v11503_v57  ;;  %v11509_v57 = vand.u32 4294901760, %v11367_v30  ;;  %v11517_v30 = vand.u32 4294901760, %v11375_v48  ;;  %v11523_v31 = vand.u32 4294901760, %v11522_v8  ;;  %v11527_v48 = vld [vmem:[#allocation32_spill] sm:$0xff]  ;;  %v11550_v8 = vand.u32 4294901760, %v11447_v28 }
 0x1a2   : > { %v11528_v46 = vand.u32 4294901760, %v11527_v48  ;;  %v11560_v28 = vand.u32 4294901760, %v11451_v11  ;;  %v11568_v11 = vand.u32 4294901760, %v11377_v41 }
 0x1a3   : > { %6727 = vmatmul.mubr.f32.gmra.mrb[30].mxu1 %v9569_v49  ;;  %v7293_v45 = vpack.c.bf16 %v11510_v9, %v11509_v57  ;;  %v7297_v43 = vpack.c.bf16 %v11518_v23, %v11517_v30  ;;  %v11531_v9 = vand.u32 4294901760, %v11437_v29  ;;  %v11539_v29 = vld [vmem:[#allocation37_spill] sm:$0xff]  ;;  %v11543_v23 = vand.u32 4294901760, %v11443_v35 }
 0x1a4   : > { %6282 = vmatmul.mubr.f32.vlgmr.msra.gmra.mrb[0].mxu0 %v11506_v63  ;;  %6761 = vmatprep.mubr.f32.mxu1 %v11507_v50  ;;  %v11513_v63 = vand.u32 4294901760, %v11371_v27  ;;  %v11514_v50 = vand.u32 4294901760, %v11427_v13  ;;  %v11519_v27 = vand.u32 4294901760, %v11431_v21  ;;  %v11521_v13 = vand.u32 4294901760, %v11520_v37  ;;  %v11529_v21 = vld [vmem:[#allocation33_spill] sm:$0xff]  ;;  %v11546_v37 = vld [vmem:[#allocation40_spill] sm:$0xff] }
 0x1a5   : > { %6284 = vmatprep.mubr.f32.mxu0 %v11508_v59  ;;  %7100 = vmatpush3.bf16.msra.mxu0 %v7097_v24  ;;  %v11515_v24 = vand.u32 4294901760, %v11428_v47  ;;  %v11516_v59 = vand.u32 4294901760, %v11429_v16  ;;  %v11526_v16 = vand.u32 4294901760, %v11435_v26  ;;  %v11536_v26 = vand.u32 4294901760, %v11439_v7  ;;  %v11544_v7 = vld [vmem:[#allocation39_spill] sm:$0xff]  ;;  %v11551_v35 = vld [vmem:[#allocation41_spill] sm:$0xff] }
 0x1a6   : > { %7102 = vmatprep.subr.bf16.mxu0 %v7101_v55  ;;  %v7105_v62 = vpack.c.bf16 %v11513_v63, %v11512_v38  ;;  %v7109_v47 = vpack.c.bf16 %v11523_v31, %v11521_v13  ;;  %v11534_v38 = vld [vmem:[#allocation36_spill] sm:$0xff]  ;;  %v11552_v31 = vand.u32 4294901760, %v11551_v35 }
 0x1a7   : > { %6762 = vmatmul.mubr.f32.vlgmr.msra.gmra.mrb[0].mxu1 %v11511_v0  ;;  %v11533_v0 = vand.u32 4294901760, %v11532_v18  ;;  %v11565_v18 = vld [vmem:[#allocation46_spill] sm:$0xff] }
 0x1a8   : > { %7292 = vmatpush3.bf16.msra.mxu1 %v7289_v20  ;;  %6285 = vmatmul.mubr.f32.gmra.mrb[2].mxu0 %v11514_v50  ;;  %v11530_v20 = vand.u32 4294901760, %v11529_v21  ;;  %v11540_v50 = vand.u32 4294901760, %v11539_v29  ;;  %v11575_v29 = vld [vmem:[#allocation65_spill] sm:$0xff] }
 0x1a9   : > { %6764 = vmatprep.mubr.f32.mxu1 %v11515_v24  ;;  %6287 = vmatprep.mubr.f32.mxu0 %v11516_v59  ;;  %v11541_v24 = vld [vmem:[#allocation38_spill] sm:$0xff] }
 0x1aa   : > { %7104 = vmatpush3.bf16.msra.mxu0 %v7101_v55  ;;  %7294 = vmatprep.subr.bf16.mxu1 %v7293_v45  ;;  %v11525_v55 = vand.u32 4294901760, %v11434_v60  ;;  %v7301_v57 = vpack.c.bf16 %v11530_v20, %v11528_v46  ;;  %v11535_v60 = vand.u32 4294901760, %v11534_v38  ;;  %v11542_v59 = vand.u32 4294901760, %v11541_v24  ;;  %v11558_v46 = vld [vmem:[#allocation44_spill] sm:$0xff] }
 0x1ab   : > { %6765 = vmatmul.mubr.f32.gmra.mrb[2].mxu1 %v11519_v27  ;;  %7106 = vmatprep.subr.bf16.mxu0 %v7105_v62  ;;  %v11545_v27 = vand.u32 4294901760, %v11544_v7  ;;  %v11561_v20 = vand.u32 4294901760, %v11452_v15  ;;  %v11569_v15 = vand.u32 4294901760, %v11378_v10  ;;  %v11577_v10 = vand.u32 4294901760, %v11461_v51  ;;  %v11590_v7 = vld [vmem:[#allocation131_spill] sm:$0xff] }
 0x1ac   : > { %6288 = vmatmul.mubr.f32.gmra.mrb[4].mxu0 %v11524_v25  ;;  %6767 = vmatprep.mubr.f32.mxu1 %v11525_v55  ;;  %v7113_v63 = vpack.c.bf16 %v11535_v60, %v11533_v0  ;;  %v7305_v30 = vpack.c.bf16 %v11542_v59, %v11540_v50  ;;  %v11566_v0 = vand.u32 4294901760, %v11565_v18  ;;  %v11567_v60 = vand.u32 4294901760, %v11455_v12  ;;  %v11573_v12 = vld [vmem:[#allocation52_spill] sm:$0xff]  ;;  %v11586_v59 = vld [vmem:[#allocation127_spill] sm:$0xff] }
 0x1ad   : > { %6290 = vmatprep.mubr.f32.mxu0 %v11526_v16  ;;  %7296 = vmatpush3.bf16.msra.mxu1 %v7293_v45  ;;  %v11537_v45 = vand.u32 4294901760, %v11440_v19  ;;  %v11547_v19 = vand.u32 4294901760, %v11546_v37  ;;  %v11555_v16 = vand.u32 4294901760, %v11449_v58  ;;  %v11563_v58 = vld [vmem:[#allocation45_spill] sm:$0xff]  ;;  %v11576_v50 = vand.u32 4294901760, %v11575_v29  ;;  %v11633_v29 = vld [vmem:[#allocation50_spill] sm:$0xff] }
 0x1ae   : > { %7108 = vmatpush3.bf16.msra.mxu0 %v7105_v62  ;;  %7298 = vmatprep.subr.bf16.mxu1 %v7297_v43  ;;  %v11538_v62 = vand.u32 4294901760, %v11441_v3  ;;  %v11548_v3 = vand.u32 4294901760, %v11445_v32  ;;  %v11556_v32 = vld [vmem:[#allocation43_spill] sm:$0xff]  ;;  %v11581_v24 = vand.u32 4294901760, %v11475_v17  ;;  %v11582_v51 = vand.u32 4294901760, %v11476_v22  ;;  %v11592_v22 = vld [vmem:[#allocation129_spill] sm:$0xff] }
 0x1af   : > { %6768 = vmatmul.mubr.f32.gmra.mrb[4].mxu1 %v11531_v9  ;;  %7110 = vmatprep.subr.bf16.mxu0 %v7109_v47  ;;  %v7117_v13 = vpack.c.bf16 %v11547_v19, %v11545_v27  ;;  %v11557_v48 = vand.u32 4294901760, %v11556_v32  ;;  %v11564_v9 = vand.u32 4294901760, %v11563_v58  ;;  %v11591_v27 = vand.u32 4294901760, %v11590_v7  ;;  %v11654_v7 = vld [vmem:[#allocation74_spill] sm:$0xff] }
 0x1b0   : > { %6291 = vmatmul.mubr.f32.gmra.mrb[6].mxu0 %v11536_v26  ;;  %6770 = vmatprep.mubr.f32.mxu1 %v11537_v45  ;;  %v11571_v26 = vand.u32 4294901760, %v11458_v54  ;;  %v11572_v45 = vand.u32 4294901760, %v11459_v36  ;;  %v11579_v54 = vand.u32 4294901760, %v11468_v14  ;;  %v11580_v36 = vand.u32 4294901760, %v11469_v2  ;;  %v11585_v2 = vld [vmem:[#allocation4_spill] sm:$0xff] }
 0x1b1   : > { %6293 = vmatprep.mubr.f32.mxu0 %v11538_v62  ;;  %7300 = vmatpush3.bf16.msra.mxu1 %v7297_v43  ;;  %v11549_v43 = vand.u32 4294901760, %v11446_v42  ;;  %v11559_v42 = vand.u32 4294901760, %v11558_v46  ;;  %v7313_v38 = vpack.c.bf16 %v11566_v0, %v11564_v9  ;;  %v11574_v62 = vand.u32 4294901760, %v11573_v12  ;;  %v11609_v46 = vld [vmem:[#allocation151_spill] sm:$0xff]  ;;  %v11616_v9 = vld [vmem:[#allocation157_spill] sm:$0xff] }
 0x1b2   : > { %7112 = vmatpush3.bf16.msra.mxu0 %v7109_v47  ;;  %7302 = vmatprep.subr.bf16.mxu1 %v7301_v57  ;;  %v11553_v47 = vld [vmem:[#allocation42_spill] sm:$0xff]  ;;  %v11584_v14 = vand.u32 4294901760, %v11478_v61  ;;  %v11593_v37 = vand.u32 4294901760, %v11592_v22  ;;  %v11596_v61 = vld [vmem:[#allocation133_spill] sm:$0xff]  ;;  %v11615_v58 = vand.u32 4294901760, %v11495_v33  ;;  %v11617_v18 = vand.u32 4294901760, %v11616_v9 }
 0x1b3   : > { %6771 = vmatmul.mubr.f32.gmra.mrb[6].mxu1 %v11543_v23  ;;  %7114 = vmatprep.subr.bf16.mxu0 %v7113_v63  ;;  %v11554_v25 = vand.u32 4294901760, %v11553_v47  ;;  %v7121_v21 = vpack.c.bf16 %v11559_v42, %v11557_v48  ;;  %v7317_v41 = vpack.c.bf16 %v11576_v50, %v11574_v62  ;;  %v11588_v23 = vld [vmem:[#allocation125_spill] sm:$0xff]  ;;  %v11608_v48 = vand.u32 4294901760, %v11490_v5  ;;  %v11618_v5 = vld [vmem:[#allocation163_spill] sm:$0xff]  ;;  %v11627_v33 = vld [vmem:[#allocation170_spill] sm:$0xff] }
 0x1b4   : > { %6294 = vmatmul.mubr.f32.gmra.mrb[8].mxu0 %v11548_v3  ;;  %6773 = vmatprep.mubr.f32.mxu1 %v11549_v43  ;;  %v11589_v17 = vand.u32 4294901760, %v11588_v23  ;;  %v11598_v3 = vld [vmem:[#allocation139_spill] sm:$0xff]  ;;  %v11610_v42 = vand.u32 4294901760, %v11609_v46  ;;  %v11619_v0 = vand.u32 4294901760, %v11618_v5  ;;  %v11632_v62 = vand.u32 4294901760, %v9571_v1  ;;  %v11635_v50 = vld [vmem:[#allocation56_spill] sm:$0xff] }
 0x1b5   : > { %6296 = vmatprep.mubr.f32.mxu0 %v11550_v8  ;;  %7304 = vmatpush3.bf16.msra.mxu1 %v7301_v57  ;;  %v7309_v55 = vpack.c.bf16 %v11554_v25, %v11552_v31  ;;  %v11562_v57 = vand.u32 4294901760, %v11453_v6  ;;  %v11570_v6 = vand.u32 4294901760, %v11457_v4  ;;  %v11578_v4 = vand.u32 4294901760, %v11467_v53  ;;  %v11600_v8 = vld [vmem:[#allocation137_spill] sm:$0xff]  ;;  %v11602_v31 = vld [vmem:[#allocation143_spill] sm:$0xff]  ;;  %v11656_v22 = vld [vmem:[#allocation78_spill] sm:$0xff] }
 0x1b6   : > { %7116 = vmatpush3.bf16.msra.mxu0 %v7113_v63  ;;  %7306 = vmatprep.subr.bf16.mxu1 %v7305_v30  ;;  %v7125_v63 = vpack.c.bf16 %v11569_v15, %v11568_v11  ;;  %v11583_v53 = vand.u32 4294901760, %v11477_v56  ;;  %v11594_v56 = vld [vmem:[#allocation135_spill] sm:$0xff]  ;;  %v11599_v43 = vand.u32 4294901760, %v11598_v3  ;;  %v11601_v35 = vand.u32 4294901760, %v11600_v8  ;;  %v11604_v25 = vld [vmem:[#allocation141_spill] sm:$0xff]  ;;  %v11662_v3 = vld [vmem:[#allocation86_spill] sm:$0xff] }
 0x1b7   : > { %6774 = vmatmul.mubr.f32.gmra.mrb[8].mxu1 %v11555_v16  ;;  %7118 = vmatprep.subr.bf16.mxu0 %v7117_v13  ;;  %v11595_v19 = vand.u32 4294901760, %v11594_v56  ;;  %v11603_v47 = vand.u32 4294901760, %v11602_v31  ;;  %v11606_v16 = vld [vmem:[#allocation147_spill] sm:$0xff]  ;;  %v11666_v31 = vld [vmem:[#allocation90_spill] sm:$0xff]  ;;  %v11674_v46 = vld [vmem:[#allocation104_spill] sm:$0xff] }
 0x1b8   : > { %6297 = vmatmul.mubr.f32.gmra.mrb[10].mxu0 %v11560_v28  ;;  %6776 = vmatprep.mubr.f32.mxu1 %v11561_v20  ;;  %v11607_v32 = vand.u32 4294901760, %v11606_v16  ;;  %v11613_v20 = vand.u32 4294901760, %v11493_v44  ;;  %v11622_v11 = vld [vmem:[#allocation167_spill] sm:$0xff]  ;;  %v11624_v44 = vand.u32 4294901760, %v11500_v40  ;;  %v11634_v40 = vand.u32 4294901760, %v9569_v49  ;;  %v11670_v16 = vld [vmem:[#allocation100_spill] sm:$0xff] }
 0x1b9   : > { %6299 = vmatprep.mubr.f32.mxu0 %v11562_v57  ;;  %7308 = vmatpush3.bf16.msra.mxu1 %v7305_v30  ;;  %v11587_v30 = vand.u32 4294901760, %v11586_v59  ;;  %v11614_v57 = vand.u32 4294901760, %v11494_v34  ;;  %v11623_v15 = vand.u32 4294901760, %v11622_v11  ;;  %v11625_v34 = vld [vmem:[#allocation173_spill] sm:$0xff]  ;;  %v11642_v49 = vld [vmem:[#allocation55_spill] sm:$0xff]  ;;  %v11650_v59 = vld [vmem:[#allocation70_spill] sm:$0xff] }
 0x1ba   : > { %7120 = vmatpush3.bf16.msra.mxu0 %v7117_v13  ;;  %7310 = vmatprep.subr.bf16.mxu1 %v7309_v55  ;;  %v11597_v13 = vand.u32 4294901760, %v11596_v61  ;;  %v11660_v61 = vld [vmem:[#allocation82_spill] sm:$0xff]  ;;  %v11686_v5 = vld [vmem:[#allocation116_spill] sm:$0xff] }
 0x1bb   : > { %6777 = vmatmul.mubr.f32.gmra.mrb[10].mxu1 %v11567_v60  ;;  %7122 = vmatprep.subr.bf16.mxu0 %v7121_v21  ;;  %v11684_v9 = vld [vmem:[#allocation110_spill] sm:$0xff]  ;;  %v11692_v11 = vld [vmem:[#allocation124_spill] sm:$0xff] }
 0x1bc   : > { %6300 = vmatmul.mubr.f32.gmra.mrb[12].mxu0 %v11570_v6  ;;  %6779 = vmatprep.mubr.f32.mxu1 %v11571_v26  ;;  %v11628_v6 = vand.u32 4294901760, %v11627_v33  ;;  %v11629_v26 = vand.u32 4294901760, %v11502_v52  ;;  %v11639_v52 = vld [vmem:[#allocation49_spill] sm:$0xff]  ;;  %v11700_v33 = vld [vmem:[#allocation130_spill] sm:$0xff] }
 0x1bd   : > { %6302 = vmatprep.mubr.f32.mxu0 %v11572_v45  ;;  %7312 = vmatpush3.bf16.msra.mxu1 %v7309_v55  ;;  %v11605_v55 = vand.u32 4294901760, %v11604_v25  ;;  %v11630_v45 = vld [vmem:[#allocation176_spill] sm:$0xff]  ;;  %v11668_v25 = vld [vmem:[#allocation94_spill] sm:$0xff] }
 0x1be   : > { %7124 = vmatpush3.bf16.msra.mxu0 %v7121_v21  ;;  %7314 = vmatprep.subr.bf16.mxu1 %v7313_v38  ;;  %v11611_v21 = vld [vmem:[#allocation149_spill] sm:$0xff]  ;;  %v11631_v12 = vand.u32 4294901760, %v11630_v45  ;;  %v11704_v45 = vld [vmem:[#allocation140_spill] sm:$0xff] }
 0x1bf   : > { %6780 = vmatmul.mubr.f32.gmra.mrb[12].mxu1 %v11577_v10  ;;  %7126 = vmatprep.subr.bf16.mxu0 %v7125_v63  ;;  %v11612_v28 = vand.u32 4294901760, %v11611_v21  ;;  %v11637_v10 = vld [vmem:[#allocation34_spill] sm:$0xff]  ;;  %v11677_v21 = vld [vmem:[#allocation16_spill] sm:$0xff] }
 0x1c0   : > { %6303 = vmatmul.mubr.f32.gmra.mrb[14].mxu0 %v11578_v4  ;;  %6782 = vmatprep.mubr.f32.mxu1 %v11579_v54  ;;  %v11640_v54 = vld [vmem:[#allocation5_spill] sm:$0xff]  ;;  %vm11671_vm11 = vcmp.eq.s32.totalorder %v11637_v10, %v11670_v16  ;;  %vm11675_vm12 = vcmp.eq.s32.totalorder %v11637_v10, %v11674_v46  ;;  %v10426_v4 = vld [vmem:[%s10670_s5] ss:$0 sm:$0xff] }
 0x1c1   : > { %6305 = vmatprep.mubr.f32.mxu0 %v11580_v36  ;;  %7316 = vmatpush3.bf16.msra.mxu1 %v7313_v38  ;;  %v11620_v38 = vld [vmem:[#allocation161_spill] sm:$0xff] }
 0x1c2   : > { %7128 = vmatpush3.bf16.msra.mxu0 %v7125_v63  ;;  %7318 = vmatprep.subr.bf16.mxu1 %v7317_v41  ;;  %v11621_v60 = vand.u32 4294901760, %v11620_v38  ;;  %v11626_v63 = vand.u32 4294901760, %v11625_v34  ;;  %v11689_v38 = vld [vmem:[#allocation120_spill] sm:$0xff]  ;;  %v11697_v34 = vld [vmem:[#allocation126_spill] sm:$0xff] }
 0x1c3   : > { %6783 = vmatmul.mubr.f32.gmra.mrb[14].mxu1 %v11581_v24  ;;  %7130 = vmatprep.subr.bf16.mxu0 %v11381_v39  ;;  %v11644_v24 = vld [vmem:[#allocation62_spill] sm:$0xff] }
 0x1c4   : > { %6306 = vmatmul.mubr.f32.gmra.mrb[16].mxu0 %v11582_v51  ;;  %6785 = vmatprep.mubr.f32.mxu1 %v11583_v53  ;;  %v11647_v53 = vld [vmem:[#allocation7_spill] sm:$0xff] }
 0x1c5   : > { %6308 = vmatprep.mubr.f32.mxu0 %v11584_v14  ;;  %7320 = vmatpush3.bf16.msra.mxu1 %v7317_v41  ;;  %v11636_v41 = vmov 1.0   ;;  %v11648_v14 = vld [vmem:[#allocation66_spill] sm:$0xff] }
 0x1c6   : > { %7322 = vmatprep.subr.bf16.mxu1 %v11585_v2 }
 0x1c7   : > { %6786 = vmatmul.mubr.f32.gmra.mrb[16].mxu1 %v11587_v30  ;;  %v11651_v30 = vld [vmem:[#allocation8_spill] sm:$0xff] }
 0x1c8   : > { %6309 = vmatmul.mubr.f32.gmra.mrb[18].mxu0 %v11589_v17  ;;  %6788 = vmatprep.mubr.f32.mxu1 %v11591_v27  ;;  %v11653_v17 = vld [vmem:[#allocation9_spill] sm:$0xff] }
 0x1c9   : > { %6311 = vmatprep.mubr.f32.mxu0 %v11593_v37  ;;  %v11657_v37 = vld [vmem:[#allocation10_spill] sm:$0xff] }
 0x1cb   : > { %6789 = vmatmul.mubr.f32.gmra.mrb[18].mxu1 %v11595_v19  ;;  %v11659_v19 = vld [vmem:[#allocation11_spill] sm:$0xff] }
 0x1cc   : > { %6312 = vmatmul.mubr.f32.gmra.mrb[20].mxu0 %v11597_v13  ;;  %6791 = vmatprep.mubr.f32.mxu1 %v11599_v43  ;;  %v11663_v43 = vld [vmem:[#allocation12_spill] sm:$0xff] }
 0x1cd   : > { %6314 = vmatprep.mubr.f32.mxu0 %v11601_v35  ;;  %v11665_v35 = vld [vmem:[#allocation13_spill] sm:$0xff] }
 0x1cf   : > { %6792 = vmatmul.mubr.f32.gmra.mrb[20].mxu1 %v11603_v47 }
 0x1d0   : > { %6315 = vmatmul.mubr.f32.gmra.mrb[22].mxu0 %v11605_v55  ;;  %6794 = vmatprep.mubr.f32.mxu1 %v11607_v32  ;;  %v11669_v55 = vld [vmem:[#allocation14_spill] sm:$0xff]  ;;  %v11672_v32 = vld [vmem:[#allocation15_spill] sm:$0xff] }
 0x1d1   : > { %6317 = vmatprep.mubr.f32.mxu0 %v11608_v48  ;;  %v11673_v48 = vld [vmem:[#allocation98_spill] sm:$0xff] }
 0x1d3   : > { %6795 = vmatmul.mubr.f32.gmra.mrb[22].mxu1 %v11610_v42  ;;  %v11676_v42 = vld [vmem:[#allocation102_spill] sm:$0xff] }
 0x1d4   : > { %6318 = vmatmul.mubr.f32.gmra.mrb[24].mxu0 %v11612_v28  ;;  %6797 = vmatprep.mubr.f32.mxu1 %v11613_v20  ;;  %v11678_v28 = vld [vmem:[#allocation108_spill] sm:$0xff]  ;;  %v11680_v20 = vld [vmem:[#allocation17_spill] sm:$0xff] }
 0x1d5   : > { %6320 = vmatprep.mubr.f32.mxu0 %v11614_v57  ;;  %vm11679_vm13 = vcmp.eq.s32.totalorder %v11637_v10, %v11678_v28  ;;  %v11681_v57 = vld [vmem:[#allocation106_spill] sm:$0xff] }
 0x1d7   : > { %6798 = vmatmul.mubr.f32.gmra.mrb[24].mxu1 %v11615_v58  ;;  %v11682_v58 = vld [vmem:[#allocation112_spill] sm:$0xff] }
 0x1d8   : > { %6321 = vmatmul.mubr.f32.gmra.mrb[26].mxu0 %v11617_v18  ;;  %6800 = vmatprep.mubr.f32.mxu1 %v11619_v0  ;;  %v11685_v18 = vld [vmem:[#allocation18_spill] sm:$0xff] }
 0x1d9   : > { %6323 = vmatprep.mubr.f32.mxu0 %v11621_v60  ;;  %v11688_v0 = vld [vmem:[#allocation114_spill] sm:$0xff] }
 0x1da   : > { %v11691_v60 = vld [vmem:[#allocation118_spill] sm:$0xff] }
 0x1db   : > { %6801 = vmatmul.mubr.f32.gmra.mrb[26].mxu1 %v11623_v15  ;;  %v11694_v15 = vld [vmem:[#allocation122_spill] sm:$0xff] }
 0x1dc   : > { %6324 = vmatmul.mubr.f32.gmra.mrb[28].mxu0 %v11624_v44  ;;  %6803 = vmatprep.mubr.f32.mxu1 %v11626_v63  ;;  %v11695_v44 = vld [vmem:[#allocation128_spill] sm:$0xff] }
 0x1dd   : > { %6326 = vmatprep.mubr.f32.mxu0 %v11628_v6  ;;  %v11698_v63 = vld [vmem:[#allocation132_spill] sm:$0xff] }
 0x1de   : > { %v11701_v6 = vld [vmem:[#allocation136_spill] sm:$0xff] }
 0x1df   : > { %6804 = vmatmul.mubr.f32.gmra.mrb[28].mxu1 %v11629_v26  ;;  %v11703_v26 = vld [vmem:[#allocation134_spill] sm:$0xff] }
 0x1e0   : > { %6327 = vmatmul.mubr.f32.gmra.mrb[30].mxu0 %v11631_v12  ;;  %6806 = vmatprep.mubr.f32.mxu1 %v11632_v62  ;;  %v11706_v12 = vld [vmem:[#allocation138_spill] sm:$0xff]  ;;  %v11707_v62 = vld [vmem:[#allocation144_spill] sm:$0xff] }
 0x1e1   : > { %6361 = vmatprep.mubr.f32.mxu0 %v11633_v29 }
 0x1e3   : > { %6807 = vmatmul.mubr.f32.gmra.mrb[30].mxu1 %v11634_v40  ;;  %v11709_v40 = vld [vmem:[#allocation142_spill] sm:$0xff] }
 0x1e4   : > { %6362 = vmatmul.mubr.f32.vlgmr.msra.gmra.mrb[0].mxu0 %v11635_v50  ;;  %6841 = vmatprep.mubr.msk.f32.mxu1 %vm2771_vm0, %v11636_v41 }
 0x1e5   : > { %6364 = vmatprep.mubr.f32.mxu0 %v11639_v52  ;;  %7132 = vmatpush3.bf16.msra.mxu0 %v11381_v39  ;;  %v11645_v39 = vld [vmem:[#allocation6_spill] sm:$0xff] }
 0x1e6   : > { %7134 = vmatprep.subr.bf16.mxu0 %v11640_v54 }
 0x1e7   : > { %6842 = vmatmul.mubr.msk.f32.vlgmr.msra.gmra.mrb[0].mxu1 %vm2772_vm1, %v11636_v41 }
 0x1e8   : > { %7324 = vmatpush3.bf16.msra.mxu1 %v11585_v2  ;;  %6365 = vmatmul.mubr.f32.gmra.mrb[2].mxu0 %v11642_v49 }
 0x1e9   : > { %6844 = vmatprep.mubr.msk.f32.mxu1 %vm2773_vm2, %v11636_v41  ;;  %6367 = vmatprep.mubr.f32.mxu0 %v11644_v24 }
 0x1ea   : > { %7136 = vmatpush3.bf16.msra.mxu0 %v11640_v54  ;;  %7326 = vmatprep.subr.bf16.mxu1 %v11645_v39  ;;  %v11710_v54 = vld [vmem:[#allocation148_spill] sm:$0xff] }
 0x1eb   : > { %6845 = vmatmul.mubr.msk.f32.gmra.mrb[2].mxu1 %vm2774_vm3, %v11636_v41  ;;  %7138 = vmatprep.subr.bf16.mxu0 %v11647_v53 }
 0x1ec   : > { %6368 = vmatmul.mubr.f32.gmra.mrb[4].mxu0 %v11648_v14  ;;  %6847 = vmatprep.mubr.msk.f32.mxu1 %vm2775_vm4, %v11636_v41 }
 0x1ed   : > { %6370 = vmatprep.mubr.f32.mxu0 %v11650_v59  ;;  %7328 = vmatpush3.bf16.msra.mxu1 %v11645_v39  ;;  %v11712_v39 = vld [vmem:[#allocation146_spill] sm:$0xff] }
 0x1ee   : > { %7140 = vmatpush3.bf16.msra.mxu0 %v11647_v53  ;;  %7330 = vmatprep.subr.bf16.mxu1 %v11651_v30  ;;  %v11713_v53 = vld [vmem:[#allocation152_spill] sm:$0xff] }
 0x1ef   : > { %6848 = vmatmul.mubr.msk.f32.gmra.mrb[4].mxu1 %vm2776_vm5, %v11636_v41  ;;  %7142 = vmatprep.subr.bf16.mxu0 %v11653_v17 }
 0x1f0   : > { %6371 = vmatmul.mubr.f32.gmra.mrb[6].mxu0 %v11654_v7  ;;  %6850 = vmatprep.mubr.msk.f32.mxu1 %vm2777_vm6, %v11636_v41 }
 0x1f1   : > { %6373 = vmatprep.mubr.f32.mxu0 %v11656_v22  ;;  %7332 = vmatpush3.bf16.msra.mxu1 %v11651_v30  ;;  %v11715_v30 = vld [vmem:[#allocation150_spill] sm:$0xff] }
 0x1f2   : > { %7144 = vmatpush3.bf16.msra.mxu0 %v11653_v17  ;;  %7334 = vmatprep.subr.bf16.mxu1 %v11657_v37  ;;  %v11716_v17 = vld [vmem:[#allocation156_spill] sm:$0xff] }
 0x1f3   : > { %6851 = vmatmul.mubr.msk.f32.gmra.mrb[6].mxu1 %vm2778_vm7, %v11636_v41  ;;  %7146 = vmatprep.subr.bf16.mxu0 %v11659_v19 }
 0x1f4   : > { %6374 = vmatmul.mubr.f32.gmra.mrb[8].mxu0 %v11660_v61  ;;  %6853 = vmatprep.mubr.msk.f32.mxu1 %vm2779_vm8, %v11636_v41 }
 0x1f5   : > { %6376 = vmatprep.mubr.f32.mxu0 %v11662_v3  ;;  %7336 = vmatpush3.bf16.msra.mxu1 %v11657_v37  ;;  %v11718_v37 = vld [vmem:[#allocation154_spill] sm:$0xff] }
 0x1f6   : > { %7148 = vmatpush3.bf16.msra.mxu0 %v11659_v19  ;;  %7338 = vmatprep.subr.bf16.mxu1 %v11663_v43  ;;  %v11719_v19 = vld [vmem:[#allocation160_spill] sm:$0xff] }
 0x1f7   : > { %6854 = vmatmul.mubr.msk.f32.gmra.mrb[8].mxu1 %vm2780_vm9, %v11636_v41  ;;  %7150 = vmatprep.subr.bf16.mxu0 %v11665_v35 }
 0x1f8   : > { %6377 = vmatmul.mubr.f32.gmra.mrb[10].mxu0 %v11666_v31  ;;  %6856 = vmatprep.mubr.msk.f32.mxu1 %vm2781_vm10, %v11636_v41 }
 0x1f9   : > { %6379 = vmatprep.mubr.f32.mxu0 %v11668_v25  ;;  %7340 = vmatpush3.bf16.msra.mxu1 %v11663_v43  ;;  %v11721_v43 = vld [vmem:[#allocation158_spill] sm:$0xff] }
 0x1fa   : > { %7152 = vmatpush3.bf16.msra.mxu0 %v11665_v35  ;;  %7342 = vmatprep.subr.bf16.mxu1 %v11669_v55  ;;  %v11722_v35 = vld [vmem:[#allocation164_spill] sm:$0xff] }
 0x1fb   : > { %6857 = vmatmul.mubr.msk.f32.gmra.mrb[10].mxu1 %vm11671_vm11, %v11636_v41  ;;  %7154 = vmatprep.subr.bf16.mxu0 %v11672_v32  ;;  %vm11683_vm11 = vcmp.eq.s32.totalorder %v11637_v10, %v11682_v58 }
 0x1fc   : > { %6380 = vmatmul.mubr.f32.gmra.mrb[12].mxu0 %v11673_v48  ;;  %6859 = vmatprep.mubr.msk.f32.mxu1 %vm11675_vm12, %v11636_v41  ;;  %vm11687_vm12 = vcmp.eq.s32.totalorder %v11637_v10, %v11686_v5 }
 0x1fd   : > { %6382 = vmatprep.mubr.f32.mxu0 %v11676_v42  ;;  %7344 = vmatpush3.bf16.msra.mxu1 %v11669_v55  ;;  %v11724_v55 = vld [vmem:[#allocation162_spill] sm:$0xff] }
 0x1fe   : > { %7156 = vmatpush3.bf16.msra.mxu0 %v11672_v32  ;;  %7346 = vmatprep.subr.bf16.mxu1 %v11677_v21  ;;  %v11725_v32 = vld [vmem:[#allocation169_spill] sm:$0xff] }
 0x1ff   : > { %6860 = vmatmul.mubr.msk.f32.gmra.mrb[12].mxu1 %vm11679_vm13, %v11636_v41  ;;  %7158 = vmatprep.subr.bf16.mxu0 %v11680_v20  ;;  %vm11690_vm13 = vcmp.eq.s32.totalorder %v11637_v10, %v11689_v38 }
 0x200   : > { %6383 = vmatmul.mubr.f32.gmra.mrb[14].mxu0 %v11681_v57  ;;  %6862 = vmatprep.mubr.msk.f32.mxu1 %vm11683_vm11, %v11636_v41  ;;  %vm11693_vm11 = vcmp.eq.s32.totalorder %v11637_v10, %v11692_v11 }
 0x201   : > { %6385 = vmatprep.mubr.f32.mxu0 %v11684_v9  ;;  %7348 = vmatpush3.bf16.msra.mxu1 %v11677_v21  ;;  %v11727_v21 = vld [vmem:[#allocation166_spill] sm:$0xff] }
 0x202   : > { %7160 = vmatpush3.bf16.msra.mxu0 %v11680_v20  ;;  %7350 = vmatprep.subr.bf16.mxu1 %v11685_v18  ;;  %v11728_v20 = vld [vmem:[#allocation168_spill] sm:$0xff] }
 0x203   : > { %6863 = vmatmul.mubr.msk.f32.gmra.mrb[14].mxu1 %vm11687_vm12, %v11636_v41  ;;  %vm11696_vm12 = vcmp.eq.s32.totalorder %v11637_v10, %v11695_v44 }
 0x204   : > { %6386 = vmatmul.mubr.f32.gmra.mrb[16].mxu0 %v11688_v0  ;;  %6865 = vmatprep.mubr.msk.f32.mxu1 %vm11690_vm13, %v11636_v41  ;;  %vm11699_vm13 = vcmp.eq.s32.totalorder %v11637_v10, %v11698_v63 }
 0x205   : > { %6388 = vmatprep.mubr.f32.mxu0 %v11691_v60  ;;  %7352 = vmatpush3.bf16.msra.mxu1 %v11685_v18  ;;  %v11730_v18 = vld [vmem:[#allocation171_spill] sm:$0xff] }
 0x207   : > { %6866 = vmatmul.mubr.msk.f32.gmra.mrb[16].mxu1 %vm11693_vm11, %v11636_v41  ;;  %vm11702_vm11 = vcmp.eq.s32.totalorder %v11637_v10, %v11701_v6 }
 0x208   : > { %6389 = vmatmul.mubr.f32.gmra.mrb[18].mxu0 %v11694_v15  ;;  %6868 = vmatprep.mubr.msk.f32.mxu1 %vm11696_vm12, %v11636_v41  ;;  %vm11705_vm12 = vcmp.eq.s32.totalorder %v11637_v10, %v11704_v45 }
 0x209   : > { %6391 = vmatprep.mubr.f32.mxu0 %v11697_v34 }
 0x20b   : > { %6869 = vmatmul.mubr.msk.f32.gmra.mrb[18].mxu1 %vm11699_vm13, %v11636_v41  ;;  %vm11708_vm13 = vcmp.eq.s32.totalorder %v11637_v10, %v11707_v62 }
 0x20c   : > { %6392 = vmatmul.mubr.f32.gmra.mrb[20].mxu0 %v11700_v33  ;;  %6871 = vmatprep.mubr.msk.f32.mxu1 %vm11702_vm11, %v11636_v41  ;;  %vm11711_vm11 = vcmp.eq.s32.totalorder %v11637_v10, %v11710_v54 }
 0x20d   : > { %6394 = vmatprep.mubr.f32.mxu0 %v11703_v26 }
 0x20f   : > { %6872 = vmatmul.mubr.msk.f32.gmra.mrb[20].mxu1 %vm11705_vm12, %v11636_v41  ;;  %vm11714_vm12 = vcmp.eq.s32.totalorder %v11637_v10, %v11713_v53 }
 0x210   : > { %6395 = vmatmul.mubr.f32.gmra.mrb[22].mxu0 %v11706_v12  ;;  %6874 = vmatprep.mubr.msk.f32.mxu1 %vm11708_vm13, %v11636_v41  ;;  %vm11717_vm13 = vcmp.eq.s32.totalorder %v11637_v10, %v11716_v17 }
 0x211   : > { %6397 = vmatprep.mubr.f32.mxu0 %v11709_v40 }
 0x213   : > { %6875 = vmatmul.mubr.msk.f32.gmra.mrb[22].mxu1 %vm11711_vm11, %v11636_v41  ;;  %vm11720_vm11 = vcmp.eq.s32.totalorder %v11637_v10, %v11719_v19 }
 0x214   : > { %6398 = vmatmul.mubr.f32.gmra.mrb[24].mxu0 %v11712_v39  ;;  %6877 = vmatprep.mubr.msk.f32.mxu1 %vm11714_vm12, %v11636_v41  ;;  %vm11723_vm12 = vcmp.eq.s32.totalorder %v11637_v10, %v11722_v35 }
 0x215   : > { %6400 = vmatprep.mubr.f32.mxu0 %v11715_v30 }
 0x217   : > { %6878 = vmatmul.mubr.msk.f32.gmra.mrb[24].mxu1 %vm11717_vm13, %v11636_v41  ;;  %vm11726_vm13 = vcmp.eq.s32.totalorder %v11637_v10, %v11725_v32 }
 0x218   : > { %6401 = vmatmul.mubr.f32.gmra.mrb[26].mxu0 %v11718_v37  ;;  %6880 = vmatprep.mubr.msk.f32.mxu1 %vm11720_vm11, %v11636_v41  ;;  %vm11729_vm11 = vcmp.eq.s32.totalorder %v11637_v10, %v11728_v20 }
 0x219   : > { %6403 = vmatprep.mubr.f32.mxu0 %v11721_v43 }
 0x21b   : > { %6881 = vmatmul.mubr.msk.f32.gmra.mrb[26].mxu1 %vm11723_vm12, %v11636_v41  ;;  %vm11744_vm12 = vcmp.eq.s32.totalorder %v11637_v10, %v11707_v62 }
 0x21c   : > { %6404 = vmatmul.mubr.f32.gmra.mrb[28].mxu0 %v11724_v55  ;;  %6883 = vmatprep.mubr.msk.f32.mxu1 %vm11726_vm13, %v11636_v41  ;;  %vm11745_vm13 = vcmp.eq.s32.totalorder %v11637_v10, %v11710_v54 }
 0x21d   : > { %6406 = vmatprep.mubr.f32.mxu0 %v11727_v21 }
 0x21f   : > { %6884 = vmatmul.mubr.msk.f32.gmra.mrb[28].mxu1 %vm11729_vm11, %v11636_v41  ;;  %vm11746_vm11 = vcmp.eq.s32.totalorder %v11637_v10, %v11713_v53 }
 0x220   : > { %6407 = vmatmul.mubr.f32.gmra.mrb[30].mxu0 %v11730_v18  ;;  %6886 = vmatprep.mubr.msk.f32.mxu1 %vm2801_vm14, %v11636_v41 }
 0x221   : > { %6441 = vmatprep.mubr.f32.mxu0 %v11633_v29  ;;  %v11749_v29 = vld [vmem:[#allocation164_spill] sm:$0xff] }
 0x223   : > { %6887 = vmatmul.mubr.msk.f32.gmra.mrb[30].mxu1 %vm2802_vm15, %v11636_v41 }
 0x224   : > { %6442 = vmatmul.mubr.f32.vlgmr.msra.gmra.mrb[0].mxu0 %v11635_v50  ;;  %6921 = vmatprep.mubr.msk.f32.mxu1 %vm2771_vm0, %v11636_v41  ;;  %vm11733_vm0 = vcmp.eq.s32.totalorder %v11637_v10, %v11670_v16  ;;  %v11751_v50 = vld [vmem:[#allocation169_spill] sm:$0xff] }
 0x225   : > { %6444 = vmatprep.mubr.f32.mxu0 %v11639_v52 }
 0x227   : > { %6922 = vmatmul.mubr.msk.f32.vlgmr.msra.gmra.mrb[0].mxu1 %vm2772_vm1, %v11636_v41  ;;  %vm11734_vm1 = vcmp.eq.s32.totalorder %v11637_v10, %v11674_v46 }
 0x228   : > { %6445 = vmatmul.mubr.f32.gmra.mrb[2].mxu0 %v11642_v49  ;;  %6924 = vmatprep.mubr.msk.f32.mxu1 %vm2773_vm2, %v11636_v41  ;;  %vm11735_vm2 = vcmp.eq.s32.totalorder %v11637_v10, %v11678_v28 }
 0x229   : > { %6447 = vmatprep.mubr.f32.mxu0 %v11644_v24 }
 0x22b   : > { %6925 = vmatmul.mubr.msk.f32.gmra.mrb[2].mxu1 %vm2774_vm3, %v11636_v41  ;;  %vm11736_vm3 = vcmp.eq.s32.totalorder %v11637_v10, %v11682_v58 }
 0x22c   : > { %6448 = vmatmul.mubr.f32.gmra.mrb[4].mxu0 %v11648_v14  ;;  %6927 = vmatprep.mubr.msk.f32.mxu1 %vm2775_vm4, %v11636_v41  ;;  %vm11737_vm4 = vcmp.eq.s32.totalorder %v11637_v10, %v11686_v5 }
 0x22d   : > { %6450 = vmatprep.mubr.f32.mxu0 %v11650_v59 }
 0x22f   : > { %6928 = vmatmul.mubr.msk.f32.gmra.mrb[4].mxu1 %vm2776_vm5, %v11636_v41  ;;  %vm11738_vm5 = vcmp.eq.s32.totalorder %v11637_v10, %v11689_v38 }
 0x230   : > { %6451 = vmatmul.mubr.f32.gmra.mrb[6].mxu0 %v11654_v7  ;;  %6930 = vmatprep.mubr.msk.f32.mxu1 %vm2777_vm6, %v11636_v41  ;;  %vm11739_vm6 = vcmp.eq.s32.totalorder %v11637_v10, %v11692_v11 }
 0x231   : > { %6453 = vmatprep.mubr.f32.mxu0 %v11656_v22 }
 0x233   : > { %6931 = vmatmul.mubr.msk.f32.gmra.mrb[6].mxu1 %vm2778_vm7, %v11636_v41  ;;  %vm11740_vm7 = vcmp.eq.s32.totalorder %v11637_v10, %v11695_v44 }
 0x234   : > { %6454 = vmatmul.mubr.f32.gmra.mrb[8].mxu0 %v11660_v61  ;;  %6933 = vmatprep.mubr.msk.f32.mxu1 %vm2779_vm8, %v11636_v41  ;;  %vm11741_vm8 = vcmp.eq.s32.totalorder %v11637_v10, %v11698_v63 }
 0x235   : > { %6456 = vmatprep.mubr.f32.mxu0 %v11662_v3 }
 0x237   : > { %6934 = vmatmul.mubr.msk.f32.gmra.mrb[8].mxu1 %vm2780_vm9, %v11636_v41  ;;  %vm11742_vm9 = vcmp.eq.s32.totalorder %v11637_v10, %v11701_v6 }
 0x238   : > { %6457 = vmatmul.mubr.f32.gmra.mrb[10].mxu0 %v11666_v31  ;;  %6936 = vmatprep.mubr.msk.f32.mxu1 %vm2781_vm10, %v11636_v41  ;;  %vm11743_vm10 = vcmp.eq.s32.totalorder %v11637_v10, %v11704_v45 }
 0x239   : > { %6459 = vmatprep.mubr.f32.mxu0 %v11668_v25 }
 0x23b   : > { %6937 = vmatmul.mubr.msk.f32.gmra.mrb[10].mxu1 %vm11733_vm0, %v11636_v41  ;;  %vm11747_vm0 = vcmp.eq.s32.totalorder %v11637_v10, %v11716_v17 }
 0x23c   : > { %6460 = vmatmul.mubr.f32.gmra.mrb[12].mxu0 %v11673_v48  ;;  %6939 = vmatprep.mubr.msk.f32.mxu1 %vm11734_vm1, %v11636_v41  ;;  %vm11748_vm1 = vcmp.eq.s32.totalorder %v11637_v10, %v11719_v19 }
 0x23d   : > { %6462 = vmatprep.mubr.f32.mxu0 %v11676_v42 }
 0x23f   : > { %6940 = vmatmul.mubr.msk.f32.gmra.mrb[12].mxu1 %vm11735_vm2, %v11636_v41  ;;  %vm11750_vm2 = vcmp.eq.s32.totalorder %v11637_v10, %v11749_v29 }
 0x240   : > { %6463 = vmatmul.mubr.f32.gmra.mrb[14].mxu0 %v11681_v57  ;;  %6942 = vmatprep.mubr.msk.f32.mxu1 %vm11736_vm3, %v11636_v41  ;;  %vm11752_vm3 = vcmp.eq.s32.totalorder %v11637_v10, %v11751_v50 }
 0x241   : > { %6465 = vmatprep.mubr.f32.mxu0 %v11684_v9 }
 0x243   : > { %6943 = vmatmul.mubr.msk.f32.gmra.mrb[14].mxu1 %vm11737_vm4, %v11636_v41  ;;  %vm11753_vm4 = vcmp.eq.s32.totalorder %v11637_v10, %v11728_v20 }
 0x244   : > { %6466 = vmatmul.mubr.f32.gmra.mrb[16].mxu0 %v11688_v0  ;;  %6945 = vmatprep.mubr.msk.f32.mxu1 %vm11738_vm5, %v11636_v41 }
 0x245   : > { %6468 = vmatprep.mubr.f32.mxu0 %v11691_v60 }
 0x247   : > { %6946 = vmatmul.mubr.msk.f32.gmra.mrb[16].mxu1 %vm11739_vm6, %v11636_v41 }
 0x248   : > { %6469 = vmatmul.mubr.f32.gmra.mrb[18].mxu0 %v11694_v15  ;;  %6948 = vmatprep.mubr.msk.f32.mxu1 %vm11740_vm7, %v11636_v41 }
 0x249   : > { %6471 = vmatprep.mubr.f32.mxu0 %v11697_v34 }
 0x24b   : > { %6949 = vmatmul.mubr.msk.f32.gmra.mrb[18].mxu1 %vm11741_vm8, %v11636_v41 }
 0x24c   : > { %6472 = vmatmul.mubr.f32.gmra.mrb[20].mxu0 %v11700_v33  ;;  %6951 = vmatprep.mubr.msk.f32.mxu1 %vm11742_vm9, %v11636_v41 }
 0x24d   : > { %6474 = vmatprep.mubr.f32.mxu0 %v11703_v26 }
 0x24f   : > { %6952 = vmatmul.mubr.msk.f32.gmra.mrb[20].mxu1 %vm11743_vm10, %v11636_v41 }
 0x250   : > { %6475 = vmatmul.mubr.f32.gmra.mrb[22].mxu0 %v11706_v12  ;;  %6954 = vmatprep.mubr.msk.f32.mxu1 %vm11744_vm12, %v11636_v41 }
 0x251   : > { %6477 = vmatprep.mubr.f32.mxu0 %v11709_v40 }
 0x253   : > { %6955 = vmatmul.mubr.msk.f32.gmra.mrb[22].mxu1 %vm11745_vm13, %v11636_v41 }
 0x254   : > { %6478 = vmatmul.mubr.f32.gmra.mrb[24].mxu0 %v11712_v39  ;;  %6957 = vmatprep.mubr.msk.f32.mxu1 %vm11746_vm11, %v11636_v41 }
 0x255   : > { %6480 = vmatprep.mubr.f32.mxu0 %v11715_v30 }
 0x257   : > { %6958 = vmatmul.mubr.msk.f32.gmra.mrb[24].mxu1 %vm11747_vm0, %v11636_v41 }
 0x258   : > { %6481 = vmatmul.mubr.f32.gmra.mrb[26].mxu0 %v11718_v37  ;;  %6960 = vmatprep.mubr.msk.f32.mxu1 %vm11748_vm1, %v11636_v41 }
 0x259   : > { %6483 = vmatprep.mubr.f32.mxu0 %v11721_v43 }
 0x25b   : > { %6961 = vmatmul.mubr.msk.f32.gmra.mrb[26].mxu1 %vm11750_vm2, %v11636_v41 }
 0x25c   : > { %6484 = vmatmul.mubr.f32.gmra.mrb[28].mxu0 %v11724_v55  ;;  %6963 = vmatprep.mubr.msk.f32.mxu1 %vm11752_vm3, %v11636_v41 }
 0x25d   : > { %6486 = vmatprep.mubr.f32.mxu0 %v11727_v21 }
 0x25f   : > { %6964 = vmatmul.mubr.msk.f32.gmra.mrb[28].mxu1 %vm11753_vm4, %v11636_v41 }
 0x260   : > { %6487 = vmatmul.mubr.f32.gmra.mrb[30].mxu0 %v11730_v18  ;;  %6966 = vmatprep.mubr.msk.f32.mxu1 %vm2801_vm14, %v11636_v41  ;;  %vm4889_vm14 = vcmask 818176  }
 0x263   : > { %6967 = vmatmul.mubr.msk.f32.gmra.mrb[30].mxu1 %vm2802_vm15, %v11636_v41 }
 0x2f7   : > { %v6443_v52 = vpop.f32.mrb[0].mxu0 }
 0x2f8   : > { %v7353_v1 = vadd.f32 %v6443_v52, %v10426_v4  ;;  %v2483_v49 = vpop.f32.mrb[1].mxu0 }
 0x2f9   : > { %v7354_v36 = vadd.f32 %v10426_v4, %v2483_v49 }
 0x2fa   : > { %v6923_v24 = vpop.f32.mrb[0].mxu1 }
 0x2fb   : > { %v4858_v51 = vmul.f32 %v7353_v1, %v6923_v24  ;;  %v6446_v14 = vpop.f32.mrb[2].mxu0  ;;  %v4667_v2 = vpop.f32.mrb[1].mxu1 }
 0x2fc   : > { %v7355_v41 = vadd.f32 %v6446_v14, %v10426_v4  ;;  %v4857_v10 = vmul.f32 %v7354_v36, %v4667_v2  ;;  %v2495_v59 = vpop.f32.mrb[3].mxu0 }
 0x2fd   : > { %4891 = vst.msk [vmem:[%s10431_s24 + $0x8] sm:$0xff] %vm4889_vm14, %v4858_v51  ;;  %v7356_v23 = vadd.f32 %v10426_v4, %v2495_v59 }
 0x2fe   : > { %4890 = vst.msk [vmem:[%s10431_s24] sm:$0xff] %vm4889_vm14, %v4857_v10  ;;  %v6926_v7 = vpop.f32.mrb[2].mxu1 }
 0x2ff   : > { %v4860_v27 = vmul.f32 %v7355_v41, %v6926_v7  ;;  %v6449_v22 = vpop.f32.mrb[4].mxu0  ;;  %v4679_v56 = vpop.f32.mrb[3].mxu1 }
 0x300   : > { %v7357_v61 = vadd.f32 %v6449_v22, %v10426_v4  ;;  %v4859_v13 = vmul.f32 %v7356_v23, %v4679_v56  ;;  %v2507_v3 = vpop.f32.mrb[5].mxu0 }
 0x301   : > { %4893 = vst.msk [vmem:[%s10431_s24 + $0x18] sm:$0xff] %vm4889_vm14, %v4860_v27  ;;  %v7358_v8 = vadd.f32 %v10426_v4, %v2507_v3 }
 0x302   : > { %4892 = vst.msk [vmem:[%s10431_s24 + $0x10] sm:$0xff] %vm4889_vm14, %v4859_v13  ;;  %v6929_v31 = vpop.f32.mrb[4].mxu1 }
 0x303   : > { %v4862_v47 = vmul.f32 %v7357_v61, %v6929_v31  ;;  %v6452_v25 = vpop.f32.mrb[6].mxu0  ;;  %v4691_v16 = vpop.f32.mrb[5].mxu1 }
 0x304   : > { %v7359_v48 = vadd.f32 %v6452_v25, %v10426_v4  ;;  %v4861_v46 = vmul.f32 %v7358_v8, %v4691_v16  ;;  %v2519_v42 = vpop.f32.mrb[7].mxu0 }
 0x305   : > { %4895 = vst.msk [vmem:[%s10431_s24 + $0x28] sm:$0xff] %vm4889_vm14, %v4862_v47  ;;  %v7360_v28 = vadd.f32 %v10426_v4, %v2519_v42 }
 0x306   : > { %4894 = vst.msk [vmem:[%s10431_s24 + $0x20] sm:$0xff] %vm4889_vm14, %v4861_v46  ;;  %v6932_v57 = vpop.f32.mrb[6].mxu1 }
 0x307   : > { %v4864_v58 = vmul.f32 %v7359_v48, %v6932_v57  ;;  %v6455_v9 = vpop.f32.mrb[8].mxu0  ;;  %v4703_v5 = vpop.f32.mrb[7].mxu1 }
 0x308   : > { %v7361_v0 = vadd.f32 %v6455_v9, %v10426_v4  ;;  %v4863_v38 = vmul.f32 %v7360_v28, %v4703_v5  ;;  %v2531_v60 = vpop.f32.mrb[9].mxu0 }
 0x309   : > { %4897 = vst.msk [vmem:[%s10431_s24 + $0x38] sm:$0xff] %vm4889_vm14, %v4864_v58  ;;  %v7362_v11 = vadd.f32 %v10426_v4, %v2531_v60 }
 0x30a   : > { %4896 = vst.msk [vmem:[%s10431_s24 + $0x30] sm:$0xff] %vm4889_vm14, %v4863_v38  ;;  %v6935_v15 = vpop.f32.mrb[8].mxu1 }
 0x30b   : > { %v4866_v44 = vmul.f32 %v7361_v0, %v6935_v15  ;;  %v6458_v34 = vpop.f32.mrb[10].mxu0  ;;  %v4715_v63 = vpop.f32.mrb[9].mxu1 }
 0x30c   : > { %v7363_v33 = vadd.f32 %v6458_v34, %v10426_v4  ;;  %v4865_v6 = vmul.f32 %v7362_v11, %v4715_v63  ;;  %v2543_v26 = vpop.f32.mrb[11].mxu0 }
 0x30d   : > { %4899 = vst.msk [vmem:[%s10431_s24 + $0x48] sm:$0xff] %vm4889_vm14, %v4866_v44  ;;  %v7364_v45 = vadd.f32 %v10426_v4, %v2543_v26 }
 0x30e   : > { %4898 = vst.msk [vmem:[%s10431_s24 + $0x40] sm:$0xff] %vm4889_vm14, %v4865_v6  ;;  %v6938_v12 = vpop.f32.mrb[10].mxu1 }
 0x30f   : > { %v4868_v62 = vmul.f32 %v7363_v33, %v6938_v12  ;;  %v6461_v40 = vpop.f32.mrb[12].mxu0  ;;  %v4727_v54 = vpop.f32.mrb[11].mxu1 }
 0x310   : > { %v7365_v39 = vadd.f32 %v6461_v40, %v10426_v4  ;;  %v4867_v53 = vmul.f32 %v7364_v45, %v4727_v54  ;;  %v2555_v30 = vpop.f32.mrb[13].mxu0 }
 0x311   : > { %4901 = vst.msk [vmem:[%s10431_s24 + $0x58] sm:$0xff] %vm4889_vm14, %v4868_v62  ;;  %v7366_v17 = vadd.f32 %v10426_v4, %v2555_v30 }
 0x312   : > { %4900 = vst.msk [vmem:[%s10431_s24 + $0x50] sm:$0xff] %vm4889_vm14, %v4867_v53  ;;  %v6941_v37 = vpop.f32.mrb[12].mxu1 }
 0x313   : > { %v4870_v19 = vmul.f32 %v7365_v39, %v6941_v37  ;;  %v6464_v43 = vpop.f32.mrb[14].mxu0  ;;  %v4739_v35 = vpop.f32.mrb[13].mxu1 }
 0x314   : > { %v7367_v55 = vadd.f32 %v6464_v43, %v10426_v4  ;;  %v4869_v32 = vmul.f32 %v7366_v17, %v4739_v35  ;;  %v2567_v21 = vpop.f32.mrb[15].mxu0 }
 0x315   : > { %4903 = vst.msk [vmem:[%s10431_s24 + $0x68] sm:$0xff] %vm4889_vm14, %v4870_v19  ;;  %v7368_v20 = vadd.f32 %v10426_v4, %v2567_v21 }
 0x316   : > { %4902 = vst.msk [vmem:[%s10431_s24 + $0x60] sm:$0xff] %vm4889_vm14, %v4869_v32  ;;  %v6944_v18 = vpop.f32.mrb[14].mxu1 }
 0x317   : > { %v4872_v29 = vmul.f32 %v7367_v55, %v6944_v18  ;;  %v6467_v50 = vpop.f32.mrb[16].mxu0  ;;  %v4751_v52 = vpop.f32.mrb[15].mxu1 }
 0x318   : > { %v7369_v1 = vadd.f32 %v6467_v50, %v10426_v4  ;;  %v4871_v49 = vmul.f32 %v7368_v20, %v4751_v52  ;;  %v2579_v36 = vpop.f32.mrb[17].mxu0 }
 0x319   : > { %4905 = vst.msk [vmem:[%s10431_s24 + $0x78] sm:$0xff] %vm4889_vm14, %v4872_v29  ;;  %v7370_v24 = vadd.f32 %v10426_v4, %v2579_v36 }
 0x31a   : > { %4904 = vst.msk [vmem:[%s10431_s24 + $0x70] sm:$0xff] %vm4889_vm14, %v4871_v49  ;;  %v6947_v51 = vpop.f32.mrb[16].mxu1 }
 0x31b   : > { %v4874_v14 = vmul.f32 %v7369_v1, %v6947_v51  ;;  %v6470_v2 = vpop.f32.mrb[18].mxu0  ;;  %v4763_v41 = vpop.f32.mrb[17].mxu1 }
 0x31c   : > { %v7371_v10 = vadd.f32 %v6470_v2, %v10426_v4  ;;  %v4873_v59 = vmul.f32 %v7370_v24, %v4763_v41  ;;  %v2591_v23 = vpop.f32.mrb[19].mxu0 }
 0x31d   : > { %4907 = vst.msk [vmem:[%s10431_s24 + $0x88] sm:$0xff] %vm4889_vm14, %v4874_v14  ;;  %v7372_v7 = vadd.f32 %v10426_v4, %v2591_v23 }
 0x31e   : > { %4906 = vst.msk [vmem:[%s10431_s24 + $0x80] sm:$0xff] %vm4889_vm14, %v4873_v59  ;;  %v6950_v27 = vpop.f32.mrb[18].mxu1 }
 0x31f   : > { %v4876_v22 = vmul.f32 %v7371_v10, %v6950_v27  ;;  %v6473_v56 = vpop.f32.mrb[20].mxu0  ;;  %v4775_v61 = vpop.f32.mrb[19].mxu1 }
 0x320   : > { %v7373_v13 = vadd.f32 %v6473_v56, %v10426_v4  ;;  %v4875_v3 = vmul.f32 %v7372_v7, %v4775_v61  ;;  %v2603_v8 = vpop.f32.mrb[21].mxu0 }
 0x321   : > { %4909 = vst.msk [vmem:[%s10431_s24 + $0x98] sm:$0xff] %vm4889_vm14, %v4876_v22  ;;  %v7374_v31 = vadd.f32 %v10426_v4, %v2603_v8 }
 0x322   : > { %4908 = vst.msk [vmem:[%s10431_s24 + $0x90] sm:$0xff] %vm4889_vm14, %v4875_v3  ;;  %v6953_v47 = vpop.f32.mrb[20].mxu1 }
 0x323   : > { %v4878_v25 = vmul.f32 %v7373_v13, %v6953_v47  ;;  %v6476_v16 = vpop.f32.mrb[22].mxu0  ;;  %v4787_v48 = vpop.f32.mrb[21].mxu1 }
 0x324   : > { %v7375_v46 = vadd.f32 %v6476_v16, %v10426_v4  ;;  %v4877_v42 = vmul.f32 %v7374_v31, %v4787_v48  ;;  %v2615_v28 = vpop.f32.mrb[23].mxu0 }
 0x325   : > { %4911 = vst.msk [vmem:[%s10431_s24 + $0xa8] sm:$0xff] %vm4889_vm14, %v4878_v25  ;;  %v7376_v57 = vadd.f32 %v10426_v4, %v2615_v28 }
 0x326   : > { %4910 = vst.msk [vmem:[%s10431_s24 + $0xa0] sm:$0xff] %vm4889_vm14, %v4877_v42  ;;  %v6956_v58 = vpop.f32.mrb[22].mxu1 }
 0x327   : > { %v4880_v9 = vmul.f32 %v7375_v46, %v6956_v58  ;;  %v6479_v5 = vpop.f32.mrb[24].mxu0  ;;  %v4799_v0 = vpop.f32.mrb[23].mxu1 }
 0x328   : > { %v7377_v38 = vadd.f32 %v6479_v5, %v10426_v4  ;;  %v4879_v60 = vmul.f32 %v7376_v57, %v4799_v0  ;;  %v2627_v11 = vpop.f32.mrb[25].mxu0 }
 0x329   : > { %4913 = vst.msk [vmem:[%s10431_s24 + $0xb8] sm:$0xff] %vm4889_vm14, %v4880_v9  ;;  %v7378_v15 = vadd.f32 %v10426_v4, %v2627_v11 }
 0x32a   : > { %4912 = vst.msk [vmem:[%s10431_s24 + $0xb0] sm:$0xff] %vm4889_vm14, %v4879_v60  ;;  %v6959_v44 = vpop.f32.mrb[24].mxu1 }
 0x32b   : > { %v4882_v34 = vmul.f32 %v7377_v38, %v6959_v44  ;;  %v6482_v63 = vpop.f32.mrb[26].mxu0  ;;  %v4811_v33 = vpop.f32.mrb[25].mxu1 }
 0x32c   : > { %v7379_v6 = vadd.f32 %v6482_v63, %v10426_v4  ;;  %v4881_v26 = vmul.f32 %v7378_v15, %v4811_v33  ;;  %v2639_v45 = vpop.f32.mrb[27].mxu0 }
 0x32d   : > { %4915 = vst.msk [vmem:[%s10431_s24 + $0xc8] sm:$0xff] %vm4889_vm14, %v4882_v34  ;;  %v7380_v12 = vadd.f32 %v10426_v4, %v2639_v45 }
 0x32e   : > { %4914 = vst.msk [vmem:[%s10431_s24 + $0xc0] sm:$0xff] %vm4889_vm14, %v4881_v26  ;;  %v6962_v62 = vpop.f32.mrb[26].mxu1 }
 0x32f   : > { %v4884_v40 = vmul.f32 %v7379_v6, %v6962_v62  ;;  %v6485_v54 = vpop.f32.mrb[28].mxu0  ;;  %v4823_v39 = vpop.f32.mrb[27].mxu1 }
 0x330   : > { %v7381_v53 = vadd.f32 %v6485_v54, %v10426_v4  ;;  %v4883_v30 = vmul.f32 %v7380_v12, %v4823_v39  ;;  %v2651_v17 = vpop.f32.mrb[29].mxu0 }
 0x331   : > { %4917 = vst.msk [vmem:[%s10431_s24 + $0xd8] sm:$0xff] %vm4889_vm14, %v4884_v40  ;;  %v7382_v37 = vadd.f32 %v10426_v4, %v2651_v17 }
 0x332   : > { %4916 = vst.msk [vmem:[%s10431_s24 + $0xd0] sm:$0xff] %vm4889_vm14, %v4883_v30  ;;  %v6965_v19 = vpop.f32.mrb[28].mxu1 }
 0x333   : > { %v4886_v43 = vmul.f32 %v7381_v53, %v6965_v19  ;;  %v6488_v35 = vpop.f32.mrb[30].mxu0  ;;  %v4835_v55 = vpop.f32.mrb[29].mxu1 }
 0x334   : > { %v7383_v32 = vadd.f32 %v6488_v35, %v10426_v4  ;;  %v4885_v21 = vmul.f32 %v7382_v37, %v4835_v55  ;;  %v2663_v20 = vpop.f32.mrb[31].mxu0  ;;  %4928 = sbr.rel (!%p7956_p4) target bundleno = 883 (0x373), region = 52 }
 0x335   : > { %4919 = vst.msk [vmem:[%s10431_s24 + $0xe8] sm:$0xff] %vm4889_vm14, %v4886_v43  ;;  %v7384_v18 = vadd.f32 %v10426_v4, %v2663_v20 }
 0x336   : > { %4918 = vst.msk [vmem:[%s10431_s24 + $0xe0] sm:$0xff] %vm4889_vm14, %v4885_v21  ;;  %v6968_v29 = vpop.f32.mrb[30].mxu1 }
 0x337   : > { %v4888_v50 = vmul.f32 %v7383_v32, %v6968_v29  ;;  %v4847_v52 = vpop.f32.mrb[31].mxu1 }
 0x338   : > { %v4887_v1 = vmul.f32 %v7384_v18, %v4847_v52 }
 0x339   : > { %4921 = vst.msk [vmem:[%s10431_s24 + $0xf8] sm:$0xff] %vm4889_vm14, %v4888_v50 }
 0x33a   : > { %4920 = vst.msk [vmem:[%s10431_s24 + $0xf0] sm:$0xff] %vm4889_vm14, %v4887_v1 }
 0x33b   : > { %s11763_s19 = smov (!%p4931_p8, %s4930_s19), 32 }
 0x33c   : > { %s5415_s18 = sshll.u32 %s11763_s19, 7 }
 0x33d   : > { %p5418_p9 = scmp.eq.s32.totalorder %s5415_s18, 0 }
 0x33e   : > { %s10539_s23 = sshrl.u32 (!%p5418_p9), %s11763_s19, 5 }
 0x33f   : > { %4939 = sbr.rel (%p5418_p9) target bundleno = 883 (0x373), region = 56  ;;  %p5419_p10 = scmp.le.s32.totalorder (!%p5418_p9), %s10539_s23, 0 }
 0x346   : > { %5223 = sbr.rel (%p5419_p10) target bundleno = 862 (0x35e), region = 135  ;;  %s11754_s27 = smov (!%p5419_p10), %s10533_s29 }
 0x347   : > { %s11755_s9 = smov (!%p5419_p10), %s10431_s24  ;;  %s10548_s10 = smov (!%p5419_p10), 0  }
 0x348   : > { %s10550_s26 = smov (!%p5419_p10), 0  }
 0x34d LB: >> { %v5063_v4 = vld [vmem:[%s7862_s9] sm:$0xff]  ;;  %v5065_v49 = vld [vmem:[%s7862_s9 + $0x8] sm:$0xff]  ;;  %v5067_v36 = vld [vmem:[%s7862_s9 + $0x10] sm:$0xff]  ;;  %s5127_s30 = sadd.s32 1, %s7866_s10  ;;  %s5057_s26 = sadd.s32 1, %s7870_s26   ;;  %s7870_s26 = sphi %s10550_s26, %s5057_s26   ;;  %s7866_s10 = sphi %s10548_s10, %s11758_s10   ;;  %s7862_s9 = sphi %s11755_s9, %s11757_s9   ;;  %s7858_s27 = sphi %s11754_s27, %s11756_s27  }
 0x34e   : >> { %5064 = vst [vmem:[%s7858_s27] sm:$0xff] %v5063_v4  ;;  %5066 = vst [vmem:[%s7858_s27 + $0x8] sm:$0xff] %v5065_v49  ;;  %v5069_v24 = vld [vmem:[%s7862_s9 + $0x18] sm:$0xff]  ;;  %v5071_v51 = vld [vmem:[%s7862_s9 + $0x20] sm:$0xff]  ;;  %p5128_p11 = scmp.ge.s32.totalorder %s5127_s30, %s10539_s23  ;;  %p5056_p12 = scmp.ge.s32.totalorder %s5057_s26, %s10539_s23 }
 0x34f   : >> { %5068 = vst [vmem:[%s7858_s27 + $0x10] sm:$0xff] %v5067_v36  ;;  %v5073_v14 = vld [vmem:[%s7862_s9 + $0x28] sm:$0xff]  ;;  %5070 = vst [vmem:[%s7858_s27 + $0x18] sm:$0xff] %v5069_v24  ;;  %v5075_v2 = vld [vmem:[%s7862_s9 + $0x30] sm:$0xff] }
 0x350   : >> { %5072 = vst [vmem:[%s7858_s27 + $0x20] sm:$0xff] %v5071_v51  ;;  %5074 = vst [vmem:[%s7858_s27 + $0x28] sm:$0xff] %v5073_v14  ;;  %v5077_v41 = vld [vmem:[%s7862_s9 + $0x38] sm:$0xff]  ;;  %v5079_v10 = vld [vmem:[%s7862_s9 + $0x40] sm:$0xff]  ;;  %s11765_s30 = smov (%p5128_p11, %s5127_s30), 0 }
 0x351   : >> { %5076 = vst [vmem:[%s7858_s27 + $0x30] sm:$0xff] %v5075_v2  ;;  %5078 = vst [vmem:[%s7858_s27 + $0x38] sm:$0xff] %v5077_v41  ;;  %v5081_v59 = vld [vmem:[%s7862_s9 + $0x48] sm:$0xff]  ;;  %v5083_v23 = vld [vmem:[%s7862_s9 + $0x50] sm:$0xff]  ;;  %s5420_s11 = sshll.u32 %s11765_s30, 8  ;;  %s11758_s10 = smov %s11765_s30 }
 0x352   : >> { %5080 = vst [vmem:[%s7858_s27 + $0x40] sm:$0xff] %v5079_v10  ;;  %v5085_v7 = vld [vmem:[%s7862_s9 + $0x58] sm:$0xff]  ;;  %5082 = vst [vmem:[%s7858_s27 + $0x48] sm:$0xff] %v5081_v59  ;;  %v5087_v27 = vld [vmem:[%s7862_s9 + $0x60] sm:$0xff]  ;;  %s10606_s12 = scalar_lea.vmem %s10431_s24, %s5420_s11 [#allocation2]   ;;  %s5133_s13 = scalar_lea.vmem %s10533_s29, %s5420_s11  }
 0x353   : >> { %5084 = vst [vmem:[%s7858_s27 + $0x50] sm:$0xff] %v5083_v23  ;;  %5086 = vst [vmem:[%s7858_s27 + $0x58] sm:$0xff] %v5085_v7  ;;  %v5089_v22 = vld [vmem:[%s7862_s9 + $0x68] sm:$0xff]  ;;  %v5091_v56 = vld [vmem:[%s7862_s9 + $0x70] sm:$0xff] }
 0x354   : >> { %5088 = vst [vmem:[%s7858_s27 + $0x60] sm:$0xff] %v5087_v27  ;;  %5090 = vst [vmem:[%s7858_s27 + $0x68] sm:$0xff] %v5089_v22  ;;  %v5093_v61 = vld [vmem:[%s7862_s9 + $0x78] sm:$0xff]  ;;  %v5095_v13 = vld [vmem:[%s7862_s9 + $0x80] sm:$0xff] }
 0x355   : >> { %5092 = vst [vmem:[%s7858_s27 + $0x70] sm:$0xff] %v5091_v56  ;;  %v5097_v3 = vld [vmem:[%s7862_s9 + $0x88] sm:$0xff]  ;;  %5094 = vst [vmem:[%s7858_s27 + $0x78] sm:$0xff] %v5093_v61  ;;  %v5099_v8 = vld [vmem:[%s7862_s9 + $0x90] sm:$0xff] }
 0x356   : >> { %5096 = vst [vmem:[%s7858_s27 + $0x80] sm:$0xff] %v5095_v13  ;;  %5098 = vst [vmem:[%s7858_s27 + $0x88] sm:$0xff] %v5097_v3  ;;  %v5101_v31 = vld [vmem:[%s7862_s9 + $0x98] sm:$0xff]  ;;  %v5103_v47 = vld [vmem:[%s7862_s9 + $0xa0] sm:$0xff] }
 0x357   : >> { %5100 = vst [vmem:[%s7858_s27 + $0x90] sm:$0xff] %v5099_v8  ;;  %5102 = vst [vmem:[%s7858_s27 + $0x98] sm:$0xff] %v5101_v31  ;;  %v5105_v25 = vld [vmem:[%s7862_s9 + $0xa8] sm:$0xff]  ;;  %v5107_v16 = vld [vmem:[%s7862_s9 + $0xb0] sm:$0xff]  ;;  %5059 = sbr.rel (!%p5056_p12) target bundleno = 845 (0x34d), region = 141 }
 0x358   : >> { %5104 = vst [vmem:[%s7858_s27 + $0xa0] sm:$0xff] %v5103_v47  ;;  %v5109_v48 = vld [vmem:[%s7862_s9 + $0xb8] sm:$0xff]  ;;  %5106 = vst [vmem:[%s7858_s27 + $0xa8] sm:$0xff] %v5105_v25  ;;  %v5111_v46 = vld [vmem:[%s7862_s9 + $0xc0] sm:$0xff] }
 0x359   : >> { %5108 = vst [vmem:[%s7858_s27 + $0xb0] sm:$0xff] %v5107_v16  ;;  %5110 = vst [vmem:[%s7858_s27 + $0xb8] sm:$0xff] %v5109_v48  ;;  %v5113_v42 = vld [vmem:[%s7862_s9 + $0xc8] sm:$0xff]  ;;  %v5115_v28 = vld [vmem:[%s7862_s9 + $0xd0] sm:$0xff] }
 0x35a   : >> { %5112 = vst [vmem:[%s7858_s27 + $0xc0] sm:$0xff] %v5111_v46  ;;  %5114 = vst [vmem:[%s7858_s27 + $0xc8] sm:$0xff] %v5113_v42  ;;  %v5117_v57 = vld [vmem:[%s7862_s9 + $0xd8] sm:$0xff]  ;;  %v5119_v58 = vld [vmem:[%s7862_s9 + $0xe0] sm:$0xff] }
 0x35b   : >> { %5116 = vst [vmem:[%s7858_s27 + $0xd0] sm:$0xff] %v5115_v28  ;;  %v5121_v9 = vld [vmem:[%s7862_s9 + $0xe8] sm:$0xff]  ;;  %5118 = vst [vmem:[%s7858_s27 + $0xd8] sm:$0xff] %v5117_v57  ;;  %v5123_v5 = vld [vmem:[%s7862_s9 + $0xf0] sm:$0xff] }
 0x35c   : >> { %5120 = vst [vmem:[%s7858_s27 + $0xe0] sm:$0xff] %v5119_v58  ;;  %5122 = vst [vmem:[%s7858_s27 + $0xe8] sm:$0xff] %v5121_v9  ;;  %v5125_v0 = vld [vmem:[%s7862_s9 + $0xf8] sm:$0xff]  ;;  %s11757_s9 = smov %s10606_s12 }
 0x35d   : >> { %5124 = vst [vmem:[%s7858_s27 + $0xf0] sm:$0xff] %v5123_v5  ;;  %5126 = vst [vmem:[%s7858_s27 + $0xf8] sm:$0xff] %v5125_v0  ;;  %s11756_s27 = smov %s5133_s13 }
 0x35e PF: > { %s10647_s14 = sand.u32 31, %s11763_s19   ;;  %s5431_s15 = sshll.u32 %s10539_s23, 8 }
 0x35f   : > { %s5138_s16 = scalar_lea.vmem %s10431_s24, %s5431_s15 [#allocation2]   ;;  %s5140_s17 = scalar_lea.vmem %s10533_s29, %s5431_s15  }
 0x360   : > { %p5425_p13 = scmp.le.s32.totalorder %s10647_s14, 0 }
 0x361   : > { %s7872_s20 = smov (!%p5425_p13), %s5140_s17   ;;  %s7876_s21 = smov (!%p5425_p13), %s5138_s16  }
 0x362   : > { %5237 = sbr.rel (%p5425_p13) target bundleno = 883 (0x373), region = 146  ;;  %s7880_s22 = smov (!%p5425_p13), 0  }
 0x363   : > { %s7884_s18 = smov (!%p5425_p13), 0  }
 0x369 LB: >> { %v5150_v38 = vld [vmem:[%s7878_s21] sm:$0xff]  ;;  %s5152_s19 = sadd.s32 1, %s7882_s22  ;;  %s5144_s18 = sadd.s32 1, %s7886_s18   ;;  %s7886_s18 = sphi %s7884_s18, %s5144_s18   ;;  %s7882_s22 = sphi %s7880_s22, %s7881_s22   ;;  %s7878_s21 = sphi %s7876_s21, %s5157_s21   ;;  %s7874_s20 = sphi %s7872_s20, %s5158_s20  }
 0x36a   : >> { %5151 = vst [vmem:[%s7874_s20] sm:$0xff] %v5150_v38  ;;  %p5153_p0 = scmp.ge.s32.totalorder %s5152_s19, %s10647_s14  ;;  %p5143_p1 = scmp.ge.s32.totalorder %s5144_s18, %s10647_s14 }
 0x36c   : >> { %s11767_s19 = smov (%p5153_p0, %s5152_s19), 0  ;;  %5146 = sbr.rel (!%p5143_p1) target bundleno = 873 (0x369), region = 152 }
 0x36d   : >> { %s5426_s24 = sshll.u32 %s11767_s19, 3  ;;  %s7881_s22 = smov %s11767_s19  }
 0x36e   : >> { %s5157_s21 = scalar_lea.vmem %s5138_s16, %s5426_s24 [#allocation2]   ;;  %s5158_s20 = scalar_lea.vmem %s5140_s17, %s5426_s24  }
 0x373 PF: > { %p14_p2 = scmp.ge.s32.totalorder %s7946_s28, 6   ;;  %s11759_s24 = smov %s7850_s25 }
 0x374   : > { %s11760_s25 = smov %s7954_s8  ;;  %s11761_s26 = smov %s7946_s28 }
 0x375   :  { %16 = sbr.rel (!%p14_p2) target bundleno = 2 (0x2), region = 163 }

</bundles_post_ra>
